<compile_context>
chip_gen: v5e
topology: v5e:2x2
jax: 0.10.0
libtpu: 0.0.40
codegen_flags: <defaults>
</compile_context>

<pallas_src>
import functools
import math

import jax
import jax.numpy as jnp
import numpy as np
from jax.experimental import pallas as pl
from jax.experimental.pallas import tpu as pltpu

LANE = 128


def _round_up(x, m):
    return ((x + m - 1) // m) * m


def _bias_layout(p_pad, c_pad):
    """Packed bias slab layout: (offset, length) per segment, all 128-aligned."""
    segs = [("b12a", 1024), ("b12b", 512), ("ba1", 256), ("ba2d", 256),
            ("bp", p_pad), ("bc1", LANE), ("bc2", c_pad)]
    off, cur = {}, 0
    for name, n in segs:
        off[name] = (cur, n)
        cur += n
    return off, cur


def enhancer_kernel(
    # activations (batch tile): fused [x1|x2] slab, bf16
    x12_ref,
    # weights (bf16, resident in VMEM across grid steps)
    w12a_ref, w12b_ref, wa1_ref, wa2d_ref, wp_ref, wc1_ref, wc2_ref,
    # packed f32 bias slab
    bias_ref,
    # outputs
    probs_ref, proto_ref, m12_ref,
    *, layout):
    f32 = jnp.float32
    bf16 = jnp.bfloat16

    def bias(name):
        o, n = layout[name]
        return bias_ref[:, o:o + n]            # (1, n) f32, 128-aligned slice

    def dot(a_bf16, w_ref):                    # bf16 MXU matmul, f32 accumulate
        return jnp.dot(a_bf16, w_ref[...], preferred_element_type=f32)

    x12 = x12_ref[...]                         # (tb, in_pad) bf16

    # ---- fused modality branches as block-diagonal matmuls
    # [h1|h2] = relu([x1|x2] @ blockdiag(w1a, w2a) + [b1a|b2a])
    h12 = jnp.maximum(dot(x12, w12a_ref) + bias("b12a"), 0.0).astype(bf16)   # (tb,1024)
    # TODO(synk): Dropout(0.3) is identity (eval mode); no RNG mask generated.
    # [m1|m2] = [h1|h2] @ blockdiag(w1b, w2b) + [b1b|b2b]
    m12 = dot(h12, w12b_ref) + bias("b12b")                                  # (tb,512) f32
    m12_bf = m12.astype(bf16)

    # ---- attention on concat([m1, m2]); m12 already IS the concat
    attn_h = jnp.tanh(dot(m12_bf, wa1_ref) + bias("ba1")).astype(bf16)       # (tb,256)
    # 2-way softmax(l0,l1) == [sigmoid(l0-l1), 1-sigmoid(l0-l1)]; the (l0-l1)
    # projection is replicated across 256 lanes (wa2d/ba2d) so the gate comes
    # out of the MXU already broadcast across lanes.
    d = dot(attn_h, wa2d_ref) + bias("ba2d")                                 # (tb,256), equal cols
    w0 = pl.reciprocal(1.0 + jnp.exp(-d), approx=True)                       # sigmoid via EUP
    m1 = m12[:, :256]
    m2 = m12[:, 256:]
    fused = (m2 + w0 * (m1 - m2)).astype(bf16)

    # ---- prototype layer (padded to p_pad lanes; pad columns are exactly 0)
    proto = jnp.maximum(dot(fused, wp_ref) + bias("bp"), 0.0)                # (tb,p_pad) f32

    # ---- classifier (hidden padded to 128, classes padded to c_pad lanes)
    ch = jnp.maximum(dot(proto.astype(bf16), wc1_ref) + bias("bc1"), 0.0).astype(bf16)
    logits = dot(ch, wc2_ref) + bias("bc2")    # padded-class logits ~ -1e30

    # ---- softmax over classes (padded columns underflow to exp(...) == 0)
    mx = jnp.max(logits, axis=-1, keepdims=True)
    e = jnp.exp(logits - mx)
    probs = e * pl.reciprocal(jnp.sum(e, axis=-1, keepdims=True), approx=True)

    probs_ref[...] = probs
    proto_ref[...] = proto
    m12_ref[...] = m12


def multimodal_enhancer_forward(x1, x2, kparams, *, batch_tile=None):
    B, mod1_dim = x1.shape
    _, mod2_dim = x2.shape
    num_classes = kparams["num_classes"]
    proto_dim = kparams["proto_dim"]
    in_pad = kparams["w12a"].shape[0]
    p_pad = kparams["wp"].shape[1]
    c_pad = kparams["wc2"].shape[1]
    layout, bias_total = _bias_layout(p_pad, c_pad)

    # ---- batch tile selection (large, bf16-sublane friendly, prefers >=2
    # grid steps so the "parallel" axis shards across both v7x TensorCores)
    if batch_tile is None:
        if B <= 128:
            batch_tile = _round_up(max(B, 16), 16)
        else:
            batch_tile = 512
            while batch_tile > 128 and _round_up(B, batch_tile) // batch_tile < 2:
                batch_tile //= 2
    tb = batch_tile
    b_pad = _round_up(B, tb)

    # ---- fuse [x1|x2] into one lane-dense bf16 slab (single dense input DMA)
    x12 = jnp.concatenate([x1, x2], axis=1).astype(jnp.bfloat16)
    x12 = jnp.pad(x12, ((0, b_pad - B), (0, in_pad - (mod1_dim + mod2_dim))))

    weights = (kparams["w12a"], kparams["w12b"], kparams["wa1"],
               kparams["wa2d"], kparams["wp"], kparams["wc1"], kparams["wc2"])
    bias_slab = kparams["bias"]                        # (1, bias_total) f32

    grid = (b_pad // tb,)

    def act_spec(n):
        return pl.BlockSpec((tb, n), lambda i: (i, 0))

    def const_spec(shape):
        nd = len(shape)
        return pl.BlockSpec(shape, lambda i, _nd=nd: (0,) * _nd)

    in_specs = ([act_spec(in_pad)]
                + [const_spec(w.shape) for w in weights]
                + [const_spec(bias_slab.shape)])

    out_shapes = (
        jax.ShapeDtypeStruct((b_pad, c_pad), jnp.float32),   # padded softmax(logits)
        jax.ShapeDtypeStruct((b_pad, p_pad), jnp.float32),   # padded prototype
        jax.ShapeDtypeStruct((b_pad, 512), jnp.float32),     # [mod1_feat | mod2_feat]
    )
    out_specs = [act_spec(c_pad), act_spec(p_pad), act_spec(512)]

    # advisory cost estimate so XLA can overlap this op with surrounding work
    kn = (in_pad * 1024 + 1024 * 512 + 512 * 256 + 256 * 256
          + 256 * p_pad + p_pad * 128 + 128 * c_pad)
    weight_bytes = sum(int(np.prod(w.shape)) * w.dtype.itemsize for w in weights)
    act_bytes = 2 * b_pad * in_pad + 4 * b_pad * (c_pad + p_pad + 512)
    cost = pl.CostEstimate(
        flops=2 * b_pad * kn,
        transcendentals=b_pad * (256 + 256 + c_pad),
        bytes_accessed=weight_bytes + act_bytes + bias_total * 4)

    probs_p, proto_p, m12_p = pl.pallas_call(
        functools.partial(enhancer_kernel, layout=layout),
        grid_spec=pl.GridSpec(grid=grid, in_specs=in_specs, out_specs=out_specs),
        out_shape=out_shapes,
        compiler_params=pltpu.CompilerParams(
            dimension_semantics=("parallel",),
            vmem_limit_bytes=48 * 1024 * 1024),
        cost_estimate=cost,
    )(x12, *weights, bias_slab)

    return (probs_p[:B, :num_classes], proto_p[:B, :proto_dim],
            m12_p[:B, :256], m12_p[:B, 256:])


# ---------------------------------------------------------------------------
# Parameter construction (PyTorch-style init) + packing for the kernel
# ---------------------------------------------------------------------------
def _init_linear(key, fan_in, fan_out):
    kw, kb = jax.random.split(key)
    bound = 1.0 / math.sqrt(fan_in)
    w = jax.random.uniform(kw, (fan_in, fan_out), jnp.float32, -bound, bound)
    b = jax.random.uniform(kb, (fan_out,), jnp.float32, -bound, bound)
    return w, b


def make_raw_params(key, mod1_dim, mod2_dim, num_classes, prototype_dim=64):
    keys = jax.random.split(key, 9)
    p = {}
    p["w1a"], p["b1a"] = _init_linear(keys[0], mod1_dim, 512)
    p["w1b"], p["b1b"] = _init_linear(keys[1], 512, 256)
    p["w2a"], p["b2a"] = _init_linear(keys[2], mod2_dim, 512)
    p["w2b"], p["b2b"] = _init_linear(keys[3], 512, 256)
    p["wa1"], p["ba1"] = _init_linear(keys[4], 512, 256)   # attention Linear(512,256)
    p["wa2"], p["ba2"] = _init_linear(keys[5], 256, 2)     # attention Linear(256,2)
    p["wp"], p["bp"] = _init_linear(keys[6], 256, prototype_dim)
    p["wc1"], p["bc1"] = _init_linear(keys[7], prototype_dim, 64)
    p["wc2"], p["bc2"] = _init_linear(keys[8], 64, num_classes)
    return p


def pack_params(raw, num_classes, prototype_dim):
    """bf16 block-diag / padded weights + one packed lane-aligned f32 bias slab."""
    assert raw["wa1"].shape == (512, 256)   # concat order invariant: [mod1 | mod2]
    mod1_dim = raw["w1a"].shape[0]
    mod2_dim = raw["w2a"].shape[0]
    in_pad = _round_up(mod1_dim + mod2_dim, LANE)
    p_pad = _round_up(prototype_dim, LANE)
    c_pad = _round_up(num_classes, LANE)
    h_pad = LANE                            # classifier hidden 64 -> 128 lanes
    layout, total = _bias_layout(p_pad, c_pad)
    bf16 = jnp.bfloat16

    def pad2(w, rows, cols):
        return jnp.pad(w, ((0, rows - w.shape[0]), (0, cols - w.shape[1])))

    k = {"num_classes": num_classes, "proto_dim": prototype_dim}

    # block-diagonal fused branch weights: one K=in_pad and one K=1024 matmul
    w12a = jnp.zeros((in_pad, 1024), jnp.float32)
    w12a = w12a.at[:mod1_dim, :512].set(raw["w1a"])
    w12a = w12a.at[mod1_dim:mod1_dim + mod2_dim, 512:].set(raw["w2a"])
    w12b = jnp.zeros((1024, 512), jnp.float32)
    w12b = w12b.at[:512, :256].set(raw["w1b"])
    w12b = w12b.at[512:, 256:].set(raw["w2b"])
    k["w12a"] = w12a.astype(bf16)
    k["w12b"] = w12b.astype(bf16)

    # attention first Linear: used as-is (the [m1|m2] slab IS the concat)
    k["wa1"] = raw["wa1"].astype(bf16)
    # fold the 2-way softmax into a logit-difference projection, replicated
    # across 256 lanes so the gate is lane-broadcast for free by the MXU
    wa2_diff = raw["wa2"][:, 0] - raw["wa2"][:, 1]              # (256,)
    k["wa2d"] = jnp.tile(wa2_diff.reshape(256, 1), (1, 256)).astype(bf16)
    ba2d = raw["ba2"][0] - raw["ba2"][1]

    k["wp"] = pad2(raw["wp"], 256, p_pad).astype(bf16)
    k["wc1"] = pad2(raw["wc1"], p_pad, h_pad).astype(bf16)
    k["wc2"] = pad2(raw["wc2"], h_pad, c_pad).astype(bf16)

    def seg(name, values, fill=0.0):
        _, n = layout[name]
        v = jnp.full((n,), fill, jnp.float32)
        return v.at[:values.shape[0]].set(values.astype(jnp.float32))

    slab = jnp.concatenate([
        seg("b12a", jnp.concatenate([raw["b1a"], raw["b2a"]])),
        seg("b12b", jnp.concatenate([raw["b1b"], raw["b2b"]])),
        seg("ba1", raw["ba1"]),
        seg("ba2d", jnp.full((256,), ba2d, jnp.float32)),
        seg("bp", raw["bp"]),
        seg("bc1", raw["bc1"]),
        seg("bc2", raw["bc2"], fill=-1e30),   # padded class logits -> prob 0
    ]).reshape(1, total)
    k["bias"] = slab
    return k


# ---------------------------------------------------------------------------
# Pure-JAX reference (mirrors the PyTorch module, eval-mode dropout)
# ---------------------------------------------------------------------------
def reference_forward(x1, x2, raw):
    def q(a):   # the kernel sees bf16-rounded inputs/weights
        return a.astype(jnp.bfloat16).astype(jnp.float32)
    x1, x2 = q(x1), q(x2)
    h1 = jax.nn.relu(x1 @ q(raw["w1a"]) + raw["b1a"])
    m1 = h1 @ q(raw["w1b"]) + raw["b1b"]
    h2 = jax.nn.relu(x2 @ q(raw["w2a"]) + raw["b2a"])
    m2 = h2 @ q(raw["w2b"]) + raw["b2b"]
    combined = jnp.concatenate([m1, m2], axis=1)
    a = jnp.tanh(combined @ q(raw["wa1"]) + raw["ba1"])
    attn = jax.nn.softmax(a @ q(raw["wa2"]) + raw["ba2"], axis=1)
    fused = attn[:, 0:1] * m1 + attn[:, 1:2] * m2
    proto = jax.nn.relu(fused @ q(raw["wp"]) + raw["bp"])
    ch = jax.nn.relu(proto @ q(raw["wc1"]) + raw["bc1"])
    logits = ch @ q(raw["wc2"]) + raw["bc2"]
    return jax.nn.softmax(logits, axis=1), proto, m1, m2


if __name__ == "__main__":
    B = 20
    MOD1_DIM = 32
    MOD2_DIM = 48
    NUM_CLASSES = 5
    PROTO_DIM = 64

    key = jax.random.PRNGKey(0)
    k_x1, k_x2, k_p = jax.random.split(key, 3)
    x1 = jax.random.normal(k_x1, (B, MOD1_DIM), jnp.float32)
    x2 = jax.random.normal(k_x2, (B, MOD2_DIM), jnp.float32)

    raw = make_raw_params(k_p, MOD1_DIM, MOD2_DIM, NUM_CLASSES, PROTO_DIM)
    kparams = pack_params(raw, NUM_CLASSES, PROTO_DIM)

    # batch_tile=16 exercises a multi-step grid (B=20 -> padded 32 -> 2 tiles)
    probs, proto, m1, m2 = jax.block_until_ready(
        multimodal_enhancer_forward(x1, x2, kparams, batch_tile=16))

    # shape + normalization sanity checks
    assert probs.shape == (B, NUM_CLASSES)
    assert proto.shape == (B, PROTO_DIM)
    assert m1.shape == (B, 256) and m2.shape == (B, 256)
    assert bool(jnp.allclose(jnp.sum(probs, axis=-1), 1.0, atol=5e-3))

    # numerical parity vs. pure-JAX reference (bf16 matmul tolerance)
    r_probs, r_proto, r_m1, r_m2 = reference_forward(x1, x2, raw)
    assert bool(jnp.allclose(m1, r_m1, rtol=0.1, atol=0.1))
    assert bool(jnp.allclose(m2, r_m2, rtol=0.1, atol=0.1))
    assert bool(jnp.allclose(proto, r_proto, rtol=0.1, atol=0.1))
    assert bool(jnp.allclose(probs, r_probs, rtol=0.1, atol=0.03))

    print("KERNEL_OK")
</pallas_src>

<mosaic_0001>
module attributes {stable_mosaic.version = 11 : i64} {
  func.func @enhancer_kernel(%arg0: i32, %arg1: memref<16x128xbf16, #tpu.memory_space<vmem>>, %arg2: memref<128x1024xbf16, #tpu.memory_space<vmem>>, %arg3: memref<1024x512xbf16, #tpu.memory_space<vmem>>, %arg4: memref<512x256xbf16, #tpu.memory_space<vmem>>, %arg5: memref<256x256xbf16, #tpu.memory_space<vmem>>, %arg6: memref<256x128xbf16, #tpu.memory_space<vmem>>, %arg7: memref<128x128xbf16, #tpu.memory_space<vmem>>, %arg8: memref<128x128xbf16, #tpu.memory_space<vmem>>, %arg9: memref<1x2432xf32, #tpu.memory_space<vmem>>, %arg10: memref<16x128xf32, #tpu.memory_space<vmem>>, %arg11: memref<16x128xf32, #tpu.memory_space<vmem>>, %arg12: memref<16x512xf32, #tpu.memory_space<vmem>>) attributes {dimension_semantics = [#tpu.dimension_semantics<parallel>], iteration_bounds = array<i64: 2>, scalar_prefetch = 0 : i64, scratch_operands = 0 : i64, tpu.core_type = #tpu.core_type<tc>, window_params = [{transform_indices = @transform_0, window_bounds = array<i64: 16, 128>}, {pipeline_mode = #tpu.pipeline_mode<synchronous>, transform_indices = @transform_1, window_bounds = array<i64: 128, 1024>}, {pipeline_mode = #tpu.pipeline_mode<synchronous>, transform_indices = @transform_2, window_bounds = array<i64: 1024, 512>}, {pipeline_mode = #tpu.pipeline_mode<synchronous>, transform_indices = @transform_3, window_bounds = array<i64: 512, 256>}, {pipeline_mode = #tpu.pipeline_mode<synchronous>, transform_indices = @transform_4, window_bounds = array<i64: 256, 256>}, {pipeline_mode = #tpu.pipeline_mode<synchronous>, transform_indices = @transform_5, window_bounds = array<i64: 256, 128>}, {pipeline_mode = #tpu.pipeline_mode<synchronous>, transform_indices = @transform_6, window_bounds = array<i64: 128, 128>}, {pipeline_mode = #tpu.pipeline_mode<synchronous>, transform_indices = @transform_7, window_bounds = array<i64: 128, 128>}, {pipeline_mode = #tpu.pipeline_mode<synchronous>, transform_indices = @transform_8, window_bounds = array<i64: 1, 2432>}, {transform_indices = @transform_9, window_bounds = array<i64: 16, 128>}, {transform_indices = @transform_10, window_bounds = array<i64: 16, 128>}, {transform_indices = @transform_11, window_bounds = array<i64: 16, 512>}]} {
    %c0 = arith.constant 0 : index
    %c0_0 = arith.constant 0 : index
    %0 = vector.load %arg1[%c0, %c0_0] : memref<16x128xbf16, #tpu.memory_space<vmem>>, vector<16x128xbf16>
    %c0_1 = arith.constant 0 : index
    %c0_2 = arith.constant 0 : index
    %1 = vector.load %arg2[%c0_1, %c0_2] : memref<128x1024xbf16, #tpu.memory_space<vmem>>, vector<128x1024xbf16>
    %cst = arith.constant dense<0.000000e+00> : vector<16x1024xf32>
    %2 = tpu.matmul %0, %1, %cst {dimension_numbers = #tpu.dot_dimension_numbers<[1], [0], [0], [1], [0, 0, 1, 1], [], []>} : vector<16x128xbf16>, vector<128x1024xbf16>, vector<16x1024xf32> -> vector<16x1024xf32>
    %c0_3 = arith.constant 0 : index
    %c0_4 = arith.constant 0 : index
    %3 = vector.load %arg9[%c0_3, %c0_4] : memref<1x2432xf32, #tpu.memory_space<vmem>>, vector<1x1024xf32>
    %4 = vector.broadcast %3 : vector<1x1024xf32> to vector<16x1024xf32>
    %5 = arith.addf %2, %4 : vector<16x1024xf32>
    %cst_5 = arith.constant 0.000000e+00 : f32
    %6 = vector.broadcast %cst_5 : f32 to vector<16x1024xf32>
    %7 = arith.maximumf %5, %6 : vector<16x1024xf32>
    %8 = arith.truncf %7 : vector<16x1024xf32> to vector<16x1024xbf16>
    %c0_6 = arith.constant 0 : index
    %c0_7 = arith.constant 0 : index
    %9 = vector.load %arg3[%c0_6, %c0_7] : memref<1024x512xbf16, #tpu.memory_space<vmem>>, vector<1024x512xbf16>
    %cst_8 = arith.constant dense<0.000000e+00> : vector<16x512xf32>
    %10 = tpu.matmul %8, %9, %cst_8 {dimension_numbers = #tpu.dot_dimension_numbers<[1], [0], [0], [1], [0, 0, 1, 1], [], []>} : vector<16x1024xbf16>, vector<1024x512xbf16>, vector<16x512xf32> -> vector<16x512xf32>
    %c0_9 = arith.constant 0 : index
    %c1024 = arith.constant 1024 : index
    %11 = vector.load %arg9[%c0_9, %c1024] : memref<1x2432xf32, #tpu.memory_space<vmem>>, vector<1x512xf32>
    %12 = vector.broadcast %11 : vector<1x512xf32> to vector<16x512xf32>
    %13 = arith.addf %10, %12 : vector<16x512xf32>
    %14 = arith.truncf %13 : vector<16x512xf32> to vector<16x512xbf16>
    %c0_10 = arith.constant 0 : index
    %c0_11 = arith.constant 0 : index
    %15 = vector.load %arg4[%c0_10, %c0_11] : memref<512x256xbf16, #tpu.memory_space<vmem>>, vector<512x256xbf16>
    %cst_12 = arith.constant dense<0.000000e+00> : vector<16x256xf32>
    %16 = tpu.matmul %14, %15, %cst_12 {dimension_numbers = #tpu.dot_dimension_numbers<[1], [0], [0], [1], [0, 0, 1, 1], [], []>} : vector<16x512xbf16>, vector<512x256xbf16>, vector<16x256xf32> -> vector<16x256xf32>
    %c0_13 = arith.constant 0 : index
    %c1536 = arith.constant 1536 : index
    %17 = vector.load %arg9[%c0_13, %c1536] : memref<1x2432xf32, #tpu.memory_space<vmem>>, vector<1x256xf32>
    %18 = vector.broadcast %17 : vector<1x256xf32> to vector<16x256xf32>
    %19 = arith.addf %16, %18 : vector<16x256xf32>
    %20 = math.tanh %19 : vector<16x256xf32>
    %21 = arith.truncf %20 : vector<16x256xf32> to vector<16x256xbf16>
    %c0_14 = arith.constant 0 : index
    %c0_15 = arith.constant 0 : index
    %22 = vector.load %arg5[%c0_14, %c0_15] : memref<256x256xbf16, #tpu.memory_space<vmem>>, vector<256x256xbf16>
    %cst_16 = arith.constant dense<0.000000e+00> : vector<16x256xf32>
    %23 = tpu.matmul %21, %22, %cst_16 {dimension_numbers = #tpu.dot_dimension_numbers<[1], [0], [0], [1], [0, 0, 1, 1], [], []>} : vector<16x256xbf16>, vector<256x256xbf16>, vector<16x256xf32> -> vector<16x256xf32>
    %c0_17 = arith.constant 0 : index
    %c1792 = arith.constant 1792 : index
    %24 = vector.load %arg9[%c0_17, %c1792] : memref<1x2432xf32, #tpu.memory_space<vmem>>, vector<1x256xf32>
    %25 = vector.broadcast %24 : vector<1x256xf32> to vector<16x256xf32>
    %26 = arith.addf %23, %25 : vector<16x256xf32>
    %cst_18 = arith.constant 0.000000e+00 : f32
    %27 = vector.broadcast %cst_18 : f32 to vector<16x256xf32>
    %28 = arith.subf %27, %26 : vector<16x256xf32>
    %29 = math.exp %28 : vector<16x256xf32>
    %cst_19 = arith.constant 1.000000e+00 : f32
    %30 = vector.broadcast %cst_19 : f32 to vector<16x256xf32>
    %31 = arith.addf %30, %29 : vector<16x256xf32>
    %32 = tpu.reciprocal %31 {approx = true} : vector<16x256xf32> -> vector<16x256xf32>
    %33 = vector.extract_strided_slice %13 {offsets = [0, 0], sizes = [16, 256], strides = [1, 1]} : vector<16x512xf32> to vector<16x256xf32>
    %34 = vector.extract_strided_slice %13 {offsets = [0, 256], sizes = [16, 256], strides = [1, 1]} : vector<16x512xf32> to vector<16x256xf32>
    %35 = arith.subf %33, %34 : vector<16x256xf32>
    %36 = arith.mulf %32, %35 : vector<16x256xf32>
    %37 = arith.addf %34, %36 : vector<16x256xf32>
    %38 = arith.truncf %37 : vector<16x256xf32> to vector<16x256xbf16>
    %c0_20 = arith.constant 0 : index
    %c0_21 = arith.constant 0 : index
    %39 = vector.load %arg6[%c0_20, %c0_21] : memref<256x128xbf16, #tpu.memory_space<vmem>>, vector<256x128xbf16>
    %cst_22 = arith.constant dense<0.000000e+00> : vector<16x128xf32>
    %40 = tpu.matmul %38, %39, %cst_22 {dimension_numbers = #tpu.dot_dimension_numbers<[1], [0], [0], [1], [0, 0, 1, 1], [], []>} : vector<16x256xbf16>, vector<256x128xbf16>, vector<16x128xf32> -> vector<16x128xf32>
    %c0_23 = arith.constant 0 : index
    %c2048 = arith.constant 2048 : index
    %41 = vector.load %arg9[%c0_23, %c2048] : memref<1x2432xf32, #tpu.memory_space<vmem>>, vector<1x128xf32>
    %42 = vector.broadcast %41 : vector<1x128xf32> to vector<16x128xf32>
    %43 = arith.addf %40, %42 : vector<16x128xf32>
    %cst_24 = arith.constant 0.000000e+00 : f32
    %44 = vector.broadcast %cst_24 : f32 to vector<16x128xf32>
    %45 = arith.maximumf %43, %44 : vector<16x128xf32>
    %46 = arith.truncf %45 : vector<16x128xf32> to vector<16x128xbf16>
    %c0_25 = arith.constant 0 : index
    %c0_26 = arith.constant 0 : index
    %47 = vector.load %arg7[%c0_25, %c0_26] : memref<128x128xbf16, #tpu.memory_space<vmem>>, vector<128x128xbf16>
    %cst_27 = arith.constant dense<0.000000e+00> : vector<16x128xf32>
    %48 = tpu.matmul %46, %47, %cst_27 {dimension_numbers = #tpu.dot_dimension_numbers<[1], [0], [0], [1], [0, 0, 1, 1], [], []>} : vector<16x128xbf16>, vector<128x128xbf16>, vector<16x128xf32> -> vector<16x128xf32>
    %c0_28 = arith.constant 0 : index
    %c2176 = arith.constant 2176 : index
    %49 = vector.load %arg9[%c0_28, %c2176] : memref<1x2432xf32, #tpu.memory_space<vmem>>, vector<1x128xf32>
    %50 = vector.broadcast %49 : vector<1x128xf32> to vector<16x128xf32>
    %51 = arith.addf %48, %50 : vector<16x128xf32>
    %cst_29 = arith.constant 0.000000e+00 : f32
    %52 = vector.broadcast %cst_29 : f32 to vector<16x128xf32>
    %53 = arith.maximumf %51, %52 : vector<16x128xf32>
    %54 = arith.truncf %53 : vector<16x128xf32> to vector<16x128xbf16>
    %c0_30 = arith.constant 0 : index
    %c0_31 = arith.constant 0 : index
    %55 = vector.load %arg8[%c0_30, %c0_31] : memref<128x128xbf16, #tpu.memory_space<vmem>>, vector<128x128xbf16>
    %cst_32 = arith.constant dense<0.000000e+00> : vector<16x128xf32>
    %56 = tpu.matmul %54, %55, %cst_32 {dimension_numbers = #tpu.dot_dimension_numbers<[1], [0], [0], [1], [0, 0, 1, 1], [], []>} : vector<16x128xbf16>, vector<128x128xbf16>, vector<16x128xf32> -> vector<16x128xf32>
    %c0_33 = arith.constant 0 : index
    %c2304 = arith.constant 2304 : index
    %57 = vector.load %arg9[%c0_33, %c2304] : memref<1x2432xf32, #tpu.memory_space<vmem>>, vector<1x128xf32>
    %58 = vector.broadcast %57 : vector<1x128xf32> to vector<16x128xf32>
    %59 = arith.addf %56, %58 : vector<16x128xf32>
    %cst_34 = arith.constant dense<0xFF800000> : vector<16xf32>
    %60 = vector.multi_reduction <maximumf>, %59, %cst_34 [1] : vector<16x128xf32> to vector<16xf32>
    %61 = vector.shape_cast %60 : vector<16xf32> to vector<16x1xf32>
    %62 = vector.broadcast %61 : vector<16x1xf32> to vector<16x128xf32>
    %63 = arith.subf %59, %62 : vector<16x128xf32>
    %64 = math.exp %63 : vector<16x128xf32>
    %cst_35 = arith.constant dense<0.000000e+00> : vector<16xf32>
    %65 = vector.multi_reduction <add>, %64, %cst_35 [1] : vector<16x128xf32> to vector<16xf32>
    %66 = vector.shape_cast %65 : vector<16xf32> to vector<16x1xf32>
    %67 = tpu.reciprocal %66 {approx = true} : vector<16x1xf32> -> vector<16x1xf32>
    %68 = vector.broadcast %67 : vector<16x1xf32> to vector<16x128xf32>
    %69 = arith.mulf %64, %68 : vector<16x128xf32>
    %c0_36 = arith.constant 0 : index
    %c0_37 = arith.constant 0 : index
    %70 = vector.load %arg10[%c0_36, %c0_37] : memref<16x128xf32, #tpu.memory_space<vmem>>, vector<16x128xf32>
    tpu.vector_store %arg10[%c0_36, %c0_37], %69 {strides = array<i32>} : memref<16x128xf32, #tpu.memory_space<vmem>>, vector<16x128xf32>,
    %c0_38 = arith.constant 0 : index
    %c0_39 = arith.constant 0 : index
    %71 = vector.load %arg11[%c0_38, %c0_39] : memref<16x128xf32, #tpu.memory_space<vmem>>, vector<16x128xf32>
    tpu.vector_store %arg11[%c0_38, %c0_39], %45 {strides = array<i32>} : memref<16x128xf32, #tpu.memory_space<vmem>>, vector<16x128xf32>,
    %c0_40 = arith.constant 0 : index
    %c0_41 = arith.constant 0 : index
    %72 = vector.load %arg12[%c0_40, %c0_41] : memref<16x512xf32, #tpu.memory_space<vmem>>, vector<16x512xf32>
    tpu.vector_store %arg12[%c0_40, %c0_41], %13 {strides = array<i32>} : memref<16x512xf32, #tpu.memory_space<vmem>>, vector<16x512xf32>,
    return
  }
  func.func @transform_0(%arg0: i32) -> (i32, i32) {
    %c0_i32 = arith.constant 0 : i32
    %c0_i32_0 = arith.constant 0 : i32
    return %arg0, %c0_i32 : i32, i32
  }
  func.func @transform_1(%arg0: i32) -> (i32, i32) {
    %c0_i32 = arith.constant 0 : i32
    %c0_i32_0 = arith.constant 0 : i32
    %c0_i32_1 = arith.constant 0 : i32
    return %c0_i32, %c0_i32_0 : i32, i32
  }
  func.func @transform_2(%arg0: i32) -> (i32, i32) {
    %c0_i32 = arith.constant 0 : i32
    %c0_i32_0 = arith.constant 0 : i32
    %c0_i32_1 = arith.constant 0 : i32
    return %c0_i32, %c0_i32_0 : i32, i32
  }
  func.func @transform_3(%arg0: i32) -> (i32, i32) {
    %c0_i32 = arith.constant 0 : i32
    %c0_i32_0 = arith.constant 0 : i32
    %c0_i32_1 = arith.constant 0 : i32
    return %c0_i32, %c0_i32_0 : i32, i32
  }
  func.func @transform_4(%arg0: i32) -> (i32, i32) {
    %c0_i32 = arith.constant 0 : i32
    %c0_i32_0 = arith.constant 0 : i32
    %c0_i32_1 = arith.constant 0 : i32
    return %c0_i32, %c0_i32_0 : i32, i32
  }
  func.func @transform_5(%arg0: i32) -> (i32, i32) {
    %c0_i32 = arith.constant 0 : i32
    %c0_i32_0 = arith.constant 0 : i32
    %c0_i32_1 = arith.constant 0 : i32
    return %c0_i32, %c0_i32_0 : i32, i32
  }
  func.func @transform_6(%arg0: i32) -> (i32, i32) {
    %c0_i32 = arith.constant 0 : i32
    %c0_i32_0 = arith.constant 0 : i32
    %c0_i32_1 = arith.constant 0 : i32
    return %c0_i32, %c0_i32_0 : i32, i32
  }
  func.func @transform_7(%arg0: i32) -> (i32, i32) {
    %c0_i32 = arith.constant 0 : i32
    %c0_i32_0 = arith.constant 0 : i32
    %c0_i32_1 = arith.constant 0 : i32
    return %c0_i32, %c0_i32_0 : i32, i32
  }
  func.func @transform_8(%arg0: i32) -> (i32, i32) {
    %c0_i32 = arith.constant 0 : i32
    %c0_i32_0 = arith.constant 0 : i32
    %c0_i32_1 = arith.constant 0 : i32
    return %c0_i32, %c0_i32_0 : i32, i32
  }
  func.func @transform_9(%arg0: i32) -> (i32, i32) {
    %c0_i32 = arith.constant 0 : i32
    %c0_i32_0 = arith.constant 0 : i32
    return %arg0, %c0_i32 : i32, i32
  }
  func.func @transform_10(%arg0: i32) -> (i32, i32) {
    %c0_i32 = arith.constant 0 : i32
    %c0_i32_0 = arith.constant 0 : i32
    return %arg0, %c0_i32 : i32, i32
  }
  func.func @transform_11(%arg0: i32) -> (i32, i32) {
    %c0_i32 = arith.constant 0 : i32
    %c0_i32_0 = arith.constant 0 : i32
    return %arg0, %c0_i32 : i32, i32
  }
}

</mosaic_0001>

<bundles_post_ra>
// kernel: tpu_custom_call.1
= control target key start
LH: loop header
LB: loop body
LE: loop exit
PB: predicated region body
PF: predicated region fallthrough
CT: control target
= control target key end

     0   :  { %s7928_s0 = inlined_call_operand.hbm [shape: bf16[32,128], index: 0, kind: input, shape index: {}]   ;;  %s7929_s1 = inlined_call_operand.hbm [shape: bf16[128,1024], index: 1, kind: input, shape index: {}]   ;;  %s7930_s2 = inlined_call_operand.hbm [shape: bf16[1024,512], index: 2, kind: input, shape index: {}]   ;;  %s7931_s3 = inlined_call_operand.hbm [shape: bf16[512,256], index: 3, kind: input, shape index: {}]   ;;  %s7932_s4 = inlined_call_operand.hbm [shape: bf16[256,256], index: 4, kind: input, shape index: {}]   ;;  %s7933_s5 = inlined_call_operand.hbm [shape: bf16[256,128], index: 5, kind: input, shape index: {}]   ;;  %s7934_s6 = inlined_call_operand.hbm [shape: bf16[128,128], index: 6, kind: input, shape index: {}]   ;;  %s7935_s7 = inlined_call_operand.hbm [shape: bf16[128,128], index: 7, kind: input, shape index: {}]   ;;  %s7936_s8 = inlined_call_operand.hbm [shape: f32[1,2432], index: 8, kind: input, shape index: {}]   ;;  %s7937_s9 = inlined_call_operand.hbm [shape: f32[32,128], index: 9, kind: output, shape index: {0}]   ;;  %s7938_s10 = inlined_call_operand.hbm [shape: f32[32,128], index: 10, kind: output, shape index: {1}]   ;;  %s7939_s11 = inlined_call_operand.hbm [shape: f32[32,512], index: 11, kind: output, shape index: {2}]  }
   0x1   :  { %7949 = sst [smem:[#allocation28_spill]] %s7928_s0 }
   0x2   :  { %7950 = sst [smem:[#allocation29_spill]] %s7929_s1 }
   0x3   :  { %7951 = sst [smem:[#allocation30_spill]] %s7930_s2 }
   0x4   :  { %7952 = sst [smem:[#allocation31_spill]] %s7931_s3 }
   0x5   :  { %7953 = sst [smem:[#allocation32_spill]] %s7932_s4 }
   0x6   :  { %7954 = sst [smem:[#allocation33_spill]] %s7933_s5 }
   0x7   :  { %7955 = sst [smem:[#allocation34_spill]] %s7937_s9 }
   0x8   :  { %17 = vsyncpa [#allocation3], 0 }
   0x9   :  { %19 = vsyncpa [#allocation3 + $0x1], 0 }
   0xa   :  { %20 = vsyncpa [#allocation6], 0 }
   0xb   :  { %21 = vsyncpa [#allocation9], 0 }
   0xc   :  { %22 = vsyncpa [#allocation12], 0 }
   0xd   :  { %23 = vsyncpa [#allocation15], 0 }
   0xe   :  { %24 = vsyncpa [#allocation4], 0 }
   0xf   :  { %26 = vsyncpa [#allocation4 + $0x1], 0 }
  0x10   :  { %27 = vsyncpa [#allocation19], 0 }
  0x11   :  { %29 = vsyncpa [#allocation19 + $0x1], 0  ;;  %s7503_s17 = smov 0   ;;  %s7505_s18 = smov 0  }
  0x12   :  { %s7507_s19 = smov 0   ;;  %s7509_s20 = smov 0  }
  0x13 LB: > { %s7956_s1 = sld [smem:[#allocation29_spill]]  ;;  %s7527_s24 = sadd.s32 4294967295, %s7421_s20   ;;  %s7421_s20 = sphi %s7509_s20, %s7983_s20   ;;  %s7417_s19 = sphi %s7507_s19, %s7982_s19   ;;  %s7413_s18 = sphi %s7505_s18, %s7981_s18   ;;  %s7409_s17 = sphi %s7503_s17, %s7980_s17  }
  0x14   : > { %p4533_p0 = scmp.ge.s32.totalorder %s7421_s20, 1  ;;  %p56_p1 = scmp.eq.s32.totalorder %s7527_s24, 0 }
  0x15   : > { %p312_p2 = scmp.lt.s32.totalorder %s7421_s20, 3  ;;  %s7423_s26 = smov [#allocation5]  }
  0x16   : > { %s325_s27 = sshll.u32 %s7423_s26, 4  ;;  %s7958_s3 = sld [smem:[#allocation31_spill]]  ;;  %s326_s27 = int_to_ptr.vmem [resolvable:$true] %s325_s27 }
  0x17   : > { %p7532_p3 = pnand %p4533_p0, %p312_p2  ;;  %s7424_s13 = smov [#allocation8]  }
  0x18   : > { %s353_s14 = sshll.u32 %s7424_s13, 4  ;;  %s7425_s15 = smov 512   ;;  %s354_s14 = int_to_ptr.vmem [resolvable:$true] %s353_s14 }
  0x19   : > { %s323_s23 = sshll.u32 %s7956_s1, 4  ;;  %p6861_p4 = pneg %p7532_p3  ;;  %s324_s23 = int_to_ptr.hbm [resolvable:$true] %s323_s23 }
  0x1a   : > { %s7426_s16 = smov 32   ;;  %s7941_s21 = smov 128  }
  0x1b   : > { %p7544_p6 = pnand %p6861_p4, %p56_p1  ;;  %s7942_s22 = smov 8  }
  0x1c   : > { %s351_s30 = sshll.u32 %s7958_s3, 4  ;;  %s7960_s5 = sld [smem:[#allocation33_spill]]  ;;  %s352_s30 = int_to_ptr.hbm [resolvable:$true] %s351_s30 }
  0x1d   : > { %6864 = dma.hbm_to_vmem [thread:$0]  (!%p7544_p6), %s324_s23, 8192, %s326_s27, [#allocation6], %s7425_s15, %s7425_s15, %s7426_s16  }
  0x1e   : > { %6870 = dma.hbm_to_vmem [thread:$0]  (!%p7544_p6), %s352_s30, 8192, %s354_s14, [#allocation9], %s7941_s21, %s7941_s21, %s7942_s22  }
  0x1f   : > { %s7429_s13 = smov [#allocation11]   ;;  %s407_s23 = sshll.u32 %s7935_s7, 4  ;;  %s408_s23 = int_to_ptr.hbm [resolvable:$true] %s407_s23 }
  0x20   : > { %s381_s1 = sshll.u32 %s7429_s13, 4  ;;  %s7943_s27 = smov 64   ;;  %s382_s1 = int_to_ptr.vmem [resolvable:$true] %s381_s1 }
  0x21   : > { %s7945_s15 = smov 4   ;;  %s7432_s30 = smov [#allocation14]  }
  0x22   : > { %s379_s29 = sshll.u32 %s7960_s5, 4  ;;  %s409_s14 = sshll.u32 %s7432_s30, 4  ;;  %s380_s29 = int_to_ptr.hbm [resolvable:$true] %s379_s29  ;;  %s410_s14 = int_to_ptr.vmem [resolvable:$true] %s409_s14 }
  0x23   : > { %6876 = dma.hbm_to_vmem [thread:$0]  (!%p7544_p6), %s380_s29, 2048, %s382_s1, [#allocation12], %s7943_s27, %s7943_s27, %s7945_s15  }
  0x24   : > { %s7961_s2 = sld [smem:[#allocation30_spill]]  ;;  %s7433_s3 = smov [#allocation7]  }
  0x25   : > { %6882 = dma.hbm_to_vmem [thread:$0]  (!%p7544_p6), %s408_s23, 1024, %s410_s14, [#allocation15], %s7943_s27, %s7943_s27, %s7945_s15  }
  0x26   : > { %s339_s9 = sshll.u32 %s7433_s3, 4  ;;  %s7962_s4 = sld [smem:[#allocation32_spill]]  ;;  %s340_s9 = int_to_ptr.vmem [resolvable:$true] %s339_s9 }
  0x27   : > { %s7434_s30 = smov 256   ;;  %s7435_s21 = smov 16  }
  0x28   : > { %s7436_s16 = smov [#allocation10]   ;;  %s393_s23 = sshll.u32 %s7934_s6, 4  ;;  %s394_s23 = int_to_ptr.hbm [resolvable:$true] %s393_s23 }
  0x29   : > { %s367_s26 = sshll.u32 %s7436_s16, 4  ;;  %s7963_s14 = smov 8   ;;  %s368_s26 = int_to_ptr.vmem [resolvable:$true] %s367_s26 }
  0x2a   : > { %s337_s28 = sshll.u32 %s7961_s2, 4  ;;  %s7964_s3 = smov 128   ;;  %s338_s28 = int_to_ptr.hbm [resolvable:$true] %s337_s28 }
  0x2b   : > { %6867 = dma.hbm_to_vmem [thread:$0]  (!%p7544_p6), %s338_s28, 32768, %s340_s9, [#allocation6], %s7434_s30, %s7434_s30, %s7435_s21  }
  0x2c   : > { %s365_s29 = sshll.u32 %s7962_s4, 4  ;;  %s422_s9 = sshll.u32 %s7936_s8, 4  ;;  %s366_s29 = int_to_ptr.hbm [resolvable:$true] %s365_s29  ;;  %s423_s9 = int_to_ptr.hbm [resolvable:$true] %s422_s9 }
  0x2d   : > { %6873 = dma.hbm_to_vmem [thread:$0]  (!%p7544_p6), %s366_s29, 4096, %s368_s26, [#allocation9], %s7964_s3, %s7964_s3, %s7963_s14  }
  0x2e   : > { %s7437_s13 = smov [#allocation13]   ;;  %s7438_s22 = smov [#allocation16]  }
  0x2f   : > { %s395_s2 = sshll.u32 %s7437_s13, 4  ;;  %s424_s1 = sshll.u32 %s7438_s22, 4  ;;  %s396_s2 = int_to_ptr.vmem [resolvable:$true] %s395_s2  ;;  %s425_s1 = int_to_ptr.vmem [resolvable:$true] %s424_s1 }
  0x30   : > { %6879 = dma.hbm_to_vmem [thread:$0]  (!%p7544_p6), %s394_s23, 1024, %s396_s2, [#allocation12], %s7943_s27, %s7943_s27, %s7945_s15  }
  0x31   : > { %6885 = dma.hbm_to_vmem [thread:$0]  (!%p7544_p6), %s423_s9, 304, %s425_s1, [#allocation15]  }
  0x32   : > { %s7944_s29 = sadd.s32 4294967294, %s7421_s20   ;;  %s7599_s30 = sadd.s32 1, %s7421_s20  }
  0x33   : > { %s39_s16 = ssub.s32 %s7421_s20, %s7599_s30  ;;  %s42_s26 = sadd.s32 1, %s7417_s19 }
  0x34   : > { %p40_p7 = scmp.eq.s32.totalorder %s39_s16, 0  ;;  %p49_p8 = scmp.ne.s32.totalorder %s7417_s19, %s7413_s18 }
  0x35   : > { %p50_p9 = scmp.eq.s32.totalorder %s7421_s20, 0  ;;  %p55_p10 = scmp.ne.s32.totalorder %s7413_s18, %s7409_s17 }
  0x36   : > { %s7610_s23 = scalar_select %p40_p7, %s7417_s19, %s42_s26  }
  0x37   : > { %p7612_p11 = por %p50_p9, %p49_p8  ;;  %p7618_p12 = por %p56_p1, %p55_p10 }
  0x38   : > { %p247_p13 = scmp.eq.s32.totalorder %s7527_s24, 1  ;;  %p253_p0 = scmp.eq.s32.totalorder %s7944_s29, 1 }
  0x39   : > { %p6908_p2 = scmp.lt.s32.totalorder %s7421_s20, 2  ;;  %s435_s3 = sand.u32 1, %s7417_s19  }
  0x3a   : > { %p7627_p4 = por %p247_p13, %p49_p8  ;;  %p7631_p6 = por %p253_p0, %p55_p10 }
  0x3b   : > { %s4543_s9 = sshll.u32 %s435_s3, 3  ;;  %s6367_s13 = sshll.u32 %s7421_s20, 3 }
  0x3c   : > { %s7969_s0 = sld [smem:[#allocation28_spill]]  ;;  %s439_s16 = scalar_lea.vmem [#allocation2], %s4543_s9 }
  0x3d   : > { %s447_s26 = sshll.u32 %s439_s16, 4  ;;  %p7641_p7 = pnand %p6908_p2, %p7612_p11  ;;  %s448_s26 = int_to_ptr.vmem [resolvable:$true] %s447_s26 }
  0x3e   : > { %s436_s15 = scalar_lea.sflag [#allocation3], %s435_s3 }
  0x3f   : > { %p7253_p9 = pneg %p7641_p7 }
  0x42   : > { %s444_s1 = scalar_lea.hbm %s7969_s0, %s6367_s13  ;;  %s7256_s2 = scalar_lea.hbm %s7969_s0, 16 }
  0x43   : > { %s445_s27 = sshll.u32 %s444_s1, 4  ;;  %s446_s27 = int_to_ptr.hbm [resolvable:$true] %s445_s27 }
  0x44   : > { %s7249_s4 = sshra.s32 %s446_s27, 4  ;;  %s7250_s4 = int_to_ptr.hbm [resolvable:$true] %s7249_s4 }
  0x45   : > { %s7251_s5 = scalar_lea.hbm %s7250_s4, 8  ;;  %p7257_p11 = scmp.lt.s32.totalorder %s7250_s4, %s7969_s0 }
  0x46   : > { %p7252_p8 = scmp.ne.s32.totalorder %s7250_s4, %s7251_s5  ;;  %p7258_p0 = scmp.lt.s32.totalorder %s7256_s2, %s7251_s5 }
  0x48   : > { %p7254_p10 = pnand %p7253_p9, %p7252_p8  ;;  %p7259_p2 = por %p7258_p0, %p7257_p11 }
  0x4a   : > { %p7255_p13 = pneg %p7254_p10 }
  0x4c   : > { %p7260_p5 = pnand %p7259_p2, %p7255_p13 }
  0x4e   : > { %7263 = shalt.err (!%p7260_p5)
}
  0x4f   : > { %s7971_s3 = smov 4   ;;  %s7972_s1 = smov 64  }
  0x50   : > { %6889 = dma.hbm_to_vmem [thread:$0]  (!%p7641_p7), %s446_s27, 128, %s448_s26, %s436_s15, %s7972_s1, %s7972_s1, %s7971_s3  }
  0x51   : > { %459 = sbr.rel (%p7532_p3) target bundleno = 1637 (0x665), region = 56  ;;  %s7661_s16 = sand.u32 (!%p7532_p3), 1, %s7413_s18  }
  0x52   : > { %s4547_s4 = sshll.u32 (!%p7532_p3), %s7661_s16, 3  ;;  %s462_s5 = scalar_lea.sflag (!%p7532_p3), [#allocation3], %s7661_s16 }
  0x53   : > { %s7665_s9 = scalar_lea.vmem (!%p7532_p3), [#allocation2], %s4547_s4 }
  0x56   : > { %7380 = dma.done.wait (%p7618_p12), %s462_s5, 128  }
  0x57   : > { %7382 = vsyncadd (%p7618_p12), %s462_s5, 4294967168 }
  0x58   : > { %7384 = dma.done.wait (%p56_p1), [#allocation6], 40960  }
  0x59   : > { %7386 = vsyncadd (%p56_p1), [#allocation6], 4294926336 }
  0x5a   : > { %7388 = dma.done.wait (%p56_p1), [#allocation9], 12288  }
  0x5b   : > { %7390 = vsyncadd (%p56_p1), [#allocation9], 4294955008 }
  0x5c   : > { %7392 = dma.done.wait (%p56_p1), [#allocation12], 3072  }
  0x5d   : > { %7394 = vsyncadd (%p56_p1), [#allocation12], 4294964224 }
  0x5e   : > { %7396 = dma.done.wait (%p56_p1), [#allocation15], 1328  }
  0x5f   : > { %7398 = vsyncadd (%p56_p1), [#allocation15], 4294965968  ;;  %v4789_v0 = vld [vmem:[#allocation5 + $0x1c0] sm:$0xf]  ;;  %v6425_v2 = vld [vmem:[#allocation5 + $0x1c4] sm:$0xf] }
  0x60   : > { %v6429_v1 = vld [vmem:[#allocation5 + $0x1dc] sm:$0xf0]  ;;  %v4791_v4 = vld [vmem:[#allocation5 + $0x1e0] sm:$0xf0]  ;;  %v4797_v5 = vld [vmem:[#allocation5 + $0x1c8] sm:$0xf] }
  0x61   : > { %v4790_v3 = vor.u32 %v6429_v1, %v4789_v0  ;;  %v6430_v6 = vld [vmem:[#allocation5 + $0x1e4] sm:$0xf0]  ;;  %v4794_v7 = vor.u32 %v6425_v2, %v4791_v4  ;;  %v6426_v9 = vld [vmem:[#allocation5 + $0x1cc] sm:$0xf]  ;;  %v4757_v11 = vld [vmem:[#allocation5 + $0x180] sm:$0xf] }
  0x62   : > { %v4798_v8 = vor.u32 %v6430_v6, %v4797_v5  ;;  %v4799_v10 = vld [vmem:[#allocation5 + $0x1e8] sm:$0xf0]  ;;  %v6421_v13 = vld [vmem:[#allocation5 + $0x19c] sm:$0xf0]  ;;  %v6417_v14 = vld [vmem:[#allocation5 + $0x184] sm:$0xf] }
  0x63   : > { %969 = vmatpush.bf16.msra.mxu0 %v4790_v3  ;;  %v4802_v12 = vor.u32 %v6426_v9, %v4799_v10  ;;  %v4759_v15 = vld [vmem:[#allocation5 + $0x1a0] sm:$0xf0]  ;;  %983 = vmatpush.bf16.msra.mxu1 %v4794_v7  ;;  %v4758_v16 = vor.u32 %v6421_v13, %v4757_v11  ;;  %v4765_v18 = vld [vmem:[#allocation5 + $0x188] sm:$0xf]  ;;  %v6418_v20 = vld [vmem:[#allocation5 + $0x18c] sm:$0xf] }
  0x64   : > { %997 = vmatpush.bf16.msra.mxu2 %v4798_v8  ;;  %v4762_v17 = vor.u32 %v6417_v14, %v4759_v15  ;;  %v6422_v19 = vld [vmem:[#allocation5 + $0x1a4] sm:$0xf0]  ;;  %v4767_v22 = vld [vmem:[#allocation5 + $0x1a8] sm:$0xf0]  ;;  %v4725_v23 = vld [vmem:[#allocation5 + $0x140] sm:$0xf] }
  0x65   : > { %1011 = vmatpush.bf16.msra.mxu3 %v4802_v12  ;;  %v4766_v21 = vor.u32 %v6422_v19, %v4765_v18  ;;  %v6413_v24 = vld [vmem:[#allocation5 + $0x15c] sm:$0xf0]  ;;  %v4770_v25 = vor.u32 %v6418_v20, %v4767_v22  ;;  %v6409_v26 = vld [vmem:[#allocation5 + $0x144] sm:$0xf]  ;;  %v4733_v28 = vld [vmem:[#allocation5 + $0x148] sm:$0xf] }
  0x66   : > { %v4727_v27 = vld [vmem:[#allocation5 + $0x160] sm:$0xf0]  ;;  %v4726_v29 = vor.u32 %v6413_v24, %v4725_v23  ;;  %v6414_v30 = vld [vmem:[#allocation5 + $0x164] sm:$0xf0]  ;;  %v6410_v31 = vld [vmem:[#allocation5 + $0x14c] sm:$0xf] }
  0x67   : > { %970 = vmatpush.bf16.msra.mxu0 %v4758_v16  ;;  %v4735_v32 = vld [vmem:[#allocation5 + $0x168] sm:$0xf0]  ;;  %984 = vmatpush.bf16.msra.mxu1 %v4762_v17  ;;  %v4730_v33 = vor.u32 %v6409_v26, %v4727_v27  ;;  %v4734_v34 = vor.u32 %v6414_v30, %v4733_v28  ;;  %v4693_v35 = vld [vmem:[#allocation5 + $0x100] sm:$0xf]  ;;  %v6401_v37 = vld [vmem:[#allocation5 + $0x104] sm:$0xf] }
  0x68   : > { %998 = vmatpush.bf16.msra.mxu2 %v4766_v21  ;;  %v6405_v36 = vld [vmem:[#allocation5 + $0x11c] sm:$0xf0]  ;;  %v4738_v38 = vor.u32 %v6410_v31, %v4735_v32  ;;  %v4695_v39 = vld [vmem:[#allocation5 + $0x120] sm:$0xf0]  ;;  %v4701_v40 = vld [vmem:[#allocation5 + $0x108] sm:$0xf] }
  0x69   : > { %1012 = vmatpush.bf16.msra.mxu3 %v4770_v25  ;;  %v6406_v41 = vld [vmem:[#allocation5 + $0x124] sm:$0xf0]  ;;  %v6402_v42 = vld [vmem:[#allocation5 + $0x10c] sm:$0xf]  ;;  %v4694_v44 = vor.u32 %v6405_v36, %v4693_v35  ;;  %v4698_v45 = vor.u32 %v6401_v37, %v4695_v39  ;;  %v4661_v47 = vld [vmem:[#allocation5 + $0xc0] sm:$0xf] }
  0x6a   : > { %v4703_v43 = vld [vmem:[#allocation5 + $0x128] sm:$0xf0]  ;;  %v4702_v46 = vor.u32 %v6406_v41, %v4701_v40  ;;  %v6397_v48 = vld [vmem:[#allocation5 + $0xdc] sm:$0xf0]  ;;  %v6393_v49 = vld [vmem:[#allocation5 + $0xc4] sm:$0xf] }
  0x6b   : > { %971 = vmatpush.bf16.msra.mxu0 %v4726_v29  ;;  %985 = vmatpush.bf16.msra.mxu1 %v4730_v33  ;;  %v4706_v50 = vor.u32 %v6402_v42, %v4703_v43  ;;  %v4663_v51 = vld [vmem:[#allocation5 + $0xe0] sm:$0xf0]  ;;  %v4669_v52 = vld [vmem:[#allocation5 + $0xc8] sm:$0xf]  ;;  %v6394_v54 = vld [vmem:[#allocation5 + $0xcc] sm:$0xf]  ;;  %v4662_v56 = vor.u32 %v6397_v48, %v4661_v47 }
  0x6c   : > { %999 = vmatpush.bf16.msra.mxu2 %v4734_v34  ;;  %v6398_v53 = vld [vmem:[#allocation5 + $0xe4] sm:$0xf0]  ;;  %v4671_v55 = vld [vmem:[#allocation5 + $0xe8] sm:$0xf0]  ;;  %v4666_v57 = vor.u32 %v6393_v49, %v4663_v51  ;;  %v4629_v59 = vld [vmem:[#allocation5 + $0x80] sm:$0xf] }
  0x6d   : > { %1013 = vmatpush.bf16.msra.mxu3 %v4738_v38  ;;  %v4670_v58 = vor.u32 %v6398_v53, %v4669_v52  ;;  %v6389_v60 = vld [vmem:[#allocation5 + $0x9c] sm:$0xf0]  ;;  %v6385_v61 = vld [vmem:[#allocation5 + $0x84] sm:$0xf]  ;;  %v4674_v62 = vor.u32 %v6394_v54, %v4671_v55  ;;  %v4637_v0 = vld [vmem:[#allocation5 + $0x88] sm:$0xf] }
  0x6e   : > { %v4631_v63 = vld [vmem:[#allocation5 + $0xa0] sm:$0xf0]  ;;  %v6390_v1 = vld [vmem:[#allocation5 + $0xa4] sm:$0xf0]  ;;  %v6386_v2 = vld [vmem:[#allocation5 + $0x8c] sm:$0xf]  ;;  %v4630_v4 = vor.u32 %v6389_v60, %v4629_v59 }
  0x6f   : > { %972 = vmatpush.bf16.msra.mxu0 %v4694_v44  ;;  %986 = vmatpush.bf16.msra.mxu1 %v4698_v45  ;;  %v4639_v3 = vld [vmem:[#allocation5 + $0xa8] sm:$0xf0]  ;;  %v4634_v5 = vor.u32 %v6385_v61, %v4631_v63  ;;  %v4638_v6 = vor.u32 %v6390_v1, %v4637_v0  ;;  %v4597_v7 = vld [vmem:[#allocation5 + $0x40] sm:$0xf]  ;;  %v6377_v9 = vld [vmem:[#allocation5 + $0x44] sm:$0xf] }
  0x70   : > { %1000 = vmatpush.bf16.msra.mxu2 %v4702_v46  ;;  %v6381_v8 = vld [vmem:[#allocation5 + $0x5c] sm:$0xf0]  ;;  %v4642_v10 = vor.u32 %v6386_v2, %v4639_v3  ;;  %v4599_v11 = vld [vmem:[#allocation5 + $0x60] sm:$0xf0]  ;;  %v4605_v12 = vld [vmem:[#allocation5 + $0x48] sm:$0xf] }
  0x71   : > { %1014 = vmatpush.bf16.msra.mxu3 %v4706_v50  ;;  %v6382_v13 = vld [vmem:[#allocation5 + $0x64] sm:$0xf0]  ;;  %v6378_v14 = vld [vmem:[#allocation5 + $0x4c] sm:$0xf]  ;;  %v4598_v16 = vor.u32 %v6381_v8, %v4597_v7  ;;  %v4565_v17 = vld [vmem:[#allocation5] sm:$0xf]  ;;  %v4602_v19 = vor.u32 %v6377_v9, %v4599_v11 }
  0x72   : > { %v4607_v15 = vld [vmem:[#allocation5 + $0x68] sm:$0xf0]  ;;  %v6373_v18 = vld [vmem:[#allocation5 + $0x1c] sm:$0xf0]  ;;  %v4606_v20 = vor.u32 %v6382_v13, %v4605_v12  ;;  %v6369_v21 = vld [vmem:[#allocation5 + $0x4] sm:$0xf] }
  0x73   : > { %973 = vmatpush.bf16.msra.mxu0 %v4662_v56  ;;  %987 = vmatpush.bf16.msra.mxu1 %v4666_v57  ;;  %v4567_v22 = vld [vmem:[#allocation5 + $0x20] sm:$0xf0]  ;;  %v4573_v23 = vld [vmem:[#allocation5 + $0x8] sm:$0xf]  ;;  %v4610_v24 = vor.u32 %v6378_v14, %v4607_v15  ;;  %v6370_v26 = vld [vmem:[#allocation5 + $0xc] sm:$0xf]  ;;  %v4566_v31 = vor.u32 %v6373_v18, %v4565_v17 }
  0x74   : > { %1001 = vmatpush.bf16.msra.mxu2 %v4670_v58  ;;  %v6374_v25 = vld [vmem:[#allocation5 + $0x24] sm:$0xf0]  ;;  %v4575_v27 = vld [vmem:[#allocation5 + $0x28] sm:$0xf0]  ;;  %v4805_v28 = vld [vmem:[#allocation5 + $0x1d0] sm:$0xf]  ;;  %v4570_v35 = vor.u32 %v6369_v21, %v4567_v22 }
  0x75   : > { %1015 = vmatpush.bf16.msra.mxu3 %v4674_v62  ;;  %v6431_v29 = vld [vmem:[#allocation5 + $0x1ec] sm:$0xf0]  ;;  %v6427_v30 = vld [vmem:[#allocation5 + $0x1d4] sm:$0xf]  ;;  %v4813_v33 = vld [vmem:[#allocation5 + $0x1d8] sm:$0xf]  ;;  %v4574_v36 = vor.u32 %v6374_v25, %v4573_v23  ;;  %v4578_v39 = vor.u32 %v6370_v26, %v4575_v27 }
  0x76   : > { %v4807_v32 = vld [vmem:[#allocation5 + $0x1f0] sm:$0xf0]  ;;  %v6432_v34 = vld [vmem:[#allocation5 + $0x1f4] sm:$0xf0]  ;;  %v6428_v37 = vld [vmem:[#allocation5 + $0x1dc] sm:$0xf]  ;;  %v4806_v40 = vor.u32 %v6431_v29, %v4805_v28 }
  0x77   : > { %974 = vmatpush.bf16.msra.mxu0 %v4630_v4  ;;  %988 = vmatpush.bf16.msra.mxu1 %v4634_v5  ;;  %v4815_v38 = vld [vmem:[#allocation5 + $0x1f8] sm:$0xf0]  ;;  %v4810_v42 = vor.u32 %v6427_v30, %v4807_v32  ;;  %v4814_v43 = vor.u32 %v6432_v34, %v4813_v33  ;;  %v4773_v44 = vld [vmem:[#allocation5 + $0x190] sm:$0xf]  ;;  %v6419_v46 = vld [vmem:[#allocation5 + $0x194] sm:$0xf] }
  0x78   : > { %1002 = vmatpush.bf16.msra.mxu2 %v4638_v6  ;;  %v7688_v41 = vld [vmem:[%s7665_s9] sm:$0xff]  ;;  %v4818_v47 = vor.u32 %v6428_v37, %v4815_v38  ;;  %s4558_s25 = sshll.u32 %s7661_s16, 6  ;;  %s7946_s15 = sshll.u32 %s7661_s16, 4 }
  0x79   : > { %1016 = vmatpush.bf16.msra.mxu3 %v4642_v10  ;;  %v6423_v45 = vld [vmem:[#allocation5 + $0x1ac] sm:$0xf0]  ;;  %v4775_v48 = vld [vmem:[#allocation5 + $0x1b0] sm:$0xf0]  ;;  %v4781_v49 = vld [vmem:[#allocation5 + $0x198] sm:$0xf] }
  0x7a   : > { %v6424_v50 = vld [vmem:[#allocation5 + $0x1b4] sm:$0xf0]  ;;  %v6420_v51 = vld [vmem:[#allocation5 + $0x19c] sm:$0xf]  ;;  %v4774_v53 = vor.u32 %v6423_v45, %v4773_v44  ;;  %v4778_v54 = vor.u32 %v6419_v46, %v4775_v48  ;;  %v4741_v56 = vld [vmem:[#allocation5 + $0x150] sm:$0xf] }
  0x7b   : > { %975 = vmatpush.bf16.msra.mxu0 %v4598_v16  ;;  %989 = vmatpush.bf16.msra.mxu1 %v4602_v19  ;;  %v4783_v52 = vld [vmem:[#allocation5 + $0x1b8] sm:$0xf0]  ;;  %v4782_v55 = vor.u32 %v6424_v50, %v4781_v49  ;;  %v6415_v57 = vld [vmem:[#allocation5 + $0x16c] sm:$0xf0]  ;;  %v6411_v58 = vld [vmem:[#allocation5 + $0x154] sm:$0xf] }
  0x7c   : > { %1003 = vmatpush.bf16.msra.mxu2 %v4606_v20  ;;  %v4786_v59 = vor.u32 %v6420_v51, %v4783_v52  ;;  %v4743_v60 = vld [vmem:[#allocation5 + $0x170] sm:$0xf0]  ;;  %v4749_v61 = vld [vmem:[#allocation5 + $0x158] sm:$0xf]  ;;  %v6412_v63 = vld [vmem:[#allocation5 + $0x15c] sm:$0xf]  ;;  %v4742_v1 = vor.u32 %v6415_v57, %v4741_v56 }
  0x7d   : > { %1017 = vmatpush.bf16.msra.mxu3 %v4610_v24  ;;  %v6416_v62 = vld [vmem:[#allocation5 + $0x174] sm:$0xf0]  ;;  %v4751_v0 = vld [vmem:[#allocation5 + $0x178] sm:$0xf0]  ;;  %v4746_v2 = vor.u32 %v6411_v58, %v4743_v60  ;;  %v4709_v4 = vld [vmem:[#allocation5 + $0x110] sm:$0xf] }
  0x7e   : > { %v4750_v3 = vor.u32 %v6416_v62, %v4749_v61  ;;  %v6407_v5 = vld [vmem:[#allocation5 + $0x12c] sm:$0xf0]  ;;  %v6403_v6 = vld [vmem:[#allocation5 + $0x114] sm:$0xf]  ;;  %v4754_v7 = vor.u32 %v6412_v63, %v4751_v0  ;;  %v4717_v9 = vld [vmem:[#allocation5 + $0x118] sm:$0xf] }
  0x7f   : > { %976 = vmatpush.bf16.msra.mxu0 %v4566_v31  ;;  %990 = vmatpush.bf16.msra.mxu1 %v4570_v35  ;;  %v4711_v8 = vld [vmem:[#allocation5 + $0x130] sm:$0xf0]  ;;  %v6408_v10 = vld [vmem:[#allocation5 + $0x134] sm:$0xf0]  ;;  %v6404_v11 = vld [vmem:[#allocation5 + $0x11c] sm:$0xf]  ;;  %v4710_v13 = vor.u32 %v6407_v5, %v4709_v4 }
  0x80   : > { %1004 = vmatpush.bf16.msra.mxu2 %v4574_v36  ;;  %v4719_v12 = vld [vmem:[#allocation5 + $0x138] sm:$0xf0]  ;;  %v4714_v14 = vor.u32 %v6403_v6, %v4711_v8  ;;  %v4718_v15 = vor.u32 %v6408_v10, %v4717_v9  ;;  %v4677_v16 = vld [vmem:[#allocation5 + $0xd0] sm:$0xf]  ;;  %v6395_v18 = vld [vmem:[#allocation5 + $0xd4] sm:$0xf] }
  0x81   : > { %1018 = vmatpush.bf16.msra.mxu3 %v4578_v39  ;;  %v6399_v17 = vld [vmem:[#allocation5 + $0xec] sm:$0xf0]  ;;  %v4722_v19 = vor.u32 %v6404_v11, %v4719_v12  ;;  %v4679_v20 = vld [vmem:[#allocation5 + $0xf0] sm:$0xf0]  ;;  %v4685_v21 = vld [vmem:[#allocation5 + $0xd8] sm:$0xf] }
  0x82   : > { %977 = vmatmul.bf16.vlgmr.msra.gmra.mxu0 %v7688_v41  ;;  %991 = vmatmul.bf16.vlgmr.msra.gmra.mxu1 %v7688_v41  ;;  %v6400_v22 = vld [vmem:[#allocation5 + $0xf4] sm:$0xf0]  ;;  %v6396_v23 = vld [vmem:[#allocation5 + $0xdc] sm:$0xf]  ;;  %v4678_v25 = vor.u32 %v6399_v17, %v4677_v16  ;;  %v4682_v26 = vor.u32 %v6395_v18, %v4679_v20  ;;  %v4645_v28 = vld [vmem:[#allocation5 + $0x90] sm:$0xf] }
  0x83   : > { %1025 = vmatpush.bf16.msrb.mxu0 %v4806_v40  ;;  %1039 = vmatpush.bf16.msrb.mxu1 %v4810_v42  ;;  %v4687_v24 = vld [vmem:[#allocation5 + $0xf8] sm:$0xf0]  ;;  %v4686_v27 = vor.u32 %v6400_v22, %v4685_v21  ;;  %v6391_v29 = vld [vmem:[#allocation5 + $0xac] sm:$0xf0]  ;;  %v6387_v30 = vld [vmem:[#allocation5 + $0x94] sm:$0xf] }
  0x84   : > { %1053 = vmatpush.bf16.msrb.mxu2 %v4814_v43  ;;  %1019 = vmatmul.bf16.vlgmr.msra.gmra.mxu3 %v7688_v41  ;;  %v4690_v31 = vor.u32 %v6396_v23, %v4687_v24  ;;  %v4647_v32 = vld [vmem:[#allocation5 + $0xb0] sm:$0xf0]  ;;  %v4653_v33 = vld [vmem:[#allocation5 + $0x98] sm:$0xf]  ;;  %v6388_v35 = vld [vmem:[#allocation5 + $0x9c] sm:$0xf]  ;;  %v4646_v37 = vor.u32 %v6391_v29, %v4645_v28 }
  0x85   : > { %1067 = vmatpush.bf16.msrb.mxu3 %v4818_v47  ;;  %1005 = vmatmul.bf16.vlgmr.msra.gmra.mxu2 %v7688_v41  ;;  %v6392_v34 = vld [vmem:[#allocation5 + $0xb4] sm:$0xf0]  ;;  %v4655_v36 = vld [vmem:[#allocation5 + $0xb8] sm:$0xf0]  ;;  %v4650_v38 = vor.u32 %v6387_v30, %v4647_v32  ;;  %v4613_v40 = vld [vmem:[#allocation5 + $0x50] sm:$0xf] }
  0x86   : > { %v4654_v39 = vor.u32 %v6392_v34, %v4653_v33  ;;  %v6383_v42 = vld [vmem:[#allocation5 + $0x6c] sm:$0xf0]  ;;  %v6379_v43 = vld [vmem:[#allocation5 + $0x54] sm:$0xf]  ;;  %v4658_v44 = vor.u32 %v6388_v35, %v4655_v36  ;;  %v4621_v46 = vld [vmem:[#allocation5 + $0x58] sm:$0xf] }
  0x87   : > { %1026 = vmatpush.bf16.msrb.mxu0 %v4774_v53  ;;  %1040 = vmatpush.bf16.msrb.mxu1 %v4778_v54  ;;  %v4615_v45 = vld [vmem:[#allocation5 + $0x70] sm:$0xf0]  ;;  %v6384_v47 = vld [vmem:[#allocation5 + $0x74] sm:$0xf0]  ;;  %v6380_v48 = vld [vmem:[#allocation5 + $0x5c] sm:$0xf]  ;;  %v4614_v50 = vor.u32 %v6383_v42, %v4613_v40 }
  0x88   : > { %1054 = vmatpush.bf16.msrb.mxu2 %v4782_v55  ;;  %v4623_v49 = vld [vmem:[#allocation5 + $0x78] sm:$0xf0]  ;;  %v4581_v51 = vld [vmem:[#allocation5 + $0x10] sm:$0xf]  ;;  %v4618_v52 = vor.u32 %v6379_v43, %v4615_v45  ;;  %v4622_v53 = vor.u32 %v6384_v47, %v4621_v46  ;;  %v6371_v55 = vld [vmem:[#allocation5 + $0x14] sm:$0xf] }
  0x89   : > { %1068 = vmatpush.bf16.msrb.mxu3 %v4786_v59  ;;  %v6375_v54 = vld [vmem:[#allocation5 + $0x2c] sm:$0xf0]  ;;  %v4583_v56 = vld [vmem:[#allocation5 + $0x30] sm:$0xf0]  ;;  %v4626_v57 = vor.u32 %v6380_v48, %v4623_v49  ;;  %v4589_v58 = vld [vmem:[#allocation5 + $0x18] sm:$0xf] }
  0x8a   : > { %v6376_v59 = vld [vmem:[#allocation5 + $0x34] sm:$0xf0]  ;;  %v6372_v60 = vld [vmem:[#allocation5 + $0x1c] sm:$0xf]  ;;  %v4933_v62 = vld [vmem:[#allocation7 + $0xe0] sm:$0xf]  ;;  %v4582_v0 = vor.u32 %v6375_v54, %v4581_v51 }
  0x8b   : > { %1027 = vmatpush.bf16.msrb.mxu0 %v4742_v1  ;;  %1041 = vmatpush.bf16.msrb.mxu1 %v4746_v2  ;;  %v4591_v61 = vld [vmem:[#allocation5 + $0x38] sm:$0xf0]  ;;  %v6463_v63 = vld [vmem:[#allocation7 + $0xec] sm:$0xf0]  ;;  %v5061_v1 = vld [vmem:[#allocation7 + $0x1e0] sm:$0xf]  ;;  %v4590_v4 = vor.u32 %v6376_v59, %v4589_v58 }
  0x8c   : > { %1055 = vmatpush.bf16.msrb.mxu2 %v4750_v3  ;;  %v6495_v2 = vld [vmem:[#allocation7 + $0x1ec] sm:$0xf0]  ;;  %v4586_v3 = vor.u32 %v6371_v55, %v4583_v56  ;;  %v4594_v5 = vor.u32 %v6372_v60, %v4591_v61  ;;  %v4934_v6 = vor.u32 %v6463_v63, %v4933_v62  ;;  %v5189_v8 = vld [vmem:[#allocation7 + $0x2e0] sm:$0xf]  ;;  %s7776_s27 = scalar_lea.vmem [#allocation20], %s4558_s25  ;;  %s7841_s29 = scalar_lea.vmem [#allocation18], %s7946_s15 }
  0x8d   : > { %1069 = vmatpush.bf16.msrb.mxu3 %v4754_v7  ;;  %v4917_v7 = vld [vmem:[#allocation7 + $0xc0] sm:$0xf]  ;;  %v6527_v9 = vld [vmem:[#allocation7 + $0x2ec] sm:$0xf0]  ;;  %v5062_v10 = vor.u32 %v6495_v2, %v5061_v1  ;;  %s4299_s12 = sshll.u32 %s7841_s29, 4  ;;  %s7947_s13 = sshll.u32 %s7527_s24, 4  ;;  %s4300_s12 = int_to_ptr.vmem [resolvable:$true] %s4299_s12 }
  0x8e   : > { %v6459_v11 = vld [vmem:[#allocation7 + $0xcc] sm:$0xf0]  ;;  %v5317_v12 = vld [vmem:[#allocation7 + $0x3e0] sm:$0xf]  ;;  %v5190_v16 = vor.u32 %v6527_v9, %v5189_v8  ;;  %s4298_s14 = scalar_lea.hbm %s7938_s10, %s7947_s13  ;;  %s6820_s3 = sshll.u32 %s7527_s24, 6 }
  0x8f   : > { %1028 = vmatpush.bf16.msrb.mxu0 %v4710_v13  ;;  %1042 = vmatpush.bf16.msrb.mxu1 %v4714_v14  ;;  %v6559_v13 = vld [vmem:[#allocation7 + $0x3ec] sm:$0xf0]  ;;  %v5045_v14 = vld [vmem:[#allocation7 + $0x1c0] sm:$0xf]  ;;  %v4918_v17 = vor.u32 %v6459_v11, %v4917_v7  ;;  %s4264_s1 = sand.u32 1, %s7527_s24   ;;  %s4301_s4 = sshll.u32 %s4298_s14, 4  ;;  %s4302_s4 = int_to_ptr.hbm [resolvable:$true] %s4301_s4 }
  0x90   : > { %1056 = vmatpush.bf16.msrb.mxu2 %v4718_v15  ;;  %v6491_v15 = vld [vmem:[#allocation7 + $0x1cc] sm:$0xf0]  ;;  %v5318_v18 = vor.u32 %v6559_v13, %v5317_v12  ;;  %v5173_v20 = vld [vmem:[#allocation7 + $0x2c0] sm:$0xf]  ;;  %s7855_s5 = scalar_lea.sflag [#allocation19], %s4264_s1  ;;  %s7293_s9 = sshra.s32 %s4302_s4, 4  ;;  %s7294_s9 = int_to_ptr.hbm [resolvable:$true] %s7293_s9 }
  0x91   : > { %1070 = vmatpush.bf16.msrb.mxu3 %v4722_v19  ;;  %v4901_v19 = vld [vmem:[#allocation7 + $0xa0] sm:$0xf]  ;;  %v6523_v21 = vld [vmem:[#allocation7 + $0x2cc] sm:$0xf0]  ;;  %v5046_v22 = vor.u32 %v6491_v15, %v5045_v14  ;;  %s7295_s25 = scalar_lea.hbm %s7294_s9, 16  ;;  %s7299_s26 = scalar_lea.hbm %s7938_s10, 32 }
  0x92   : > { %v6455_v23 = vld [vmem:[#allocation7 + $0xac] sm:$0xf0]  ;;  %v5301_v24 = vld [vmem:[#allocation7 + $0x3c0] sm:$0xf]  ;;  %v5174_v28 = vor.u32 %v6523_v21, %v5173_v20  ;;  %p7296_p1 = scmp.ne.s32.totalorder %s7294_s9, %s7295_s25  ;;  %p7300_p12 = scmp.lt.s32.totalorder %s7294_s9, %s7938_s10 }
  0x93   : > { %1029 = vmatpush.bf16.msrb.mxu0 %v4678_v25  ;;  %1043 = vmatpush.bf16.msrb.mxu1 %v4682_v26  ;;  %v6555_v25 = vld [vmem:[#allocation7 + $0x3cc] sm:$0xf0]  ;;  %v5029_v26 = vld [vmem:[#allocation7 + $0x1a0] sm:$0xf]  ;;  %v4902_v29 = vor.u32 %v6455_v23, %v4901_v19  ;;  %p7301_p7 = scmp.lt.s32.totalorder %s7299_s26, %s7295_s25 }
  0x94   : > { %1057 = vmatpush.bf16.msrb.mxu2 %v4686_v27  ;;  %v6487_v27 = vld [vmem:[#allocation7 + $0x1ac] sm:$0xf0]  ;;  %v5302_v30 = vor.u32 %v6555_v25, %v5301_v24  ;;  %v5157_v32 = vld [vmem:[#allocation7 + $0x2a0] sm:$0xf]  ;;  %p7297_p3 = pnand %p7296_p1, %p7627_p4 }
  0x95   : > { %1071 = vmatpush.bf16.msrb.mxu3 %v4690_v31  ;;  %v4885_v31 = vld [vmem:[#allocation7 + $0x80] sm:$0xf]  ;;  %v6519_v33 = vld [vmem:[#allocation7 + $0x2ac] sm:$0xf0]  ;;  %v5030_v34 = vor.u32 %v6487_v27, %v5029_v26  ;;  %p7302_p8 = por %p7301_p7, %p7300_p12 }
  0x96   : > { %v6451_v35 = vld [vmem:[#allocation7 + $0x8c] sm:$0xf0]  ;;  %v5285_v36 = vld [vmem:[#allocation7 + $0x3a0] sm:$0xf]  ;;  %v5158_v40 = vor.u32 %v6519_v33, %v5157_v32  ;;  %p7298_p5 = pneg %p7297_p3 }
  0x97   : > { %1030 = vmatpush.bf16.msrb.mxu0 %v4646_v37  ;;  %1044 = vmatpush.bf16.msrb.mxu1 %v4650_v38  ;;  %v6551_v37 = vld [vmem:[#allocation7 + $0x3ac] sm:$0xf0]  ;;  %v5013_v38 = vld [vmem:[#allocation7 + $0x180] sm:$0xf]  ;;  %v4886_v43 = vor.u32 %v6451_v35, %v4885_v31 }
  0x98   : > { %1058 = vmatpush.bf16.msrb.mxu2 %v4654_v39  ;;  %v6483_v39 = vld [vmem:[#allocation7 + $0x18c] sm:$0xf0]  ;;  %v4869_v42 = vld [vmem:[#allocation7 + $0x60] sm:$0xf]  ;;  %p7303_p9 = pnand %p7302_p8, %p7298_p5 }
  0x99   : > { %1072 = vmatpush.bf16.msrb.mxu3 %v4658_v44  ;;  %v5286_v44 = vor.u32 %v6551_v37, %v5285_v36  ;;  %v5141_v45 = vld [vmem:[#allocation7 + $0x280] sm:$0xf]  ;;  %v6515_v46 = vld [vmem:[#allocation7 + $0x28c] sm:$0xf0]  ;;  %v5014_v47 = vor.u32 %v6483_v39, %v5013_v38 }
  0x9a   : > { %v5269_v48 = vld [vmem:[#allocation7 + $0x380] sm:$0xf]  ;;  %v6547_v49 = vld [vmem:[#allocation7 + $0x38c] sm:$0xf0] }
  0x9b   : > { %1031 = vmatpush.bf16.msrb.mxu0 %v4614_v50  ;;  %1045 = vmatpush.bf16.msrb.mxu1 %v4618_v52  ;;  %v4997_v50 = vld [vmem:[#allocation7 + $0x160] sm:$0xf]  ;;  %v6479_v51 = vld [vmem:[#allocation7 + $0x16c] sm:$0xf0]  ;;  %v5142_v52 = vor.u32 %v6515_v46, %v5141_v45  ;;  %v5270_v54 = vor.u32 %v6547_v49, %v5269_v48 }
  0x9c   : > { %1059 = vmatpush.bf16.msrb.mxu2 %v4622_v53  ;;  %v4853_v55 = vld [vmem:[#allocation7 + $0x40] sm:$0xf]  ;;  %v4998_v58 = vor.u32 %v6479_v51, %v4997_v50  ;;  %v6443_v59 = vld [vmem:[#allocation7 + $0x4c] sm:$0xf0] }
  0x9d   : > { %1073 = vmatpush.bf16.msrb.mxu3 %v4626_v57  ;;  %v5125_v56 = vld [vmem:[#allocation7 + $0x260] sm:$0xf]  ;;  %v6511_v57 = vld [vmem:[#allocation7 + $0x26c] sm:$0xf0]  ;;  %v4854_v1 = vor.u32 %v6443_v59, %v4853_v55 }
  0x9e   : > { %v5253_v60 = vld [vmem:[#allocation7 + $0x360] sm:$0xf]  ;;  %v6543_v61 = vld [vmem:[#allocation7 + $0x36c] sm:$0xf0] }
  0x9f   : > { %1032 = vmatpush.bf16.msrb.mxu0 %v4582_v0  ;;  %1046 = vmatpush.bf16.msrb.mxu1 %v4586_v3  ;;  %v4981_v62 = vld [vmem:[#allocation7 + $0x140] sm:$0xf]  ;;  %v6475_v63 = vld [vmem:[#allocation7 + $0x14c] sm:$0xf0]  ;;  %v5126_v0 = vor.u32 %v6511_v57, %v5125_v56  ;;  %v5254_v2 = vor.u32 %v6543_v61, %v5253_v60 }
  0xa0   : > { %1060 = vmatpush.bf16.msrb.mxu2 %v4590_v4  ;;  %v4837_v3 = vld [vmem:[#allocation7 + $0x20] sm:$0xf]  ;;  %v6439_v7 = vld [vmem:[#allocation7 + $0x2c] sm:$0xf0] }
  0xa1   : > { %1074 = vmatpush.bf16.msrb.mxu3 %v4594_v5  ;;  %v5109_v4 = vld [vmem:[#allocation7 + $0x240] sm:$0xf]  ;;  %v6507_v5 = vld [vmem:[#allocation7 + $0x24c] sm:$0xf0]  ;;  %v4838_v14 = vor.u32 %v6439_v7, %v4837_v3 }
  0xa2   : > { %1033 = vmatmul.bf16.vlgmr.msrb.gmra.mxu0 %v7688_v41  ;;  %1047 = vmatmul.bf16.vlgmr.msrb.gmra.mxu1 %v7688_v41  ;;  %v5237_v8 = vld [vmem:[#allocation7 + $0x340] sm:$0xf]  ;;  %v6539_v9 = vld [vmem:[#allocation7 + $0x34c] sm:$0xf0]  ;;  %v5110_v12 = vor.u32 %v6507_v5, %v5109_v4 }
  0xa3   : > { %2651 = vmatpush.bf16.msra.mxu0 %v4934_v6  ;;  %2665 = vmatpush.bf16.msra.mxu1 %v5062_v10  ;;  %v4982_v6 = vor.u32 %v6475_v63, %v4981_v62  ;;  %v4965_v10 = vld [vmem:[#allocation7 + $0x120] sm:$0xf]  ;;  %v6471_v11 = vld [vmem:[#allocation7 + $0x12c] sm:$0xf0]  ;;  %v5238_v15 = vor.u32 %v6539_v9, %v5237_v8 }
  0xa4   : > { %1061 = vmatmul.bf16.vlgmr.msrb.gmra.mxu2 %v7688_v41  ;;  %1075 = vmatmul.bf16.vlgmr.msrb.gmra.mxu3 %v7688_v41  ;;  %v6447_v41 = vld [vmem:[#allocation7 + $0x6c] sm:$0xf0]  ;;  %v4821_v13 = vld [vmem:[#allocation7] sm:$0xf]  ;;  %v4966_v19 = vor.u32 %v6471_v11, %v4965_v10 }
  0xa5   : > { %2679 = vmatpush.bf16.msra.mxu2 %v5190_v16  ;;  %2693 = vmatpush.bf16.msra.mxu3 %v5318_v18  ;;  %v4870_v53 = vor.u32 %v6447_v41, %v4869_v42  ;;  %v6435_v16 = vld [vmem:[#allocation7 + $0xc] sm:$0xf0]  ;;  %v4949_v20 = vld [vmem:[#allocation7 + $0x100] sm:$0xf] }
  0xa6   : > { %v6503_v18 = vld [vmem:[#allocation7 + $0x22c] sm:$0xf0]  ;;  %v5221_v21 = vld [vmem:[#allocation7 + $0x320] sm:$0xf] }
  0xa7   : > { %2652 = vmatpush.bf16.msra.mxu0 %v4918_v17  ;;  %2666 = vmatpush.bf16.msra.mxu1 %v5046_v22  ;;  %v5093_v17 = vld [vmem:[#allocation7 + $0x220] sm:$0xf]  ;;  %v6535_v22 = vld [vmem:[#allocation7 + $0x32c] sm:$0xf0] }
  0xa8   : > { %v6467_v23 = vld [vmem:[#allocation7 + $0x10c] sm:$0xf0]  ;;  %v5445_v24 = vld [vmem:[#allocation7 + $0x4e0] sm:$0xf] }
  0xa9   : > { %2680 = vmatpush.bf16.msra.mxu2 %v5174_v28  ;;  %2694 = vmatpush.bf16.msra.mxu3 %v5302_v30  ;;  %v6591_v25 = vld [vmem:[#allocation7 + $0x4ec] sm:$0xf0]  ;;  %v5573_v26 = vld [vmem:[#allocation7 + $0x5e0] sm:$0xf]  ;;  %v5094_v28 = vor.u32 %v6503_v18, %v5093_v17  ;;  %v5222_v30 = vor.u32 %v6535_v22, %v5221_v21  ;;  %v4950_v35 = vor.u32 %v6467_v23, %v4949_v20 }
  0xaa   : > { %v6623_v27 = vld [vmem:[#allocation7 + $0x5ec] sm:$0xf0]  ;;  %v5429_v31 = vld [vmem:[#allocation7 + $0x4c0] sm:$0xf]  ;;  %v5446_v36 = vor.u32 %v6591_v25, %v5445_v24 }
  0xab   : > { %2653 = vmatpush.bf16.msra.mxu0 %v4902_v29  ;;  %2667 = vmatpush.bf16.msra.mxu1 %v5030_v34  ;;  %v4822_v29 = vor.u32 %v6435_v16, %v4821_v13  ;;  %v5077_v32 = vld [vmem:[#allocation7 + $0x200] sm:$0xf]  ;;  %v6499_v33 = vld [vmem:[#allocation7 + $0x20c] sm:$0xf0] }
  0xac   : > { %v5205_v34 = vld [vmem:[#allocation7 + $0x300] sm:$0xf]  ;;  %v6531_v37 = vld [vmem:[#allocation7 + $0x30c] sm:$0xf0]  ;;  %v5078_v46 = vor.u32 %v6499_v33, %v5077_v32 }
  0xad   : > { %2681 = vmatpush.bf16.msra.mxu2 %v5158_v40  ;;  %2695 = vmatpush.bf16.msra.mxu3 %v5286_v44  ;;  %v5701_v38 = vld [vmem:[#allocation7 + $0x6e0] sm:$0xf]  ;;  %v6655_v39 = vld [vmem:[#allocation7 + $0x6ec] sm:$0xf0]  ;;  %v5574_v40 = vor.u32 %v6623_v27, %v5573_v26 }
  0xae   : > { %v6587_v42 = vld [vmem:[#allocation7 + $0x4cc] sm:$0xf0]  ;;  %v5829_v41 = vld [vmem:[#allocation7 + $0x7e0] sm:$0xf]  ;;  %v5702_v48 = vor.u32 %v6655_v39, %v5701_v38 }
  0xaf   : > { %2654 = vmatpush.bf16.msra.mxu0 %v4886_v43  ;;  %2668 = vmatpush.bf16.msra.mxu1 %v5014_v47  ;;  %v6687_v43 = vld [vmem:[#allocation7 + $0x7ec] sm:$0xf0]  ;;  %v5557_v44 = vld [vmem:[#allocation7 + $0x5c0] sm:$0xf]  ;;  %v5206_v47 = vor.u32 %v6531_v37, %v5205_v34  ;;  %v5430_v49 = vor.u32 %v6587_v42, %v5429_v31 }
  0xb0   : > { %v6619_v45 = vld [vmem:[#allocation7 + $0x5cc] sm:$0xf0]  ;;  %v5830_v50 = vor.u32 %v6687_v43, %v5829_v41  ;;  %v5413_v51 = vld [vmem:[#allocation7 + $0x4a0] sm:$0xf] }
  0xb1   : > { %2682 = vmatpush.bf16.msra.mxu2 %v5142_v52  ;;  %2696 = vmatpush.bf16.msra.mxu3 %v5270_v54  ;;  %v5685_v52 = vld [vmem:[#allocation7 + $0x6c0] sm:$0xf]  ;;  %v5558_v54 = vor.u32 %v6619_v45, %v5557_v44  ;;  %v6583_v55 = vld [vmem:[#allocation7 + $0x4ac] sm:$0xf0] }
  0xb2   : > { %v5813_v56 = vld [vmem:[#allocation7 + $0x7c0] sm:$0xf]  ;;  %v6683_v57 = vld [vmem:[#allocation7 + $0x7cc] sm:$0xf0]  ;;  %v5414_v61 = vor.u32 %v6583_v55, %v5413_v51 }
  0xb3   : > { %2655 = vmatpush.bf16.msra.mxu0 %v4870_v53  ;;  %2669 = vmatpush.bf16.msra.mxu1 %v4998_v58  ;;  %v6651_v53 = vld [vmem:[#allocation7 + $0x6cc] sm:$0xf0]  ;;  %v5541_v58 = vld [vmem:[#allocation7 + $0x5a0] sm:$0xf]  ;;  %v5814_v62 = vor.u32 %v6683_v57, %v5813_v56 }
  0xb4   : > { %v6615_v59 = vld [vmem:[#allocation7 + $0x5ac] sm:$0xf0]  ;;  %v5686_v60 = vor.u32 %v6651_v53, %v5685_v52  ;;  %v5797_v8 = vld [vmem:[#allocation7 + $0x7a0] sm:$0xf] }
  0xb5   : > { %2683 = vmatpush.bf16.msra.mxu2 %v5126_v0  ;;  %2697 = vmatpush.bf16.msra.mxu3 %v5254_v2  ;;  %v5542_v63 = vor.u32 %v6615_v59, %v5541_v58  ;;  %v5397_v0 = vld [vmem:[#allocation7 + $0x480] sm:$0xf]  ;;  %v6611_v3 = vld [vmem:[#allocation7 + $0x58c] sm:$0xf0] }
  0xb6   : > { %v5525_v2 = vld [vmem:[#allocation7 + $0x580] sm:$0xf]  ;;  %v6647_v7 = vld [vmem:[#allocation7 + $0x6ac] sm:$0xf0] }
  0xb7   : > { %2656 = vmatpush.bf16.msra.mxu0 %v4854_v1  ;;  %2670 = vmatpush.bf16.msra.mxu1 %v4982_v6  ;;  %v6579_v1 = vld [vmem:[#allocation7 + $0x48c] sm:$0xf0]  ;;  %v5526_v5 = vor.u32 %v6611_v3, %v5525_v2  ;;  %v5669_v6 = vld [vmem:[#allocation7 + $0x6a0] sm:$0xf] }
  0xb8   : > { %v5398_v4 = vor.u32 %v6579_v1, %v5397_v0  ;;  %v5670_v9 = vor.u32 %v6647_v7, %v5669_v6  ;;  %v6679_v10 = vld [vmem:[#allocation7 + $0x7ac] sm:$0xf0]  ;;  %v5653_v18 = vld [vmem:[#allocation7 + $0x680] sm:$0xf] }
  0xb9   : > { %2684 = vmatpush.bf16.msra.mxu2 %v5110_v12  ;;  %2698 = vmatpush.bf16.msra.mxu3 %v5238_v15  ;;  %v5798_v11 = vor.u32 %v6679_v10, %v5797_v8  ;;  %v5381_v12 = vld [vmem:[#allocation7 + $0x460] sm:$0xf]  ;;  %v6575_v13 = vld [vmem:[#allocation7 + $0x46c] sm:$0xf0] }
  0xba   : > { %v5382_v15 = vor.u32 %v6575_v13, %v5381_v12  ;;  %v6607_v16 = vld [vmem:[#allocation7 + $0x56c] sm:$0xf0]  ;;  %v5781_v21 = vld [vmem:[#allocation7 + $0x780] sm:$0xf] }
  0xbb   : > { %2657 = vmatpush.bf16.msra.mxu0 %v4838_v14  ;;  %2671 = vmatpush.bf16.msra.mxu1 %v4966_v19  ;;  %v5509_v14 = vld [vmem:[#allocation7 + $0x560] sm:$0xf]  ;;  %v6643_v19 = vld [vmem:[#allocation7 + $0x68c] sm:$0xf0] }
  0xbc   : > { %v5510_v17 = vor.u32 %v6607_v16, %v5509_v14  ;;  %v5654_v20 = vor.u32 %v6643_v19, %v5653_v18  ;;  %v6675_v22 = vld [vmem:[#allocation7 + $0x78c] sm:$0xf0]  ;;  %v5365_v24 = vld [vmem:[#allocation7 + $0x440] sm:$0xf]  ;;  %v4935_v16 = vld [vmem:[#allocation7 + $0xf0] sm:$0xf0] }
  0xbd   : > { %2685 = vmatpush.bf16.msra.mxu2 %v5094_v28  ;;  %2699 = vmatpush.bf16.msra.mxu3 %v5222_v30  ;;  %v5782_v23 = vor.u32 %v6675_v22, %v5781_v21  ;;  %v6571_v25 = vld [vmem:[#allocation7 + $0x44c] sm:$0xf0]  ;;  %v5493_v26 = vld [vmem:[#allocation7 + $0x540] sm:$0xf]  ;;  %v5063_v21 = vld [vmem:[#allocation7 + $0x1f0] sm:$0xf0] }
  0xbe   : > { %v5366_v27 = vor.u32 %v6571_v25, %v5365_v24  ;;  %v6603_v28 = vld [vmem:[#allocation7 + $0x54c] sm:$0xf0]  ;;  %v5637_v30 = vld [vmem:[#allocation7 + $0x660] sm:$0xf] }
  0xbf   : > { %2658 = vmatpush.bf16.msra.mxu0 %v4822_v29  ;;  %2672 = vmatpush.bf16.msra.mxu1 %v4950_v35  ;;  %v5494_v29 = vor.u32 %v6603_v28, %v5493_v26  ;;  %v6639_v31 = vld [vmem:[#allocation7 + $0x66c] sm:$0xf0]  ;;  %v5765_v32 = vld [vmem:[#allocation7 + $0x760] sm:$0xf]  ;;  %v6457_v28 = vld [vmem:[#allocation7 + $0xc4] sm:$0xf] }
  0xc0   : > { %v5638_v33 = vor.u32 %v6639_v31, %v5637_v30  ;;  %v6671_v34 = vld [vmem:[#allocation7 + $0x76c] sm:$0xf0]  ;;  %v5477_v39 = vld [vmem:[#allocation7 + $0x520] sm:$0xf] }
  0xc1   : > { %2686 = vmatpush.bf16.msra.mxu2 %v5078_v46  ;;  %2700 = vmatpush.bf16.msra.mxu3 %v5206_v47  ;;  %v5766_v35 = vor.u32 %v6671_v34, %v5765_v32  ;;  %v6567_v37 = vld [vmem:[#allocation7 + $0x42c] sm:$0xf0]  ;;  %v5621_v41 = vld [vmem:[#allocation7 + $0x640] sm:$0xf]  ;;  %v6489_v32 = vld [vmem:[#allocation7 + $0x1c4] sm:$0xf] }
  0xc2   : > { %v6635_v43 = vld [vmem:[#allocation7 + $0x64c] sm:$0xf0]  ;;  %v5749_v44 = vld [vmem:[#allocation7 + $0x740] sm:$0xf] }
  0xc3   : > { %2707 = vmatpush.bf16.msrb.mxu0 %v5446_v36  ;;  %2721 = vmatpush.bf16.msrb.mxu1 %v5574_v40  ;;  %v5349_v36 = vld [vmem:[#allocation7 + $0x420] sm:$0xf]  ;;  %v6599_v40 = vld [vmem:[#allocation7 + $0x52c] sm:$0xf0]  ;;  %v5622_v45 = vor.u32 %v6635_v43, %v5621_v41 }
  0xc4   : > { %v5350_v38 = vor.u32 %v6567_v37, %v5349_v36  ;;  %v5478_v42 = vor.u32 %v6599_v40, %v5477_v39  ;;  %v6667_v46 = vld [vmem:[#allocation7 + $0x74c] sm:$0xf0]  ;;  %v5733_v56 = vld [vmem:[#allocation7 + $0x720] sm:$0xf]  ;;  %v6525_v39 = vld [vmem:[#allocation7 + $0x2e4] sm:$0xf] }
  0xc5   : > { %2735 = vmatpush.bf16.msrb.mxu2 %v5702_v48  ;;  %2749 = vmatpush.bf16.msrb.mxu3 %v5830_v50  ;;  %v5750_v47 = vor.u32 %v6667_v46, %v5749_v44  ;;  %v5333_v48 = vld [vmem:[#allocation7 + $0x400] sm:$0xf]  ;;  %v6595_v52 = vld [vmem:[#allocation7 + $0x50c] sm:$0xf0]  ;;  %v5191_v40 = vld [vmem:[#allocation7 + $0x2f0] sm:$0xf0] }
  0xc6   : > { %v5461_v50 = vld [vmem:[#allocation7 + $0x500] sm:$0xf]  ;;  %v6631_v55 = vld [vmem:[#allocation7 + $0x62c] sm:$0xf0]  ;;  %v5319_v44 = vld [vmem:[#allocation7 + $0x3f0] sm:$0xf0] }
  0xc7   : > { %2708 = vmatpush.bf16.msrb.mxu0 %v5430_v49  ;;  %2722 = vmatpush.bf16.msrb.mxu1 %v5558_v54  ;;  %v6563_v49 = vld [vmem:[#allocation7 + $0x40c] sm:$0xf0]  ;;  %v5462_v53 = vor.u32 %v6595_v52, %v5461_v50  ;;  %v5605_v54 = vld [vmem:[#allocation7 + $0x620] sm:$0xf]  ;;  %v4903_v46 = vld [vmem:[#allocation7 + $0xb0] sm:$0xf0] }
  0xc8   : > { %v5334_v51 = vor.u32 %v6563_v49, %v5333_v48  ;;  %v6663_v57 = vld [vmem:[#allocation7 + $0x72c] sm:$0xf0]  ;;  %v5606_v58 = vor.u32 %v6631_v55, %v5605_v54  ;;  %v7698_v2 = vld [vmem:[#allocation16] sm:$0xff]  ;;  %v5031_v50 = vld [vmem:[#allocation7 + $0x1b0] sm:$0xf0] }
  0xc9   : > { %2736 = vmatpush.bf16.msrb.mxu2 %v5686_v60  ;;  %2750 = vmatpush.bf16.msrb.mxu3 %v5814_v62  ;;  %v5734_v59 = vor.u32 %v6663_v57, %v5733_v56  ;;  %v5589_v60 = vld [vmem:[#allocation7 + $0x600] sm:$0xf]  ;;  %v6659_v0 = vld [vmem:[#allocation7 + $0x70c] sm:$0xf0]  ;;  %v628_v6 = vperm.slane %v7698_v2, 1  ;;  %v629_v18 = vperm.slane %v7698_v2, 2 }
  0xca   : > { %v630_v22 = vperm.slane %v7698_v2, 3  ;;  %v6485_v49 = vld [vmem:[#allocation7 + $0x1a4] sm:$0xf] }
  0xcb   : > { %2709 = vmatpush.bf16.msrb.mxu0 %v5414_v61  ;;  %2723 = vmatpush.bf16.msrb.mxu1 %v5542_v63  ;;  %v6627_v61 = vld [vmem:[#allocation7 + $0x60c] sm:$0xf0]  ;;  %v5717_v63 = vld [vmem:[#allocation7 + $0x700] sm:$0xf]  ;;  %v6521_v57 = vld [vmem:[#allocation7 + $0x2c4] sm:$0xf] }
  0xcc   : > { %v5590_v62 = vor.u32 %v6627_v61, %v5589_v60  ;;  %v5718_v1 = vor.u32 %v6659_v0, %v5717_v63  ;;  %v5034_v61 = vor.u32 %v6485_v49, %v5031_v50  ;;  %v6449_v63 = vld [vmem:[#allocation7 + $0x84] sm:$0xf]  ;;  %v4887_v0 = vld [vmem:[#allocation7 + $0x90] sm:$0xf0] }
  0xcd   : > { %2737 = vmatpush.bf16.msrb.mxu2 %v5670_v9  ;;  %2751 = vmatpush.bf16.msrb.mxu3 %v5798_v11  ;;  %v6505_v49 = vld [vmem:[#allocation7 + $0x244] sm:$0xf]  ;;  %v5111_v50 = vld [vmem:[#allocation7 + $0x250] sm:$0xf0] }
  0xcf   : > { %2710 = vmatpush.bf16.msrb.mxu0 %v5398_v4  ;;  %2724 = vmatpush.bf16.msrb.mxu1 %v5526_v5  ;;  %v627_v4 = vperm.slane %v7698_v2, 0 }
  0xd1   : > { %2738 = vmatpush.bf16.msrb.mxu2 %v5654_v20  ;;  %2752 = vmatpush.bf16.msrb.mxu3 %v5782_v23  ;;  %v6493_v20 = vld [vmem:[#allocation7 + $0x1e4] sm:$0xf] }
  0xd3   : > { %2711 = vmatpush.bf16.msrb.mxu0 %v5382_v15  ;;  %2725 = vmatpush.bf16.msrb.mxu1 %v5510_v17  ;;  %v6461_v15 = vld [vmem:[#allocation7 + $0xe4] sm:$0xf] }
  0xd4   : > { %v4938_v25 = vor.u32 %v6461_v15, %v4935_v16  ;;  %v4999_v15 = vld [vmem:[#allocation7 + $0x170] sm:$0xf0] }
  0xd5   : > { %2739 = vmatpush.bf16.msrb.mxu2 %v5638_v33  ;;  %2753 = vmatpush.bf16.msrb.mxu3 %v5766_v35  ;;  %v5047_v33 = vld [vmem:[#allocation7 + $0x1d0] sm:$0xf0] }
  0xd6   : > { %v5050_v43 = vor.u32 %v6489_v32, %v5047_v33  ;;  %v4983_v32 = vld [vmem:[#allocation7 + $0x150] sm:$0xf0]  ;;  %v632_v33 = vperm.slane %v7698_v2, 5 }
  0xd7   : > { %2712 = vmatpush.bf16.msrb.mxu0 %v5366_v27  ;;  %2726 = vmatpush.bf16.msrb.mxu1 %v5494_v29  ;;  %v5066_v27 = vor.u32 %v6493_v20, %v5063_v21  ;;  %v4919_v29 = vld [vmem:[#allocation7 + $0xd0] sm:$0xf0]  ;;  %v6545_v21 = vld [vmem:[#allocation7 + $0x384] sm:$0xf] }
  0xd8   : > { %v5143_v20 = vld [vmem:[#allocation7 + $0x290] sm:$0xf0] }
  0xd9   : > { %2740 = vmatpush.bf16.msrb.mxu2 %v5622_v45  ;;  %2754 = vmatpush.bf16.msrb.mxu3 %v5750_v47  ;;  %v6453_v45 = vld [vmem:[#allocation7 + $0xa4] sm:$0xf] }
  0xda   : > { %v4906_v56 = vor.u32 %v6453_v45, %v4903_v46  ;;  %v6469_v45 = vld [vmem:[#allocation7 + $0x124] sm:$0xf]  ;;  %v4967_v46 = vld [vmem:[#allocation7 + $0x130] sm:$0xf0] }
  0xdb   : > { %2713 = vmatpush.bf16.msrb.mxu0 %v5350_v38  ;;  %2727 = vmatpush.bf16.msrb.mxu1 %v5478_v42  ;;  %v4922_v38 = vor.u32 %v6457_v28, %v4919_v29  ;;  %v6557_v42 = vld [vmem:[#allocation7 + $0x3e4] sm:$0xf]  ;;  %v631_v28 = vperm.slane %v7698_v2, 4 }
  0xdc   : > { %v5322_v55 = vor.u32 %v6557_v42, %v5319_v44  ;;  %v5255_v42 = vld [vmem:[#allocation7 + $0x370] sm:$0xf0] }
  0xdd   : > { %2741 = vmatpush.bf16.msrb.mxu2 %v5606_v58  ;;  %2755 = vmatpush.bf16.msrb.mxu3 %v5734_v59  ;;  %v5175_v58 = vld [vmem:[#allocation7 + $0x2d0] sm:$0xf0]  ;;  %v6553_v59 = vld [vmem:[#allocation7 + $0x3c4] sm:$0xf] }
  0xdf   : > { %2714 = vmatpush.bf16.msrb.mxu0 %v5334_v51  ;;  %2728 = vmatpush.bf16.msrb.mxu1 %v5462_v53  ;;  %v5194_v53 = vor.u32 %v6525_v39, %v5191_v40  ;;  %v6541_v39 = vld [vmem:[#allocation7 + $0x364] sm:$0xf] }
  0xe1   : > { %2742 = vmatpush.bf16.msrb.mxu2 %v5590_v62  ;;  %2756 = vmatpush.bf16.msrb.mxu3 %v5718_v1  ;;  %v5303_v62 = vld [vmem:[#allocation7 + $0x3d0] sm:$0xf0]  ;;  %v6481_v1 = vld [vmem:[#allocation7 + $0x184] sm:$0xf] }
  0xff   : > { %v978_v3 = vpop.f32.mrf.mxu0  ;;  %v992_v5 = vpop.f32.mrf.mxu1 }
 0x100   : > { %v979_v7 = vadd.f32 %v978_v3, %v627_v4  ;;  %v993_v8 = vadd.f32 %v992_v5, %v628_v6  ;;  %v5015_v3 = vld [vmem:[#allocation7 + $0x190] sm:$0xf0]  ;;  %v5306_v5 = vor.u32 %v6553_v59, %v5303_v62 }
 0x101   : > { %v4823_v62 = vld [vmem:[#allocation7 + $0x10] sm:$0xf0] }
 0x102   : > { %v1081_v12 = vmax.f32 %v979_v7, 0.0  ;;  %v1082_v17 = vmax.f32 %v993_v8, 0.0  ;;  %v6517_v7 = vld [vmem:[#allocation7 + $0x2a4] sm:$0xf]  ;;  %v5159_v8 = vld [vmem:[#allocation7 + $0x2b0] sm:$0xf0] }
 0x103   : > { %v5162_v16 = vor.u32 %v6517_v7, %v5159_v8  ;;  %v633_v8 = vperm.slane %v7698_v2, 6 }
 0x107   : > { %v1020_v10 = vpop.f32.mrf.mxu3  ;;  %v980_v11 = vpop.f32.mrf.mxu0 }
 0x108   : > { %v1006_v9 = vpop.f32.mrf.mxu2  ;;  %v981_v13 = vadd.f32 %v980_v11, %v627_v4  ;;  %v994_v14 = vpop.f32.mrf.mxu1  ;;  %v1021_v34 = vadd.f32 %v1020_v10, %v630_v22  ;;  %v5178_v4 = vor.u32 %v6521_v57, %v5175_v58  ;;  %v5018_v10 = vor.u32 %v6481_v1, %v5015_v3  ;;  %v5287_v11 = vld [vmem:[#allocation7 + $0x3b0] sm:$0xf0]  ;;  %v6433_v57 = vld [vmem:[#allocation7 + $0x4] sm:$0xf] }
 0x109   : > { %v995_v19 = vadd.f32 %v994_v14, %v628_v6  ;;  %v1007_v30 = vadd.f32 %v1006_v9, %v629_v18  ;;  %v4890_v6 = vor.u32 %v6449_v63, %v4887_v0  ;;  %v6549_v9 = vld [vmem:[#allocation7 + $0x3a4] sm:$0xf]  ;;  %v4951_v0 = vld [vmem:[#allocation7 + $0x110] sm:$0xf0] }
 0x10a   : > { %v1089_v23 = vmax.f32 %v981_v13, 0.0  ;;  %v1084_v51 = vmax.f32 %v1021_v34, 0.0  ;;  %v4871_v13 = vld [vmem:[#allocation7 + $0x70] sm:$0xf0]  ;;  %v6477_v14 = vld [vmem:[#allocation7 + $0x164] sm:$0xf] }
 0x10b   : > { %v1090_v24 = vmax.f32 %v995_v19, 0.0  ;;  %v1083_v47 = vmax.f32 %v1007_v30, 0.0  ;;  %v6513_v19 = vld [vmem:[#allocation7 + $0x284] sm:$0xf] }
 0x10c   : > { %v7704_v26 = vpack.c.bf16 %v1089_v23, %v1081_v12  ;;  %v6445_v12 = vld [vmem:[#allocation7 + $0x64] sm:$0xf]  ;;  %v5002_v23 = vor.u32 %v6477_v14, %v4999_v15  ;;  %v5146_v34 = vor.u32 %v6513_v19, %v5143_v20 }
 0x10d   : > { %v7706_v31 = vpack.c.bf16 %v1090_v24, %v1082_v17  ;;  %v5290_v17 = vor.u32 %v6549_v9, %v5287_v11  ;;  %v5271_v24 = vld [vmem:[#allocation7 + $0x390] sm:$0xf0]  ;;  %v6473_v30 = vld [vmem:[#allocation7 + $0x144] sm:$0xf] }
 0x10e   : > { %2659 = vmatmul.bf16.vlgmr.msra.gmra.mxu0 %v7704_v26  ;;  %v4986_v40 = vor.u32 %v6473_v30, %v4983_v32  ;;  %v6465_v63 = vld [vmem:[#allocation7 + $0x104] sm:$0xf]  ;;  %v5431_v30 = vld [vmem:[#allocation7 + $0x4d0] sm:$0xf0] }
 0x10f   : > { %v1022_v37 = vpop.f32.mrf.mxu3  ;;  %2673 = vmatmul.bf16.vlgmr.msra.gmra.mxu1 %v7706_v31  ;;  %2763 = vmatpush.bf16.msra.mxu0 %v4938_v25  ;;  %v6441_v25 = vld [vmem:[#allocation7 + $0x44] sm:$0xf]  ;;  %v4954_v20 = vor.u32 %v6465_v63, %v4951_v0 }
 0x110   : > { %v1008_v35 = vpop.f32.mrf.mxu2  ;;  %v1023_v41 = vadd.f32 %v1022_v37, %v630_v22  ;;  %2777 = vmatpush.bf16.msra.mxu1 %v5066_v27  ;;  %v4855_v27 = vld [vmem:[#allocation7 + $0x50] sm:$0xf0]  ;;  %v6509_v37 = vld [vmem:[#allocation7 + $0x264] sm:$0xf] }
 0x111   : > { %v1009_v36 = vadd.f32 %v1008_v35, %v629_v18  ;;  %v4874_v18 = vor.u32 %v6445_v12, %v4871_v13  ;;  %v5274_v35 = vor.u32 %v6545_v21, %v5271_v24  ;;  %v6621_v11 = vld [vmem:[#allocation7 + $0x5e4] sm:$0xf]  ;;  %v5575_v12 = vld [vmem:[#allocation7 + $0x5f0] sm:$0xf0]  ;;  %v634_v13 = vperm.slane %v7698_v2, 7 }
 0x112   : > { %v1092_v52 = vmax.f32 %v1023_v41, 0.0  ;;  %v6437_v41 = vld [vmem:[#allocation7 + $0x24] sm:$0xf]  ;;  %v5578_v2 = vor.u32 %v6621_v11, %v5575_v12  ;;  %v5527_v12 = vld [vmem:[#allocation7 + $0x590] sm:$0xf0] }
 0x113   : > { %v1091_v48 = vmax.f32 %v1009_v36, 0.0  ;;  %2764 = vmatpush.bf16.msra.mxu0 %v4922_v38  ;;  %v4858_v36 = vor.u32 %v6441_v25, %v4855_v27  ;;  %v5127_v38 = vld [vmem:[#allocation7 + $0x270] sm:$0xf0]  ;;  %v6533_v21 = vld [vmem:[#allocation7 + $0x324] sm:$0xf] }
 0x114   : > { %v7712_v60 = vpack.c.bf16 %v1092_v52, %v1084_v51  ;;  %2778 = vmatpush.bf16.msra.mxu1 %v5050_v43  ;;  %v4839_v43 = vld [vmem:[#allocation7 + $0x30] sm:$0xf0]  ;;  %v5258_v52 = vor.u32 %v6541_v39, %v5255_v42  ;;  %v6617_v32 = vld [vmem:[#allocation7 + $0x5c4] sm:$0xf] }
 0x115   : > { %v7710_v54 = vpack.c.bf16 %v1091_v48, %v1083_v47  ;;  %v5130_v48 = vor.u32 %v6509_v37, %v5127_v38  ;;  %v6497_v37 = vld [vmem:[#allocation7 + $0x204] sm:$0xf]  ;;  %v5079_v38 = vld [vmem:[#allocation7 + $0x210] sm:$0xf0] }
 0x116   : > { %2701 = vmatmul.bf16.vlgmr.msra.gmra.mxu3 %v7712_v60  ;;  %v6529_v42 = vld [vmem:[#allocation7 + $0x304] sm:$0xf] }
 0x117   : > { %2687 = vmatmul.bf16.vlgmr.msra.gmra.mxu2 %v7710_v54  ;;  %2805 = vmatpush.bf16.msra.mxu3 %v5322_v55  ;;  %v6537_v55 = vld [vmem:[#allocation7 + $0x344] sm:$0xf] }
 0x118   : > { %2791 = vmatpush.bf16.msra.mxu2 %v5194_v53  ;;  %2765 = vmatpush.bf16.msra.mxu0 %v4906_v56  ;;  %v4842_v53 = vor.u32 %v6437_v41, %v4839_v43  ;;  %v5239_v56 = vld [vmem:[#allocation7 + $0x350] sm:$0xf0]  ;;  %v6653_v43 = vld [vmem:[#allocation7 + $0x6e4] sm:$0xf] }
 0x119   : > { %2779 = vmatpush.bf16.msra.mxu1 %v5034_v61  ;;  %v4970_v61 = vor.u32 %v6469_v45, %v4967_v46  ;;  %v5242_v15 = vor.u32 %v6537_v55, %v5239_v56  ;;  %v5207_v41 = vld [vmem:[#allocation7 + $0x310] sm:$0xf0]  ;;  %v6609_v11 = vld [vmem:[#allocation7 + $0x584] sm:$0xf] }
 0x11a   : > { %v5703_v46 = vld [vmem:[#allocation7 + $0x6f0] sm:$0xf0] }
 0x11b   : > { %2806 = vmatpush.bf16.msra.mxu3 %v5306_v5  ;;  %v6589_v5 = vld [vmem:[#allocation7 + $0x4e4] sm:$0xf]  ;;  %v5415_v55 = vld [vmem:[#allocation7 + $0x4b0] sm:$0xf0]  ;;  %v5706_v63 = vor.u32 %v6653_v43, %v5703_v46 }
 0x11c   : > { %2792 = vmatpush.bf16.msra.mxu2 %v5178_v4  ;;  %2766 = vmatpush.bf16.msra.mxu0 %v4890_v6  ;;  %v5447_v6 = vld [vmem:[#allocation7 + $0x4f0] sm:$0xf0]  ;;  %v6669_v46 = vld [vmem:[#allocation7 + $0x764] sm:$0xf] }
 0x11d   : > { %2780 = vmatpush.bf16.msra.mxu1 %v5018_v10  ;;  %v5114_v10 = vor.u32 %v6505_v49, %v5111_v50  ;;  %v5450_v24 = vor.u32 %v6589_v5, %v5447_v6  ;;  %v5687_v5 = vld [vmem:[#allocation7 + $0x6d0] sm:$0xf0]  ;;  %v6681_v6 = vld [vmem:[#allocation7 + $0x7c4] sm:$0xf] }
 0x11e   : > { %v5639_v43 = vld [vmem:[#allocation7 + $0x670] sm:$0xf0] }
 0x11f   : > { %v1034_v22 = vpop.f32.mrf.mxu0  ;;  %v1048_v29 = vpop.f32.mrf.mxu1  ;;  %2807 = vmatpush.bf16.msra.mxu3 %v5290_v17  ;;  %v6501_v17 = vld [vmem:[#allocation7 + $0x224] sm:$0xf] }
 0x120   : > { %2793 = vmatpush.bf16.msra.mxu2 %v5162_v16  ;;  %2767 = vmatpush.bf16.msra.mxu0 %v4874_v18  ;;  %v1035_v44 = vadd.f32 %v1034_v22, %v631_v28  ;;  %v1049_v47 = vadd.f32 %v1048_v29, %v632_v33  ;;  %v4826_v16 = vor.u32 %v6433_v57, %v4823_v62  ;;  %v5095_v18 = vld [vmem:[#allocation7 + $0x230] sm:$0xf0]  ;;  %v6585_v29 = vld [vmem:[#allocation7 + $0x4c4] sm:$0xf] }
 0x121   : > { %2781 = vmatpush.bf16.msra.mxu1 %v5002_v23  ;;  %v5223_v22 = vld [vmem:[#allocation7 + $0x330] sm:$0xf0]  ;;  %v5434_v45 = vor.u32 %v6585_v29, %v5431_v30  ;;  %v6641_v29 = vld [vmem:[#allocation7 + $0x684] sm:$0xf] }
 0x122   : > { %v1085_v1 = vmax.f32 %v1035_v44, 0.0  ;;  %v1086_v7 = vmax.f32 %v1049_v47, 0.0  ;;  %v6685_v47 = vld [vmem:[#allocation7 + $0x7e4] sm:$0xf]  ;;  %v5655_v30 = vld [vmem:[#allocation7 + $0x690] sm:$0xf0] }
 0x123   : > { %2808 = vmatpush.bf16.msra.mxu3 %v5274_v35  ;;  %v5226_v35 = vor.u32 %v6533_v21, %v5223_v22  ;;  %v6573_v21 = vld [vmem:[#allocation7 + $0x464] sm:$0xf]  ;;  %v5383_v22 = vld [vmem:[#allocation7 + $0x470] sm:$0xf0] }
 0x124   : > { %2794 = vmatpush.bf16.msra.mxu2 %v5146_v34  ;;  %2768 = vmatpush.bf16.msra.mxu0 %v4858_v36  ;;  %v5559_v36 = vld [vmem:[#allocation7 + $0x5d0] sm:$0xf0] }
 0x125   : > { %2782 = vmatpush.bf16.msra.mxu1 %v4986_v40 }
 0x127   : > { %v1062_v51 = vpop.f32.mrf.mxu2  ;;  %v1076_v58 = vpop.f32.mrf.mxu3  ;;  %2809 = vmatpush.bf16.msra.mxu3 %v5258_v52  ;;  %v5082_v52 = vor.u32 %v6497_v37, %v5079_v38  ;;  %v5367_v37 = vld [vmem:[#allocation7 + $0x450] sm:$0xf0]  ;;  %v6601_v38 = vld [vmem:[#allocation7 + $0x544] sm:$0xf] }
 0x128   : > { %v1036_v59 = vpop.f32.mrf.mxu0  ;;  %v1050_v4 = vpop.f32.mrf.mxu1  ;;  %2795 = vmatpush.bf16.msra.mxu2 %v5130_v48  ;;  %2769 = vmatpush.bf16.msra.mxu0 %v4842_v53  ;;  %v1063_v25 = vadd.f32 %v1062_v51, %v633_v8  ;;  %v5831_v48 = vld [vmem:[#allocation7 + $0x7f0] sm:$0xf0]  ;;  %v5562_v51 = vor.u32 %v6617_v32, %v5559_v36  ;;  %v6581_v53 = vld [vmem:[#allocation7 + $0x4a4] sm:$0xf]  ;;  %v5386_v32 = vor.u32 %v6573_v21, %v5383_v22  ;;  %v6460_v21 = vld [vmem:[#allocation7 + $0xd4] sm:$0xf0] }
 0x129   : > { %v1037_v3 = vadd.f32 %v1036_v59, %v631_v28  ;;  %v1051_v9 = vadd.f32 %v1050_v4, %v632_v33  ;;  %2783 = vmatpush.bf16.msra.mxu1 %v4970_v61  ;;  %v5098_v28 = vor.u32 %v6501_v17, %v5095_v18  ;;  %v1077_v33 = vadd.f32 %v1076_v58, %v634_v13  ;;  %v6613_v59 = vld [vmem:[#allocation7 + $0x5a4] sm:$0xf]  ;;  %v5543_v61 = vld [vmem:[#allocation7 + $0x5b0] sm:$0xf0]  ;;  %v5053_v22 = vld [vmem:[#allocation7 + $0x1c8] sm:$0xf] }
 0x12a   : > { %v1087_v49 = vmax.f32 %v1063_v25, 0.0  ;;  %v5210_v58 = vor.u32 %v6529_v42, %v5207_v41  ;;  %v6649_v4 = vld [vmem:[#allocation7 + $0x6c4] sm:$0xf]  ;;  %v5671_v17 = vld [vmem:[#allocation7 + $0x6b0] sm:$0xf0]  ;;  %v5530_v18 = vor.u32 %v6609_v11, %v5527_v12 }
 0x12b   : > { %v1093_v14 = vmax.f32 %v1037_v3, 0.0  ;;  %v1094_v19 = vmax.f32 %v1051_v9, 0.0  ;;  %2810 = vmatpush.bf16.msra.mxu3 %v5242_v15  ;;  %v1088_v56 = vmax.f32 %v1077_v33, 0.0  ;;  %v5418_v3 = vor.u32 %v6581_v53, %v5415_v55  ;;  %v6577_v9 = vld [vmem:[#allocation7 + $0x484] sm:$0xf] }
 0x12c   : > { %2796 = vmatpush.bf16.msra.mxu2 %v5114_v10  ;;  %2770 = vmatpush.bf16.msra.mxu0 %v4826_v16  ;;  %v5399_v10 = vld [vmem:[#allocation7 + $0x490] sm:$0xf0]  ;;  %v6645_v16 = vld [vmem:[#allocation7 + $0x6a4] sm:$0xf] }
 0x12d   : > { %v7720_v23 = vpack.c.bf16 %v1093_v14, %v1085_v1  ;;  %v7722_v27 = vpack.c.bf16 %v1094_v19, %v1086_v7  ;;  %2784 = vmatpush.bf16.msra.mxu1 %v4954_v20  ;;  %v5834_v1 = vor.u32 %v6685_v47, %v5831_v48  ;;  %v5546_v7 = vor.u32 %v6613_v59, %v5543_v61  ;;  %v6677_v19 = vld [vmem:[#allocation7 + $0x7a4] sm:$0xf]  ;;  %v5799_v20 = vld [vmem:[#allocation7 + $0x7b0] sm:$0xf0] }
 0x12e   : > { %v5402_v15 = vor.u32 %v6577_v9, %v5399_v10  ;;  %v5511_v25 = vld [vmem:[#allocation7 + $0x570] sm:$0xf0]  ;;  %v6569_v36 = vld [vmem:[#allocation7 + $0x444] sm:$0xf]  ;;  %v6496_v9 = vld [vmem:[#allocation7 + $0x1f4] sm:$0xf0] }
 0x12f   : > { %v1064_v34 = vpop.f32.mrf.mxu2  ;;  %v1078_v40 = vpop.f32.mrf.mxu3  ;;  %2715 = vmatmul.bf16.vlgmr.msrb.gmra.mxu0 %v7720_v23  ;;  %2729 = vmatmul.bf16.vlgmr.msrb.gmra.mxu1 %v7722_v27  ;;  %v6637_v41 = vld [vmem:[#allocation7 + $0x664] sm:$0xf]  ;;  %v5767_v47 = vld [vmem:[#allocation7 + $0x770] sm:$0xf0] }
 0x130   : > { %v1065_v39 = vadd.f32 %v1064_v34, %v633_v8  ;;  %v1079_v44 = vadd.f32 %v1078_v40, %v634_v13  ;;  %2819 = vmatpush.bf16.msrb.mxu0 %v5450_v24  ;;  %2797 = vmatpush.bf16.msra.mxu2 %v5098_v28  ;;  %v5815_v8 = vld [vmem:[#allocation7 + $0x7d0] sm:$0xf0]  ;;  %v5690_v13 = vor.u32 %v6649_v4, %v5687_v5  ;;  %v6605_v24 = vld [vmem:[#allocation7 + $0x564] sm:$0xf]  ;;  %v4941_v5 = vld [vmem:[#allocation7 + $0xe8] sm:$0xf] }
 0x131   : > { %2833 = vmatpush.bf16.msrb.mxu1 %v5578_v2  ;;  %2811 = vmatpush.bf16.msra.mxu3 %v5226_v35  ;;  %v5818_v14 = vor.u32 %v6681_v6, %v5815_v8  ;;  %v5674_v2 = vor.u32 %v6645_v16, %v5671_v17  ;;  %v5802_v28 = vor.u32 %v6677_v19, %v5799_v20  ;;  %v6673_v34 = vld [vmem:[#allocation7 + $0x784] sm:$0xf]  ;;  %v5783_v35 = vld [vmem:[#allocation7 + $0x790] sm:$0xf0]  ;;  %v5069_v8 = vld [vmem:[#allocation7 + $0x1e8] sm:$0xf] }
 0x132   : > { %v1095_v50 = vmax.f32 %v1065_v39, 0.0  ;;  %v1096_v57 = vmax.f32 %v1079_v44, 0.0  ;;  %v5514_v33 = vor.u32 %v6605_v24, %v5511_v25  ;;  %v5495_v39 = vld [vmem:[#allocation7 + $0x550] sm:$0xf0]  ;;  %v5658_v40 = vor.u32 %v6641_v29, %v5655_v30  ;;  %v6565_v48 = vld [vmem:[#allocation7 + $0x424] sm:$0xf] }
 0x133   : > { %v5786_v42 = vor.u32 %v6673_v34, %v5783_v35  ;;  %v5370_v44 = vor.u32 %v6569_v36, %v5367_v37  ;;  %v5770_v53 = vor.u32 %v6669_v46, %v5767_v47  ;;  %v6633_v55 = vld [vmem:[#allocation7 + $0x644] sm:$0xf]  ;;  %v5751_v61 = vld [vmem:[#allocation7 + $0x750] sm:$0xf0]  ;;  %v4925_v19 = vld [vmem:[#allocation7 + $0xc8] sm:$0xf] }
 0x134   : > { %v7726_v62 = vpack.c.bf16 %v1095_v50, %v1087_v49  ;;  %v7728_v0 = vpack.c.bf16 %v1096_v57, %v1088_v56  ;;  %2820 = vmatpush.bf16.msrb.mxu0 %v5434_v45  ;;  %2798 = vmatpush.bf16.msra.mxu2 %v5082_v52  ;;  %v5498_v45 = vor.u32 %v6601_v38, %v5495_v39  ;;  %v5351_v49 = vld [vmem:[#allocation7 + $0x430] sm:$0xf0]  ;;  %v6597_v50 = vld [vmem:[#allocation7 + $0x524] sm:$0xf]  ;;  %v6492_v24 = vld [vmem:[#allocation7 + $0x1d4] sm:$0xf0] }
 0x135   : > { %2834 = vmatpush.bf16.msrb.mxu1 %v5562_v51  ;;  %2812 = vmatpush.bf16.msra.mxu3 %v5210_v58  ;;  %v5479_v51 = vld [vmem:[#allocation7 + $0x530] sm:$0xf0]  ;;  %v5642_v52 = vor.u32 %v6637_v41, %v5639_v43  ;;  %v6665_v57 = vld [vmem:[#allocation7 + $0x744] sm:$0xf]  ;;  %v5354_v58 = vor.u32 %v6565_v48, %v5351_v49  ;;  %v4926_v34 = vor.u32 %v6460_v21, %v4925_v19  ;;  %v5325_v36 = vld [vmem:[#allocation7 + $0x3e8] sm:$0xf] }
 0x136   : > { %2743 = vmatmul.bf16.vlgmr.msrb.gmra.mxu2 %v7726_v62  ;;  %2757 = vmatmul.bf16.vlgmr.msrb.gmra.mxu3 %v7728_v0  ;;  %v5623_v56 = vld [vmem:[#allocation7 + $0x650] sm:$0xf0]  ;;  %v5482_v59 = vor.u32 %v6597_v50, %v5479_v51  ;;  %v5754_v10 = vor.u32 %v6665_v57, %v5751_v61  ;;  %v6629_v11 = vld [vmem:[#allocation7 + $0x624] sm:$0xf]  ;;  %v5054_v35 = vor.u32 %v6492_v24, %v5053_v22  ;;  %v6560_v37 = vld [vmem:[#allocation7 + $0x3f4] sm:$0xf0] }
 0x137   : > { %v5463_v4 = vld [vmem:[#allocation7 + $0x510] sm:$0xf0]  ;;  %v5626_v6 = vor.u32 %v6633_v55, %v5623_v56  ;;  %v6657_v29 = vld [vmem:[#allocation7 + $0x704] sm:$0xf]  ;;  %v4909_v38 = vld [vmem:[#allocation7 + $0xa8] sm:$0xf] }
 0x138   : > { %2847 = vmatpush.bf16.msrb.mxu2 %v5706_v63  ;;  %2821 = vmatpush.bf16.msrb.mxu0 %v5418_v3  ;;  %v6561_v63 = vld [vmem:[#allocation7 + $0x404] sm:$0xf]  ;;  %v5607_v12 = vld [vmem:[#allocation7 + $0x630] sm:$0xf0]  ;;  %v6488_v41 = vld [vmem:[#allocation7 + $0x1b4] sm:$0xf0] }
 0x139   : > { %2861 = vmatpush.bf16.msrb.mxu3 %v5834_v1  ;;  %2835 = vmatpush.bf16.msrb.mxu1 %v5546_v7  ;;  %v5335_v1 = vld [vmem:[#allocation7 + $0x410] sm:$0xf0]  ;;  %v6593_v3 = vld [vmem:[#allocation7 + $0x504] sm:$0xf]  ;;  %v6464_v7 = vld [vmem:[#allocation7 + $0xf4] sm:$0xf0]  ;;  %v5610_v20 = vor.u32 %v6629_v11, %v5607_v12 }
 0x13a   : > { %v5735_v16 = vld [vmem:[#allocation7 + $0x730] sm:$0xf0]  ;;  %v4942_v17 = vor.u32 %v6464_v7, %v4941_v5  ;;  %v5181_v46 = vld [vmem:[#allocation7 + $0x2c8] sm:$0xf]  ;;  %v6524_v47 = vld [vmem:[#allocation7 + $0x2d4] sm:$0xf0] }
 0x13b   : > { %v5719_v30 = vld [vmem:[#allocation7 + $0x710] sm:$0xf0]  ;;  %v5309_v50 = vld [vmem:[#allocation7 + $0x3c8] sm:$0xf]  ;;  %v6556_v51 = vld [vmem:[#allocation7 + $0x3d4] sm:$0xf0]  ;;  %v5182_v57 = vor.u32 %v6524_v47, %v5181_v46 }
 0x13c   : > { %2848 = vmatpush.bf16.msrb.mxu2 %v5690_v13  ;;  %2822 = vmatpush.bf16.msrb.mxu0 %v5402_v15  ;;  %v5338_v13 = vor.u32 %v6561_v63, %v5335_v1  ;;  %v6661_v15 = vld [vmem:[#allocation7 + $0x724] sm:$0xf]  ;;  %v5722_v43 = vor.u32 %v6657_v29, %v5719_v30  ;;  %v5021_v55 = vld [vmem:[#allocation7 + $0x188] sm:$0xf]  ;;  %v6484_v56 = vld [vmem:[#allocation7 + $0x194] sm:$0xf0] }
 0x13d   : > { %2862 = vmatpush.bf16.msrb.mxu3 %v5818_v14  ;;  %2836 = vmatpush.bf16.msrb.mxu1 %v5530_v18  ;;  %v5466_v14 = vor.u32 %v6593_v3, %v5463_v4  ;;  %v5070_v18 = vor.u32 %v6496_v9, %v5069_v8  ;;  %v5738_v25 = vor.u32 %v6661_v15, %v5735_v16  ;;  %v6520_v61 = vld [vmem:[#allocation7 + $0x2b4] sm:$0xf0]  ;;  %v5293_v3 = vld [vmem:[#allocation7 + $0x3a8] sm:$0xf] }
 0x13e   : > { %v5022_v1 = vor.u32 %v6484_v56, %v5021_v55  ;;  %v6552_v4 = vld [vmem:[#allocation7 + $0x3b4] sm:$0xf0]  ;;  %v4877_v5 = vld [vmem:[#allocation7 + $0x68] sm:$0xf] }
 0x13f   : > { %2771 = vmatmul.bf16.vlgmr.msra.gmra.mxu0 %v7704_v26  ;;  %2785 = vmatmul.bf16.vlgmr.msra.gmra.mxu1 %v7706_v31  ;;  %v5005_v7 = vld [vmem:[#allocation7 + $0x168] sm:$0xf]  ;;  %v6480_v8 = vld [vmem:[#allocation7 + $0x174] sm:$0xf0] }
 0x140   : > { %2849 = vmatpush.bf16.msrb.mxu2 %v5674_v2  ;;  %2823 = vmatpush.bf16.msrb.mxu0 %v5386_v32  ;;  %v6625_v2 = vld [vmem:[#allocation7 + $0x604] sm:$0xf]  ;;  %v5197_v32 = vld [vmem:[#allocation7 + $0x2e8] sm:$0xf]  ;;  %v6516_v12 = vld [vmem:[#allocation7 + $0x294] sm:$0xf0] }
 0x141   : > { %2863 = vmatpush.bf16.msrb.mxu3 %v5802_v28  ;;  %2837 = vmatpush.bf16.msrb.mxu1 %v5514_v33  ;;  %v5591_v28 = vld [vmem:[#allocation7 + $0x610] sm:$0xf0]  ;;  %v6528_v33 = vld [vmem:[#allocation7 + $0x2f4] sm:$0xf0]  ;;  %v5149_v11 = vld [vmem:[#allocation7 + $0x288] sm:$0xf] }
 0x142   : > { %v5594_v39 = vor.u32 %v6625_v2, %v5591_v28  ;;  %v5277_v15 = vld [vmem:[#allocation7 + $0x388] sm:$0xf]  ;;  %v6548_v16 = vld [vmem:[#allocation7 + $0x394] sm:$0xf0]  ;;  %v5150_v21 = vor.u32 %v6516_v12, %v5149_v11 }
 0x143   : > { %v4989_v19 = vld [vmem:[#allocation7 + $0x148] sm:$0xf]  ;;  %v5278_v22 = vor.u32 %v6548_v16, %v5277_v15  ;;  %v6544_v30 = vld [vmem:[#allocation7 + $0x374] sm:$0xf0] }
 0x144   : > { %2850 = vmatpush.bf16.msrb.mxu2 %v5658_v40  ;;  %2824 = vmatpush.bf16.msrb.mxu0 %v5370_v44  ;;  %v6456_v40 = vld [vmem:[#allocation7 + $0xb4] sm:$0xf0]  ;;  %v5198_v44 = vor.u32 %v6528_v33, %v5197_v32  ;;  %v5133_v24 = vld [vmem:[#allocation7 + $0x268] sm:$0xf] }
 0x145   : > { %2864 = vmatpush.bf16.msrb.mxu3 %v5786_v42  ;;  %2838 = vmatpush.bf16.msrb.mxu1 %v5498_v45  ;;  %v5037_v42 = vld [vmem:[#allocation7 + $0x1a8] sm:$0xf]  ;;  %v5326_v45 = vor.u32 %v6560_v37, %v5325_v36  ;;  %v4910_v48 = vor.u32 %v6456_v40, %v4909_v38  ;;  %v6440_v33 = vld [vmem:[#allocation7 + $0x34] sm:$0xf0] }
 0x146   : > { %2799 = vmatmul.bf16.vlgmr.msra.gmra.mxu2 %v7710_v54  ;;  %2813 = vmatmul.bf16.vlgmr.msra.gmra.mxu3 %v7712_v60  ;;  %v5038_v49 = vor.u32 %v6488_v41, %v5037_v42  ;;  %v5261_v29 = vld [vmem:[#allocation7 + $0x368] sm:$0xf]  ;;  %v6468_v47 = vld [vmem:[#allocation7 + $0x114] sm:$0xf0] }
 0x147   : > { %v4845_v32 = vld [vmem:[#allocation7 + $0x28] sm:$0xf]  ;;  %v5262_v37 = vor.u32 %v6544_v30, %v5261_v29  ;;  %v6504_v56 = vld [vmem:[#allocation7 + $0x234] sm:$0xf0] }
 0x148   : > { %2851 = vmatpush.bf16.msrb.mxu2 %v5642_v52  ;;  %2825 = vmatpush.bf16.msrb.mxu0 %v5354_v58  ;;  %v4893_v52 = vld [vmem:[#allocation7 + $0x88] sm:$0xf]  ;;  %v5310_v58 = vor.u32 %v6556_v51, %v5309_v50  ;;  %v4846_v42 = vor.u32 %v6440_v33, %v4845_v32  ;;  %v6592_v50 = vld [vmem:[#allocation7 + $0x4f4] sm:$0xf0] }
 0x149   : > { %2865 = vmatpush.bf16.msrb.mxu3 %v5770_v53  ;;  %2839 = vmatpush.bf16.msrb.mxu1 %v5482_v59  ;;  %v6452_v53 = vld [vmem:[#allocation7 + $0x94] sm:$0xf0]  ;;  %v5165_v59 = vld [vmem:[#allocation7 + $0x2a8] sm:$0xf] }
 0x14a   : > { %v4894_v63 = vor.u32 %v6452_v53, %v4893_v52  ;;  %v5166_v9 = vor.u32 %v6520_v61, %v5165_v59  ;;  %v5117_v38 = vld [vmem:[#allocation7 + $0x248] sm:$0xf]  ;;  %v6624_v52 = vld [vmem:[#allocation7 + $0x5f4] sm:$0xf0] }
 0x14b   : > { %v5245_v40 = vld [vmem:[#allocation7 + $0x348] sm:$0xf]  ;;  %v6536_v61 = vld [vmem:[#allocation7 + $0x334] sm:$0xf0] }
 0x14c   : > { %2852 = vmatpush.bf16.msrb.mxu2 %v5626_v6  ;;  %2826 = vmatpush.bf16.msrb.mxu0 %v5338_v13  ;;  %v6448_v6 = vld [vmem:[#allocation7 + $0x74] sm:$0xf0]  ;;  %v4957_v46 = vld [vmem:[#allocation7 + $0x108] sm:$0xf] }
 0x14d   : > { %2866 = vmatpush.bf16.msrb.mxu3 %v5754_v10  ;;  %2840 = vmatpush.bf16.msrb.mxu1 %v5466_v14  ;;  %v5294_v10 = vor.u32 %v6552_v4, %v5293_v3  ;;  %v4878_v13 = vor.u32 %v6448_v6, %v4877_v5  ;;  %v5006_v14 = vor.u32 %v6480_v8, %v5005_v7  ;;  %v5581_v51 = vld [vmem:[#allocation7 + $0x5e8] sm:$0xf]  ;;  %v6588_v5 = vld [vmem:[#allocation7 + $0x4d4] sm:$0xf0] }
 0x14e   : > { %v5101_v55 = vld [vmem:[#allocation7 + $0x228] sm:$0xf]  ;;  %v6620_v7 = vld [vmem:[#allocation7 + $0x5d4] sm:$0xf0] }
 0x14f   : > { %2827 = vmatmul.bf16.vlgmr.msrb.gmra.mxu0 %v7720_v23  ;;  %v5229_v59 = vld [vmem:[#allocation7 + $0x328] sm:$0xf]  ;;  %v5102_v4 = vor.u32 %v6504_v56, %v5101_v55  ;;  %v6532_v12 = vld [vmem:[#allocation7 + $0x314] sm:$0xf0] }
 0x150   : > { %2875 = vmatpush.bf16.msra.mxu0 %v4942_v17  ;;  %2853 = vmatpush.bf16.msrb.mxu2 %v5610_v20  ;;  %v4861_v17 = vld [vmem:[#allocation7 + $0x48] sm:$0xf]  ;;  %v6476_v20 = vld [vmem:[#allocation7 + $0x154] sm:$0xf0]  ;;  %v5230_v8 = vor.u32 %v6536_v61, %v5229_v59 }
 0x151   : > { %2889 = vmatpush.bf16.msra.mxu1 %v5070_v18  ;;  %2867 = vmatpush.bf16.msrb.mxu3 %v5738_v25  ;;  %v6444_v18 = vld [vmem:[#allocation7 + $0x54] sm:$0xf0]  ;;  %v4990_v28 = vor.u32 %v6476_v20, %v4989_v19  ;;  %v5437_v3 = vld [vmem:[#allocation7 + $0x4c8] sm:$0xf] }
 0x152   : > { %2841 = vmatmul.bf16.vlgmr.msrb.gmra.mxu1 %v7722_v27  ;;  %v6512_v25 = vld [vmem:[#allocation7 + $0x274] sm:$0xf0]  ;;  %v4862_v2 = vor.u32 %v6444_v18, %v4861_v17  ;;  %v5565_v6 = vld [vmem:[#allocation7 + $0x5c8] sm:$0xf]  ;;  %v5438_v15 = vor.u32 %v6588_v5, %v5437_v3 }
 0x153   : > { %v5134_v36 = vor.u32 %v6512_v25, %v5133_v24  ;;  %v5213_v11 = vld [vmem:[#allocation7 + $0x308] sm:$0xf]  ;;  %v5566_v16 = vor.u32 %v6620_v7, %v5565_v6  ;;  %v6688_v18 = vld [vmem:[#allocation7 + $0x7f4] sm:$0xf0] }
 0x154   : > { %2876 = vmatpush.bf16.msra.mxu0 %v4926_v34  ;;  %2854 = vmatpush.bf16.msrb.mxu2 %v5594_v39  ;;  %v4973_v34 = vld [vmem:[#allocation7 + $0x128] sm:$0xf]  ;;  %v6508_v39 = vld [vmem:[#allocation7 + $0x254] sm:$0xf0] }
 0x155   : > { %2890 = vmatpush.bf16.msra.mxu1 %v5054_v35  ;;  %2868 = vmatpush.bf16.msrb.mxu3 %v5722_v43  ;;  %v6472_v35 = vld [vmem:[#allocation7 + $0x134] sm:$0xf0]  ;;  %v5837_v17 = vld [vmem:[#allocation7 + $0x7e8] sm:$0xf] }
 0x156   : > { %v4974_v41 = vor.u32 %v6472_v35, %v4973_v34  ;;  %v6540_v43 = vld [vmem:[#allocation7 + $0x354] sm:$0xf0]  ;;  %v5421_v20 = vld [vmem:[#allocation7 + $0x4a8] sm:$0xf] }
 0x157   : > { %2855 = vmatmul.bf16.vlgmr.msrb.gmra.mxu2 %v7726_v62  ;;  %v5246_v53 = vor.u32 %v6540_v43, %v5245_v40  ;;  %v5549_v25 = vld [vmem:[#allocation7 + $0x5a8] sm:$0xf]  ;;  %v6652_v30 = vld [vmem:[#allocation7 + $0x6d4] sm:$0xf0] }
 0x158   : > { %2903 = vmatpush.bf16.msra.mxu2 %v5198_v44  ;;  %2877 = vmatpush.bf16.msra.mxu0 %v4910_v48  ;;  %v4829_v44 = vld [vmem:[#allocation7 + $0x8] sm:$0xf]  ;;  %v6684_v34 = vld [vmem:[#allocation7 + $0x7d4] sm:$0xf0] }
 0x159   : > { %2917 = vmatpush.bf16.msra.mxu3 %v5326_v45  ;;  %2891 = vmatpush.bf16.msra.mxu1 %v5038_v49  ;;  %v6436_v45 = vld [vmem:[#allocation7 + $0x14] sm:$0xf0]  ;;  %v5453_v48 = vld [vmem:[#allocation7 + $0x4e8] sm:$0xf]  ;;  %v5118_v49 = vor.u32 %v6508_v39, %v5117_v38 }
 0x15a   : > { %2869 = vmatmul.bf16.vlgmr.msrb.gmra.mxu3 %v7728_v0  ;;  %v5693_v29 = vld [vmem:[#allocation7 + $0x6c8] sm:$0xf]  ;;  %v6612_v40 = vld [vmem:[#allocation7 + $0x594] sm:$0xf0] }
 0x15b   : > { %v5821_v33 = vld [vmem:[#allocation7 + $0x7c8] sm:$0xf]  ;;  %v5694_v38 = vor.u32 %v6652_v30, %v5693_v29  ;;  %v6648_v43 = vld [vmem:[#allocation7 + $0x6b4] sm:$0xf0] }
 0x15c   : > { %2904 = vmatpush.bf16.msra.mxu2 %v5182_v57  ;;  %2878 = vmatpush.bf16.msra.mxu0 %v4894_v63  ;;  %v4830_v57 = vor.u32 %v6436_v45, %v4829_v44  ;;  %v5454_v63 = vor.u32 %v6592_v50, %v5453_v48  ;;  %v5533_v39 = vld [vmem:[#allocation7 + $0x588] sm:$0xf]  ;;  %v6644_v56 = vld [vmem:[#allocation7 + $0x694] sm:$0xf0] }
 0x15d   : > { %2918 = vmatpush.bf16.msra.mxu3 %v5310_v58  ;;  %2892 = vmatpush.bf16.msra.mxu1 %v5022_v1  ;;  %v4958_v58 = vor.u32 %v6468_v47, %v4957_v46  ;;  %v5582_v1 = vor.u32 %v6624_v52, %v5581_v51  ;;  %v5805_v45 = vld [vmem:[#allocation7 + $0x7a8] sm:$0xf]  ;;  %v6680_v46 = vld [vmem:[#allocation7 + $0x7b4] sm:$0xf0]  ;;  %v5534_v47 = vor.u32 %v6612_v40, %v5533_v39 }
 0x15e   : > { %v5389_v48 = vld [vmem:[#allocation7 + $0x468] sm:$0xf]  ;;  %v6608_v52 = vld [vmem:[#allocation7 + $0x574] sm:$0xf0] }
 0x15f   : > { %v5517_v51 = vld [vmem:[#allocation7 + $0x568] sm:$0xf]  ;;  %v6676_v59 = vld [vmem:[#allocation7 + $0x794] sm:$0xf0] }
 0x160   : > { %2905 = vmatpush.bf16.msra.mxu2 %v5166_v9  ;;  %2879 = vmatpush.bf16.msra.mxu0 %v4878_v13  ;;  %v5085_v9 = vld [vmem:[#allocation7 + $0x208] sm:$0xf]  ;;  %v5518_v61 = vor.u32 %v6608_v52, %v5517_v51  ;;  %v6604_v5 = vld [vmem:[#allocation7 + $0x554] sm:$0xf0] }
 0x161   : > { %2919 = vmatpush.bf16.msra.mxu3 %v5294_v10  ;;  %2893 = vmatpush.bf16.msra.mxu1 %v5006_v14  ;;  %v6500_v10 = vld [vmem:[#allocation7 + $0x214] sm:$0xf0]  ;;  %v5709_v13 = vld [vmem:[#allocation7 + $0x6e8] sm:$0xf] }
 0x162   : > { %v6656_v14 = vld [vmem:[#allocation7 + $0x6f4] sm:$0xf0]  ;;  %v5086_v19 = vor.u32 %v6500_v10, %v5085_v9  ;;  %v5661_v55 = vld [vmem:[#allocation7 + $0x688] sm:$0xf] }
 0x163   : > { %v5710_v24 = vor.u32 %v6656_v14, %v5709_v13  ;;  %v5662_v3 = vor.u32 %v6644_v56, %v5661_v55  ;;  %v5645_v7 = vld [vmem:[#allocation7 + $0x668] sm:$0xf]  ;;  %v6568_v14 = vld [vmem:[#allocation7 + $0x434] sm:$0xf0] }
 0x164   : > { %2906 = vmatpush.bf16.msra.mxu2 %v5150_v21  ;;  %2880 = vmatpush.bf16.msra.mxu0 %v4862_v2  ;;  %v6584_v21 = vld [vmem:[#allocation7 + $0x4b4] sm:$0xf0]  ;;  %v5773_v10 = vld [vmem:[#allocation7 + $0x768] sm:$0xf] }
 0x165   : > { %2920 = vmatpush.bf16.msra.mxu3 %v5278_v22  ;;  %2894 = vmatpush.bf16.msra.mxu1 %v4990_v28  ;;  %v5214_v22 = vor.u32 %v6532_v12, %v5213_v11  ;;  %v6616_v2 = vld [vmem:[#allocation7 + $0x5b4] sm:$0xf0]  ;;  %v5838_v28 = vor.u32 %v6688_v18, %v5837_v17  ;;  %v5422_v32 = vor.u32 %v6584_v21, %v5421_v20  ;;  %v5357_v13 = vld [vmem:[#allocation7 + $0x428] sm:$0xf] }
 0x166   : > { %v5550_v35 = vor.u32 %v6616_v2, %v5549_v25  ;;  %v6672_v11 = vld [vmem:[#allocation7 + $0x774] sm:$0xf0]  ;;  %v5358_v21 = vor.u32 %v6568_v14, %v5357_v13  ;;  %v5341_v25 = vld [vmem:[#allocation7 + $0x408] sm:$0xf]  ;;  %v6554_v14 = vld [vmem:[#allocation7 + $0x3cc] sm:$0xf] }
 0x167   : > { %v6600_v17 = vld [vmem:[#allocation7 + $0x534] sm:$0xf0]  ;;  %v5774_v18 = vor.u32 %v6672_v11, %v5773_v10  ;;  %v5469_v29 = vld [vmem:[#allocation7 + $0x508] sm:$0xf]  ;;  %v6522_v11 = vld [vmem:[#allocation7 + $0x2cc] sm:$0xf] }
 0x168   : > { %2907 = vmatpush.bf16.msra.mxu2 %v5134_v36  ;;  %2881 = vmatpush.bf16.msra.mxu0 %v4846_v42  ;;  %v5405_v36 = vld [vmem:[#allocation7 + $0x488] sm:$0xf]  ;;  %v5822_v42 = vor.u32 %v6684_v34, %v5821_v33  ;;  %v6636_v20 = vld [vmem:[#allocation7 + $0x654] sm:$0xf0]  ;;  %v6462_v33 = vld [vmem:[#allocation7 + $0xec] sm:$0xf] }
 0x169   : > { %2921 = vmatpush.bf16.msra.mxu3 %v5262_v37  ;;  %2895 = vmatpush.bf16.msra.mxu1 %v4974_v41  ;;  %v6580_v37 = vld [vmem:[#allocation7 + $0x494] sm:$0xf0]  ;;  %v5677_v41 = vld [vmem:[#allocation7 + $0x6a8] sm:$0xf]  ;;  %v4943_v34 = vld [vmem:[#allocation7 + $0xf8] sm:$0xf0] }
 0x16a   : > { %v5406_v44 = vor.u32 %v6580_v37, %v5405_v36  ;;  %v5678_v50 = vor.u32 %v6648_v43, %v5677_v41  ;;  %v6596_v30 = vld [vmem:[#allocation7 + $0x514] sm:$0xf0]  ;;  %v5071_v37 = vld [vmem:[#allocation7 + $0x1f8] sm:$0xf0]  ;;  %v5597_v52 = vld [vmem:[#allocation7 + $0x608] sm:$0xf] }
 0x16b   : > { %v6632_v39 = vld [vmem:[#allocation7 + $0x634] sm:$0xf0]  ;;  %v5470_v43 = vor.u32 %v6596_v30, %v5469_v29  ;;  %v5725_v55 = vld [vmem:[#allocation7 + $0x708] sm:$0xf]  ;;  %v5295_v29 = vld [vmem:[#allocation7 + $0x3b8] sm:$0xf0] }
 0x16c   : > { %2908 = vmatpush.bf16.msra.mxu2 %v5118_v49  ;;  %2882 = vmatpush.bf16.msra.mxu0 %v4830_v57  ;;  %v6576_v49 = vld [vmem:[#allocation7 + $0x474] sm:$0xf0] }
 0x16d   : > { %2922 = vmatpush.bf16.msra.mxu3 %v5246_v53  ;;  %2896 = vmatpush.bf16.msra.mxu1 %v4958_v58  ;;  %v5806_v53 = vor.u32 %v6680_v46, %v5805_v45  ;;  %v5390_v57 = vor.u32 %v6576_v49, %v5389_v48  ;;  %v5789_v58 = vld [vmem:[#allocation7 + $0x788] sm:$0xf]  ;;  %v6664_v41 = vld [vmem:[#allocation7 + $0x734] sm:$0xf0]  ;;  %v6458_v45 = vld [vmem:[#allocation7 + $0xcc] sm:$0xf] }
 0x16e   : > { %v5790_v6 = vor.u32 %v6676_v59, %v5789_v58  ;;  %v4927_v48 = vld [vmem:[#allocation7 + $0xd8] sm:$0xf0]  ;;  %v6490_v49 = vld [vmem:[#allocation7 + $0x1cc] sm:$0xf]  ;;  %v6660_v56 = vld [vmem:[#allocation7 + $0x714] sm:$0xf0] }
 0x16f   : > { %2883 = vmatmul.bf16.vlgmr.msra.gmra.mxu0 %v7704_v26  ;;  %v5199_v58 = vld [vmem:[#allocation7 + $0x2f8] sm:$0xf0]  ;;  %v4930_v59 = vor.u32 %v6458_v45, %v4927_v48 }
 0x170   : > { %2931 = vmatpush.bf16.msrb.mxu0 %v5454_v63  ;;  %2909 = vmatpush.bf16.msra.mxu2 %v5102_v4  ;;  %v5373_v63 = vld [vmem:[#allocation7 + $0x448] sm:$0xf]  ;;  %v4863_v45 = vld [vmem:[#allocation7 + $0x58] sm:$0xf0] }
 0x171   : > { %2945 = vmatpush.bf16.msrb.mxu1 %v5582_v1  ;;  %2923 = vmatpush.bf16.msra.mxu3 %v5230_v8  ;;  %v6572_v1 = vld [vmem:[#allocation7 + $0x454] sm:$0xf0]  ;;  %v5501_v4 = vld [vmem:[#allocation7 + $0x548] sm:$0xf]  ;;  %v4991_v48 = vld [vmem:[#allocation7 + $0x158] sm:$0xf0] }
 0x172   : > { %2897 = vmatmul.bf16.vlgmr.msra.gmra.mxu1 %v7706_v31  ;;  %v6640_v8 = vld [vmem:[#allocation7 + $0x674] sm:$0xf0]  ;;  %v5374_v9 = vor.u32 %v6572_v1, %v5373_v63  ;;  %v5502_v12 = vor.u32 %v6604_v5, %v5501_v4  ;;  %v5327_v63 = vld [vmem:[#allocation7 + $0x3f8] sm:$0xf0]  ;;  %v6454_v4 = vld [vmem:[#allocation7 + $0xac] sm:$0xf] }
 0x173   : > { %v4911_v5 = vld [vmem:[#allocation7 + $0xb8] sm:$0xf0] }
 0x174   : > { %2932 = vmatpush.bf16.msrb.mxu0 %v5438_v15  ;;  %2910 = vmatpush.bf16.msra.mxu2 %v5086_v19  ;;  %v5646_v15 = vor.u32 %v6640_v8, %v5645_v7  ;;  %v5629_v19 = vld [vmem:[#allocation7 + $0x648] sm:$0xf]  ;;  %v6486_v8 = vld [vmem:[#allocation7 + $0x1ac] sm:$0xf]  ;;  %v4914_v13 = vor.u32 %v6454_v4, %v4911_v5  ;;  %v5119_v5 = vld [vmem:[#allocation7 + $0x258] sm:$0xf0] }
 0x175   : > { %2946 = vmatpush.bf16.msrb.mxu1 %v5566_v16  ;;  %2924 = vmatpush.bf16.msra.mxu3 %v5214_v22  ;;  %v5485_v16 = vld [vmem:[#allocation7 + $0x528] sm:$0xf]  ;;  %v6506_v4 = vld [vmem:[#allocation7 + $0x24c] sm:$0xf] }
 0x176   : > { %v5757_v22 = vld [vmem:[#allocation7 + $0x748] sm:$0xf]  ;;  %v5486_v2 = vor.u32 %v6600_v17, %v5485_v16  ;;  %v6450_v17 = vld [vmem:[#allocation7 + $0x8c] sm:$0xf] }
 0x177   : > { %2911 = vmatmul.bf16.vlgmr.msra.gmra.mxu2 %v7710_v54 }
 0x178   : > { %2959 = vmatpush.bf16.msrb.mxu2 %v5710_v24  ;;  %2933 = vmatpush.bf16.msrb.mxu0 %v5422_v32  ;;  %v6668_v24 = vld [vmem:[#allocation7 + $0x754] sm:$0xf0]  ;;  %v5630_v32 = vor.u32 %v6636_v20, %v5629_v19  ;;  %v6482_v20 = vld [vmem:[#allocation7 + $0x18c] sm:$0xf] }
 0x179   : > { %2973 = vmatpush.bf16.msrb.mxu3 %v5838_v28  ;;  %2947 = vmatpush.bf16.msrb.mxu1 %v5550_v35  ;;  %v6564_v28 = vld [vmem:[#allocation7 + $0x414] sm:$0xf0]  ;;  %v6494_v35 = vld [vmem:[#allocation7 + $0x1ec] sm:$0xf]  ;;  %v5758_v36 = vor.u32 %v6668_v24, %v5757_v22 }
 0x17a   : > { %2925 = vmatmul.bf16.vlgmr.msra.gmra.mxu3 %v7712_v60  ;;  %v5342_v40 = vor.u32 %v6564_v28, %v5341_v25  ;;  %v5074_v46 = vor.u32 %v6494_v35, %v5071_v37  ;;  %v6518_v24 = vld [vmem:[#allocation7 + $0x2ac] sm:$0xf]  ;;  %v5167_v25 = vld [vmem:[#allocation7 + $0x2b8] sm:$0xf0] }
 0x17b   : > { %v6550_v28 = vld [vmem:[#allocation7 + $0x3ac] sm:$0xf] }
 0x17c   : > { %2960 = vmatpush.bf16.msrb.mxu2 %v5694_v38  ;;  %2934 = vmatpush.bf16.msrb.mxu0 %v5406_v44  ;;  %v5613_v38 = vld [vmem:[#allocation7 + $0x628] sm:$0xf]  ;;  %v4946_v44 = vor.u32 %v6462_v33, %v4943_v34  ;;  %v4879_v33 = vld [vmem:[#allocation7 + $0x78] sm:$0xf0]  ;;  %v5170_v34 = vor.u32 %v6518_v24, %v5167_v25  ;;  %v6478_v35 = vld [vmem:[#allocation7 + $0x16c] sm:$0xf]  ;;  %v5298_v37 = vor.u32 %v6550_v28, %v5295_v29 }
 0x17d   : > { %2974 = vmatpush.bf16.msrb.mxu3 %v5822_v42  ;;  %2948 = vmatpush.bf16.msrb.mxu1 %v5534_v47  ;;  %v5741_v42 = vld [vmem:[#allocation7 + $0x728] sm:$0xf]  ;;  %v5614_v47 = vor.u32 %v6632_v39, %v5613_v38  ;;  %v6514_v38 = vld [vmem:[#allocation7 + $0x28c] sm:$0xf]  ;;  %v5151_v39 = vld [vmem:[#allocation7 + $0x298] sm:$0xf0] }
 0x17e   : > { %v5742_v51 = vor.u32 %v6664_v41, %v5741_v42  ;;  %v6546_v42 = vld [vmem:[#allocation7 + $0x38c] sm:$0xf]  ;;  %v5279_v41 = vld [vmem:[#allocation7 + $0x398] sm:$0xf0] }
 0x17f   : > { %v5103_v24 = vld [vmem:[#allocation7 + $0x238] sm:$0xf0] }
 0x180   : > { %2961 = vmatpush.bf16.msrb.mxu2 %v5678_v50  ;;  %2935 = vmatpush.bf16.msrb.mxu0 %v5390_v57  ;;  %v5055_v50 = vld [vmem:[#allocation7 + $0x1d8] sm:$0xf0]  ;;  %v6526_v57 = vld [vmem:[#allocation7 + $0x2ec] sm:$0xf] }
 0x181   : > { %2975 = vmatpush.bf16.msrb.mxu3 %v5806_v53  ;;  %2949 = vmatpush.bf16.msrb.mxu1 %v5518_v61  ;;  %v6628_v53 = vld [vmem:[#allocation7 + $0x614] sm:$0xf0]  ;;  %v6558_v61 = vld [vmem:[#allocation7 + $0x3ec] sm:$0xf]  ;;  %v5058_v1 = vor.u32 %v6490_v49, %v5055_v50  ;;  %v5202_v7 = vor.u32 %v6526_v57, %v5199_v58  ;;  %v5282_v49 = vor.u32 %v6546_v42, %v5279_v41  ;;  %v4847_v58 = vld [vmem:[#allocation7 + $0x38] sm:$0xf0] }
 0x182   : > { %v5330_v10 = vor.u32 %v6558_v61, %v5327_v63  ;;  %v6510_v50 = vld [vmem:[#allocation7 + $0x26c] sm:$0xf]  ;;  %v5231_v28 = vld [vmem:[#allocation7 + $0x338] sm:$0xf0] }
 0x183   : > { %v6438_v57 = vld [vmem:[#allocation7 + $0x2c] sm:$0xf]  ;;  %v5087_v42 = vld [vmem:[#allocation7 + $0x218] sm:$0xf0] }
 0x184   : > { %2962 = vmatpush.bf16.msrb.mxu2 %v5662_v3  ;;  %2936 = vmatpush.bf16.msrb.mxu0 %v5374_v9  ;;  %v5598_v3 = vor.u32 %v6628_v53, %v5597_v52  ;;  %v5039_v9 = vld [vmem:[#allocation7 + $0x1b8] sm:$0xf0]  ;;  %v6542_v53 = vld [vmem:[#allocation7 + $0x36c] sm:$0xf] }
 0x185   : > { %2976 = vmatpush.bf16.msrb.mxu3 %v5790_v6  ;;  %2950 = vmatpush.bf16.msrb.mxu1 %v5502_v12  ;;  %v5726_v6 = vor.u32 %v6660_v56, %v5725_v55  ;;  %v5183_v12 = vld [vmem:[#allocation7 + $0x2d8] sm:$0xf0]  ;;  %v5042_v16 = vor.u32 %v6486_v8, %v5039_v9  ;;  %v6470_v63 = vld [vmem:[#allocation7 + $0x12c] sm:$0xf]  ;;  %v4850_v8 = vor.u32 %v6438_v57, %v4847_v58 }
 0x186   : > { %v5186_v19 = vor.u32 %v6522_v11, %v5183_v12  ;;  %v5263_v55 = vld [vmem:[#allocation7 + $0x378] sm:$0xf0]  ;;  %v6538_v9 = vld [vmem:[#allocation7 + $0x34c] sm:$0xf] }
 0x187   : > { %v6434_v11 = vld [vmem:[#allocation7 + $0xc] sm:$0xf] }
 0x188   : > { %2963 = vmatpush.bf16.msrb.mxu2 %v5646_v15  ;;  %2937 = vmatpush.bf16.msrb.mxu0 %v5358_v21  ;;  %v5311_v15 = vld [vmem:[#allocation7 + $0x3d8] sm:$0xf0]  ;;  %v6530_v41 = vld [vmem:[#allocation7 + $0x30c] sm:$0xf] }
 0x189   : > { %2977 = vmatpush.bf16.msrb.mxu3 %v5774_v18  ;;  %2951 = vmatpush.bf16.msrb.mxu1 %v5486_v2  ;;  %v4895_v18 = vld [vmem:[#allocation7 + $0x98] sm:$0xf0]  ;;  %v5314_v22 = vor.u32 %v6554_v14, %v5311_v15  ;;  %v6466_v14 = vld [vmem:[#allocation7 + $0x10c] sm:$0xf] }
 0x18a   : > { %v5023_v21 = vld [vmem:[#allocation7 + $0x198] sm:$0xf0]  ;;  %v4898_v2 = vor.u32 %v6450_v17, %v4895_v18  ;;  %v6590_v17 = vld [vmem:[#allocation7 + $0x4ec] sm:$0xf] }
 0x18b   : > { %v5026_v30 = vor.u32 %v6482_v20, %v5023_v21  ;;  %v4959_v15 = vld [vmem:[#allocation7 + $0x118] sm:$0xf0] }
 0x18c   : > { %2964 = vmatpush.bf16.msrb.mxu2 %v5630_v32  ;;  %2938 = vmatpush.bf16.msrb.mxu0 %v5342_v40  ;;  %v6446_v32 = vld [vmem:[#allocation7 + $0x6c] sm:$0xf]  ;;  %v5455_v18 = vld [vmem:[#allocation7 + $0x4f8] sm:$0xf0] }
 0x18d   : > { %2978 = vmatpush.bf16.msrb.mxu3 %v5758_v36  ;;  %2952 = vmatpush.bf16.msrb.mxu1 %v5470_v43  ;;  %v5007_v36 = vld [vmem:[#allocation7 + $0x178] sm:$0xf0]  ;;  %v4882_v40 = vor.u32 %v6446_v32, %v4879_v33  ;;  %v5458_v32 = vor.u32 %v6590_v17, %v5455_v18  ;;  %v6586_v33 = vld [vmem:[#allocation7 + $0x4cc] sm:$0xf] }
 0x18e   : > { %v5010_v43 = vor.u32 %v6478_v35, %v5007_v36  ;;  %v5583_v21 = vld [vmem:[#allocation7 + $0x5f8] sm:$0xf0]  ;;  %v6646_v18 = vld [vmem:[#allocation7 + $0x6ac] sm:$0xf] }
 0x18f   : > { %2939 = vmatmul.bf16.vlgmr.msrb.gmra.mxu0 %v7720_v23  ;;  %v5439_v36 = vld [vmem:[#allocation7 + $0x4d8] sm:$0xf0] }
 0x190   : > { %2987 = vmatpush.bf16.msra.mxu0 %v4946_v44  ;;  %2965 = vmatpush.bf16.msrb.mxu2 %v5614_v47  ;;  %v6442_v44 = vld [vmem:[#allocation7 + $0x4c] sm:$0xf] }
 0x191   : > { %3001 = vmatpush.bf16.msra.mxu1 %v5074_v46  ;;  %2979 = vmatpush.bf16.msrb.mxu3 %v5742_v51  ;;  %v5154_v46 = vor.u32 %v6514_v38, %v5151_v39  ;;  %v6474_v47 = vld [vmem:[#allocation7 + $0x14c] sm:$0xf]  ;;  %v5135_v51 = vld [vmem:[#allocation7 + $0x278] sm:$0xf0]  ;;  %v4866_v52 = vor.u32 %v6442_v44, %v4863_v45 }
 0x192   : > { %2953 = vmatmul.bf16.vlgmr.msrb.gmra.mxu1 %v7722_v27  ;;  %v4994_v56 = vor.u32 %v6474_v47, %v4991_v48  ;;  %v5138_v61 = vor.u32 %v6510_v50, %v5135_v51  ;;  %v5567_v38 = vld [vmem:[#allocation7 + $0x5d8] sm:$0xf0]  ;;  %v6654_v45 = vld [vmem:[#allocation7 + $0x6ec] sm:$0xf]  ;;  %v5442_v47 = vor.u32 %v6586_v33, %v5439_v36 }
 0x193   : > { %v5215_v44 = vld [vmem:[#allocation7 + $0x318] sm:$0xf0]  ;;  %v6686_v48 = vld [vmem:[#allocation7 + $0x7ec] sm:$0xf] }
 0x194   : > { %2988 = vmatpush.bf16.msra.mxu0 %v4930_v59  ;;  %2966 = vmatpush.bf16.msrb.mxu2 %v5598_v3  ;;  %v7748_v59 = vpop.f32.mrf.mxu0  ;;  %v5266_v3 = vor.u32 %v6542_v53, %v5263_v55  ;;  %v6582_v53 = vld [vmem:[#allocation7 + $0x4ac] sm:$0xf]  ;;  %v5423_v55 = vld [vmem:[#allocation7 + $0x4b8] sm:$0xf0]  ;;  %v5218_v57 = vor.u32 %v6530_v41, %v5215_v44 }
 0x195   : > { %3002 = vmatpush.bf16.msra.mxu1 %v5058_v1  ;;  %2980 = vmatpush.bf16.msrb.mxu3 %v5726_v6  ;;  %v4975_v1 = vld [vmem:[#allocation7 + $0x138] sm:$0xf0]  ;;  %v7750_v6 = vld [vmem:[#allocation16 + $0x8] sm:$0xf]  ;;  %v6570_v44 = vld [vmem:[#allocation7 + $0x44c] sm:$0xf] }
 0x196   : > { %v4978_v12 = vor.u32 %v6470_v63, %v4975_v1  ;;  %v1363_v29 = vperm.slane %v7750_v6, 0  ;;  %v5551_v63 = vld [vmem:[#allocation7 + $0x5b8] sm:$0xf0] }
 0x197   : > { %2967 = vmatmul.bf16.vlgmr.msrb.gmra.mxu2 %v7726_v62  ;;  %v5519_v33 = vld [vmem:[#allocation7 + $0x578] sm:$0xf0] }
 0x198   : > { %3015 = vmatpush.bf16.msra.mxu2 %v5202_v7  ;;  %2989 = vmatpush.bf16.msra.mxu0 %v4914_v13  ;;  %v7752_v7 = vpop.f32.mrf.mxu1  ;;  %v4831_v13 = vld [vmem:[#allocation7 + $0x18] sm:$0xf0]  ;;  %v2661_v1 = vadd.f32 %v7748_v59, %v1363_v29 }
 0x199   : > { %3029 = vmatpush.bf16.msra.mxu3 %v5330_v10  ;;  %3003 = vmatpush.bf16.msra.mxu1 %v5042_v16  ;;  %v5247_v10 = vld [vmem:[#allocation7 + $0x358] sm:$0xf0]  ;;  %v5122_v16 = vor.u32 %v6506_v4, %v5119_v5  ;;  %v4834_v25 = vor.u32 %v6434_v11, %v4831_v13  ;;  %v6650_v5 = vld [vmem:[#allocation7 + $0x6cc] sm:$0xf] }
 0x19a   : > { %2981 = vmatmul.bf16.vlgmr.msrb.gmra.mxu3 %v7728_v0  ;;  %v5250_v20 = vor.u32 %v6538_v9, %v5247_v10  ;;  %v5426_v9 = vor.u32 %v6582_v53, %v5423_v55  ;;  %v6682_v10 = vld [vmem:[#allocation7 + $0x7cc] sm:$0xf]  ;;  %v5823_v11 = vld [vmem:[#allocation7 + $0x7d8] sm:$0xf0] }
 0x19b   : > { %v5407_v13 = vld [vmem:[#allocation7 + $0x498] sm:$0xf0]  ;;  %v5826_v17 = vor.u32 %v6682_v10, %v5823_v11  ;;  %v6634_v10 = vld [vmem:[#allocation7 + $0x64c] sm:$0xf] }
 0x19c   : > { %3016 = vmatpush.bf16.msra.mxu2 %v5186_v19  ;;  %2990 = vmatpush.bf16.msra.mxu0 %v4898_v2  ;;  %v6622_v19 = vld [vmem:[#allocation7 + $0x5ec] sm:$0xf]  ;;  %v5535_v59 = vld [vmem:[#allocation7 + $0x598] sm:$0xf0] }
 0x19d   : > { %3030 = vmatpush.bf16.msra.mxu3 %v5314_v22  ;;  %3004 = vmatpush.bf16.msra.mxu1 %v5026_v30  ;;  %v6502_v22 = vld [vmem:[#allocation7 + $0x22c] sm:$0xf]  ;;  %v4962_v30 = vor.u32 %v6466_v14, %v4959_v15  ;;  %v5663_v36 = vld [vmem:[#allocation7 + $0x698] sm:$0xf0] }
 0x19e   : > { %v6534_v2 = vld [vmem:[#allocation7 + $0x32c] sm:$0xf]  ;;  %v5106_v35 = vor.u32 %v6502_v22, %v5103_v24  ;;  %v5807_v22 = vld [vmem:[#allocation7 + $0x7b8] sm:$0xf0] }
 0x19f   : > { %v5234_v39 = vor.u32 %v6534_v2, %v5231_v28  ;;  %v6610_v15 = vld [vmem:[#allocation7 + $0x58c] sm:$0xf]  ;;  %v5647_v53 = vld [vmem:[#allocation7 + $0x678] sm:$0xf0] }
 0x1a0   : > { %3017 = vmatpush.bf16.msra.mxu2 %v5170_v34  ;;  %2991 = vmatpush.bf16.msra.mxu0 %v4882_v40  ;;  %v5586_v34 = vor.u32 %v6622_v19, %v5583_v21  ;;  %v6498_v40 = vld [vmem:[#allocation7 + $0x20c] sm:$0xf]  ;;  %v7757_v50 = vpop.f32.mrf.mxu1  ;;  %v5679_v19 = vld [vmem:[#allocation7 + $0x6b8] sm:$0xf0]  ;;  %v5538_v2 = vor.u32 %v6610_v15, %v5535_v59 }
 0x1a1   : > { %3031 = vmatpush.bf16.msra.mxu3 %v5298_v37  ;;  %3005 = vmatpush.bf16.msra.mxu1 %v5010_v43  ;;  %v6618_v37 = vld [vmem:[#allocation7 + $0x5cc] sm:$0xf]  ;;  %v7755_v43 = vpop.f32.mrf.mxu0  ;;  %v5631_v11 = vld [vmem:[#allocation7 + $0x658] sm:$0xf0] }
 0x1a2   : > { %v5570_v51 = vor.u32 %v6618_v37, %v5567_v38  ;;  %v6678_v21 = vld [vmem:[#allocation7 + $0x7ac] sm:$0xf] }
 0x1a3   : > { %v6574_v28 = vld [vmem:[#allocation7 + $0x46c] sm:$0xf] }
 0x1a4   : > { %3018 = vmatpush.bf16.msra.mxu2 %v5154_v46  ;;  %2992 = vmatpush.bf16.msra.mxu0 %v4866_v52  ;;  %v5711_v46 = vld [vmem:[#allocation7 + $0x6f8] sm:$0xf0]  ;;  %v5090_v52 = vor.u32 %v6498_v40, %v5087_v42  ;;  %v6674_v38 = vld [vmem:[#allocation7 + $0x78c] sm:$0xf] }
 0x1a5   : > { %3032 = vmatpush.bf16.msra.mxu3 %v5282_v49  ;;  %3006 = vmatpush.bf16.msra.mxu1 %v4994_v56  ;;  %v5839_v49 = vld [vmem:[#allocation7 + $0x7f8] sm:$0xf0]  ;;  %v2688_v56 = vpop.f32.mrf.mxu2  ;;  %v5714_v58 = vor.u32 %v6654_v45, %v5711_v46  ;;  %v6562_v15 = vld [vmem:[#allocation7 + $0x40c] sm:$0xf] }
 0x1a6   : > { %v5842_v4 = vor.u32 %v6686_v48, %v5839_v49  ;;  %v5375_v45 = vld [vmem:[#allocation7 + $0x458] sm:$0xf0] }
 0x1a7   : > { %v5378_v55 = vor.u32 %v6570_v44, %v5375_v45 }
 0x1a8   : > { %3019 = vmatpush.bf16.msra.mxu2 %v5138_v61  ;;  %2993 = vmatpush.bf16.msra.mxu0 %v4850_v8  ;;  %v6614_v61 = vld [vmem:[#allocation7 + $0x5ac] sm:$0xf]  ;;  %v5695_v8 = vld [vmem:[#allocation7 + $0x6d8] sm:$0xf0] }
 0x1a9   : > { %3033 = vmatpush.bf16.msra.mxu3 %v5266_v3  ;;  %3007 = vmatpush.bf16.msra.mxu1 %v4978_v12  ;;  %v2702_v3 = vpop.f32.mrf.mxu3  ;;  %v6578_v12 = vld [vmem:[#allocation7 + $0x48c] sm:$0xf]  ;;  %v5698_v14 = vor.u32 %v6650_v5, %v5695_v8 }
 0x1ac   : > { %3020 = vmatpush.bf16.msra.mxu2 %v5122_v16  ;;  %2994 = vmatpush.bf16.msra.mxu0 %v4834_v25  ;;  %v2675_v16 = vadd.f32 %v7752_v7, %v2661_v1  ;;  %v2730_v25 = vpop.f32.mrf.mxu1  ;;  %v5682_v7 = vor.u32 %v6646_v18, %v5679_v19  ;;  %v5359_v1 = vld [vmem:[#allocation7 + $0x438] sm:$0xf0]  ;;  %v6594_v19 = vld [vmem:[#allocation7 + $0x50c] sm:$0xf] }
 0x1ad   : > { %3034 = vmatpush.bf16.msra.mxu3 %v5250_v20  ;;  %3008 = vmatpush.bf16.msra.mxu1 %v4962_v30  ;;  %v5410_v20 = vor.u32 %v6578_v12, %v5407_v13  ;;  %v5391_v30 = vld [vmem:[#allocation7 + $0x478] sm:$0xf0]  ;;  %v2690_v37 = vpop.f32.mrf.mxu2  ;;  %v6666_v13 = vld [vmem:[#allocation7 + $0x74c] sm:$0xf] }
 0x1ae   : > { %v2689_v24 = vadd.f32 %v2688_v56, %v2675_v16  ;;  %v6670_v56 = vld [vmem:[#allocation7 + $0x76c] sm:$0xf]  ;;  %v5343_v18 = vld [vmem:[#allocation7 + $0x418] sm:$0xf0] }
 0x1af   : > { %2995 = vmatmul.bf16.vlgmr.msra.gmra.mxu0 %v7704_v26  ;;  %v5554_v26 = vor.u32 %v6614_v61, %v5551_v63  ;;  %v6566_v63 = vld [vmem:[#allocation7 + $0x42c] sm:$0xf] }
 0x1b0   : > { %3043 = vmatpush.bf16.msrb.mxu0 %v5458_v32  ;;  %3021 = vmatpush.bf16.msra.mxu2 %v5106_v35  ;;  %v6606_v32 = vld [vmem:[#allocation7 + $0x56c] sm:$0xf]  ;;  %v2703_v40 = vadd.f32 %v2702_v3, %v2689_v24  ;;  %v5362_v12 = vor.u32 %v6566_v63, %v5359_v1  ;;  %v6704_v24 = vld [vmem:[#allocation8 + $0x74] sm:$0xf0] }
 0x1b1   : > { %3057 = vmatpush.bf16.msrb.mxu1 %v5586_v34  ;;  %3035 = vmatpush.bf16.msra.mxu3 %v5234_v39  ;;  %v5810_v34 = vor.u32 %v6678_v21, %v5807_v22  ;;  %v6642_v35 = vld [vmem:[#allocation7 + $0x68c] sm:$0xf]  ;;  %v5791_v39 = vld [vmem:[#allocation7 + $0x798] sm:$0xf0]  ;;  %v2704_v42 = vpop.f32.mrf.mxu3  ;;  %v5522_v41 = vor.u32 %v6606_v32, %v5519_v33  ;;  %v5634_v21 = vor.u32 %v6634_v10, %v5631_v11  ;;  %v5901_v22 = vld [vmem:[#allocation8 + $0x70] sm:$0xf] }
 0x1b2   : > { %3009 = vmatmul.bf16.vlgmr.msra.gmra.mxu1 %v7706_v31  ;;  %v2716_v31 = vpop.f32.mrf.mxu0  ;;  %v5666_v46 = vor.u32 %v6642_v35, %v5663_v36  ;;  %v6720_v32 = vld [vmem:[#allocation8 + $0xf4] sm:$0xf0]  ;;  %v6630_v33 = vld [vmem:[#allocation7 + $0x62c] sm:$0xf]  ;;  %v5743_v36 = vld [vmem:[#allocation7 + $0x738] sm:$0xf0] }
 0x1b3   : > { %v2717_v48 = vadd.f32 %v2716_v31, %v2703_v40  ;;  %v6662_v35 = vld [vmem:[#allocation7 + $0x72c] sm:$0xf]  ;;  %v5893_v40 = vld [vmem:[#allocation8 + $0x60] sm:$0xf]  ;;  %v6700_v63 = vld [vmem:[#allocation8 + $0x54] sm:$0xf0] }
 0x1b4   : > { %3044 = vmatpush.bf16.msrb.mxu0 %v5442_v47  ;;  %3022 = vmatpush.bf16.msra.mxu2 %v5090_v52  ;;  %v6602_v47 = vld [vmem:[#allocation7 + $0x54c] sm:$0xf]  ;;  %v2732_v8 = vpop.f32.mrf.mxu1  ;;  %v5746_v45 = vor.u32 %v6662_v35, %v5743_v36  ;;  %v5877_v11 = vld [vmem:[#allocation8 + $0x40] sm:$0xf]  ;;  %v5853_v36 = vld [vmem:[#allocation8 + $0x10] sm:$0xf] }
 0x1b5   : > { %3058 = vmatpush.bf16.msrb.mxu1 %v5570_v51  ;;  %3036 = vmatpush.bf16.msra.mxu3 %v5218_v57  ;;  %v5794_v51 = vor.u32 %v6674_v38, %v5791_v39  ;;  %v6638_v52 = vld [vmem:[#allocation7 + $0x66c] sm:$0xf]  ;;  %v5775_v57 = vld [vmem:[#allocation7 + $0x778] sm:$0xf0]  ;;  %v2731_v5 = vadd.f32 %v2730_v25, %v2717_v48  ;;  %v5965_v25 = vld [vmem:[#allocation8 + $0xf0] sm:$0xf] }
 0x1b6   : > { %v5650_v3 = vor.u32 %v6638_v52, %v5647_v53  ;;  %v5966_v38 = vor.u32 %v6720_v32, %v5965_v25  ;;  %v6658_v48 = vld [vmem:[#allocation7 + $0x70c] sm:$0xf] }
 0x1b7   : > { %3023 = vmatmul.bf16.vlgmr.msra.gmra.mxu2 %v7710_v54  ;;  %v2663_v54 = vadd.f32 %v7755_v43, %v1363_v29  ;;  %v5503_v29 = vld [vmem:[#allocation7 + $0x558] sm:$0xf0] }
 0x1b8   : > { %3071 = vmatpush.bf16.msrb.mxu2 %v5714_v58  ;;  %3045 = vmatpush.bf16.msrb.mxu0 %v5426_v9  ;;  %v5506_v61 = vor.u32 %v6602_v47, %v5503_v29  ;;  %v5778_v9 = vor.u32 %v6670_v56, %v5775_v57  ;;  %v6626_v47 = vld [vmem:[#allocation7 + $0x60c] sm:$0xf]  ;;  %v5599_v29 = vld [vmem:[#allocation7 + $0x618] sm:$0xf0]  ;;  %v1364_v56 = vperm.slane %v7750_v6, 1 }
 0x1b9   : > { %3085 = vmatpush.bf16.msrb.mxu3 %v5842_v4  ;;  %3059 = vmatpush.bf16.msrb.mxu1 %v5554_v26  ;;  %v2677_v43 = vadd.f32 %v7757_v50, %v2663_v54  ;;  %v6598_v4 = vld [vmem:[#allocation7 + $0x52c] sm:$0xf]  ;;  %v5487_v50 = vld [vmem:[#allocation7 + $0x538] sm:$0xf0]  ;;  %v2744_v26 = vpop.f32.mrf.mxu2  ;;  %v2758_v31 = vpop.f32.mrf.mxu3 }
 0x1ba   : > { %3037 = vmatmul.bf16.vlgmr.msra.gmra.mxu3 %v7712_v60  ;;  %v5394_v60 = vor.u32 %v6574_v28, %v5391_v30  ;;  %v2718_v49 = vpop.f32.mrf.mxu0  ;;  %v2745_v16 = vadd.f32 %v2744_v26, %v2731_v5  ;;  %v5615_v54 = vld [vmem:[#allocation7 + $0x638] sm:$0xf0]  ;;  %v6698_v26 = vld [vmem:[#allocation8 + $0x44] sm:$0xf0] }
 0x1bb   : > { %v2691_v58 = vadd.f32 %v2690_v37, %v2677_v43  ;;  %v5618_v39 = vor.u32 %v6630_v33, %v5615_v54 }
 0x1bc   : > { %3072 = vmatpush.bf16.msrb.mxu2 %v5698_v14  ;;  %3046 = vmatpush.bf16.msrb.mxu0 %v5410_v20  ;;  %v5759_v14 = vld [vmem:[#allocation7 + $0x758] sm:$0xf0]  ;;  %v7772_v28 = vadd.f32 %v2758_v31, %v2745_v16  ;;  %v5869_v16 = vld [vmem:[#allocation8 + $0x30] sm:$0xf]  ;;  %v6696_v31 = vld [vmem:[#allocation8 + $0x34] sm:$0xf0] }
 0x1bd   : > { %3086 = vmatpush.bf16.msrb.mxu3 %v5826_v17  ;;  %3060 = vmatpush.bf16.msrb.mxu1 %v5538_v2  ;;  %v2705_v59 = vadd.f32 %v2704_v42, %v2691_v58  ;;  %v5490_v17 = vor.u32 %v6598_v4, %v5487_v50  ;;  %v5471_v20 = vld [vmem:[#allocation7 + $0x518] sm:$0xf0]  ;;  %v6702_v42 = vld [vmem:[#allocation8 + $0x64] sm:$0xf0]  ;;  %v5602_v58 = vor.u32 %v6626_v47, %v5599_v29  ;;  %v5949_v4 = vld [vmem:[#allocation8 + $0xd0] sm:$0xf] }
 0x1be   : > { %4251 = vst [vmem:[%s7776_s27] sm:$0xff] %v7772_v28  ;;  %v5474_v37 = vor.u32 %v6594_v19, %v5471_v20  ;;  %v6716_v50 = vld [vmem:[#allocation8 + $0xd4] sm:$0xf0]  ;;  %v5845_v47 = vld [vmem:[#allocation8] sm:$0xf]  ;;  %v6690_v29 = vld [vmem:[#allocation8 + $0x4] sm:$0xf0] }
 0x1bf   : > { %v2719_v2 = vadd.f32 %v2718_v49, %v2705_v59  ;;  %v5727_v49 = vld [vmem:[#allocation7 + $0x718] sm:$0xf0]  ;;  %v5950_v10 = vor.u32 %v6716_v50, %v5949_v4  ;;  %v6712_v19 = vld [vmem:[#allocation8 + $0xb4] sm:$0xf0] }
 0x1c0   : > { %3073 = vmatpush.bf16.msrb.mxu2 %v5682_v7  ;;  %3047 = vmatpush.bf16.msrb.mxu0 %v5394_v60  ;;  %v5762_v7 = vor.u32 %v6666_v13, %v5759_v14  ;;  %v5902_v60 = vor.u32 %v6704_v24, %v5901_v22  ;;  %v6714_v13 = vld [vmem:[#allocation8 + $0xc4] sm:$0xf0] }
 0x1c1   : > { %3087 = vmatpush.bf16.msrb.mxu3 %v5810_v34  ;;  %3061 = vmatpush.bf16.msrb.mxu1 %v5522_v41  ;;  %v5346_v34 = vor.u32 %v6562_v15, %v5343_v18  ;;  %v5957_v41 = vld [vmem:[#allocation8 + $0xe0] sm:$0xf]  ;;  %v2733_v44 = vadd.f32 %v2732_v8, %v2719_v2  ;;  %v2746_v43 = vpop.f32.mrf.mxu2  ;;  %v2760_v53 = vpop.f32.mrf.mxu3  ;;  %v5933_v18 = vld [vmem:[#allocation8 + $0xb0] sm:$0xf]  ;;  %v6694_v2 = vld [vmem:[#allocation8 + $0x24] sm:$0xf0] }
 0x1c2   : > { %v2772_v30 = vpop.f32.mrf.mxu0  ;;  %v5934_v25 = vor.u32 %v6712_v19, %v5933_v18  ;;  %v6699_v18 = vld [vmem:[#allocation8 + $0x54] sm:$0xf]  ;;  %v5887_v19 = vld [vmem:[#allocation8 + $0x58] sm:$0xf0] }
 0x1c3   : > { %v2747_v52 = vadd.f32 %v2746_v43, %v2733_v44 }
 0x1c4   : > { %3074 = vmatpush.bf16.msrb.mxu2 %v5666_v46  ;;  %3048 = vmatpush.bf16.msrb.mxu0 %v5378_v55  ;;  %v6718_v46 = vld [vmem:[#allocation8 + $0xe4] sm:$0xf0]  ;;  %v5894_v55 = vor.u32 %v6702_v42, %v5893_v40  ;;  %v6736_v40 = vld [vmem:[#allocation8 + $0x174] sm:$0xf0] }
 0x1c5   : > { %3088 = vmatpush.bf16.msrb.mxu3 %v5794_v51  ;;  %3062 = vmatpush.bf16.msrb.mxu1 %v5506_v61  ;;  %v2786_v51 = vpop.f32.mrf.mxu1  ;;  %v5958_v57 = vor.u32 %v6718_v46, %v5957_v41  ;;  %v5885_v61 = vld [vmem:[#allocation8 + $0x50] sm:$0xf]  ;;  %v7781_v1 = vadd.f32 %v2760_v53, %v2747_v52  ;;  %v5903_v52 = vld [vmem:[#allocation8 + $0x78] sm:$0xf0]  ;;  %v6021_v53 = vld [vmem:[#allocation8 + $0x160] sm:$0xf] }
 0x1c6   : > { %v5886_v8 = vor.u32 %v6700_v63, %v5885_v61  ;;  %v6719_v61 = vld [vmem:[#allocation8 + $0xf4] sm:$0xf]  ;;  %v5967_v63 = vld [vmem:[#allocation8 + $0xf8] sm:$0xf0] }
 0x1c7   : > { %4255 = vst [vmem:[%s7776_s27 + $0x20] sm:$0xff] %v7781_v1 }
 0x1c8   : > { %3075 = vmatpush.bf16.msrb.mxu2 %v5650_v3  ;;  %3049 = vmatpush.bf16.msrb.mxu0 %v5362_v12  ;;  %v5730_v3 = vor.u32 %v6658_v48, %v5727_v49  ;;  %v5941_v12 = vld [vmem:[#allocation8 + $0xc0] sm:$0xf]  ;;  %v6706_v49 = vld [vmem:[#allocation8 + $0x84] sm:$0xf0] }
 0x1c9   : > { %3089 = vmatpush.bf16.msrb.mxu3 %v5778_v9  ;;  %3063 = vmatpush.bf16.msrb.mxu1 %v5490_v17  ;;  %v2773_v9 = vadd.f32 %v2772_v30, %v1364_v56  ;;  %v2814_v14 = vpop.f32.mrf.mxu3  ;;  %v5942_v59 = vor.u32 %v6714_v13, %v5941_v12  ;;  %v5925_v30 = vld [vmem:[#allocation8 + $0xa0] sm:$0xf]  ;;  %v5895_v12 = vld [vmem:[#allocation8 + $0x68] sm:$0xf0]  ;;  %v6013_v13 = vld [vmem:[#allocation8 + $0x150] sm:$0xf] }
 0x1ca   : > { %v2774_v5 = vpop.f32.mrf.mxu0  ;;  %v5909_v48 = vld [vmem:[#allocation8 + $0x80] sm:$0xf] }
 0x1cb   : > { %v2787_v15 = vadd.f32 %v2786_v51, %v2773_v9  ;;  %v2775_v22 = vadd.f32 %v2774_v5, %v1364_v56  ;;  %v6703_v51 = vld [vmem:[#allocation8 + $0x74] sm:$0xf]  ;;  %v5846_v5 = vor.u32 %v6690_v29, %v5845_v47  ;;  %v5910_v9 = vor.u32 %v6706_v49, %v5909_v48  ;;  %v5935_v29 = vld [vmem:[#allocation8 + $0xb8] sm:$0xf0]  ;;  %v5981_v48 = vld [vmem:[#allocation8 + $0x110] sm:$0xf] }
 0x1cc   : > { %3076 = vmatpush.bf16.msrb.mxu2 %v5634_v21  ;;  %3050 = vmatpush.bf16.msrb.mxu0 %v5346_v34  ;;  %v5870_v21 = vor.u32 %v6696_v31, %v5869_v16  ;;  %v7791_v31 = vpack.c.bf16 %v7781_v1, %v7772_v28  ;;  %v5997_v28 = vld [vmem:[#allocation8 + $0x130] sm:$0xf]  ;;  %v6728_v1 = vld [vmem:[#allocation8 + $0x134] sm:$0xf0]  ;;  %v6711_v47 = vld [vmem:[#allocation8 + $0xb4] sm:$0xf] }
 0x1cd   : > { %3090 = vmatpush.bf16.msrb.mxu3 %v5762_v7  ;;  %3064 = vmatpush.bf16.msrb.mxu1 %v5474_v37  ;;  %v2788_v17 = vpop.f32.mrf.mxu1  ;;  %v6710_v7 = vld [vmem:[#allocation8 + $0xa4] sm:$0xf0]  ;;  %v6692_v37 = vld [vmem:[#allocation8 + $0x14] sm:$0xf0] }
 0x1ce   : > { %v2789_v34 = vadd.f32 %v2788_v17, %v2775_v22  ;;  %v5926_v35 = vor.u32 %v6710_v7, %v5925_v30  ;;  %v5854_v46 = vor.u32 %v6692_v37, %v5853_v36  ;;  %v6715_v22 = vld [vmem:[#allocation8 + $0xd4] sm:$0xf]  ;;  %v5998_v36 = vor.u32 %v6728_v1, %v5997_v28  ;;  %v6724_v49 = vld [vmem:[#allocation8 + $0x114] sm:$0xf0] }
 0x1cf   : > { %3051 = vmatmul.bf16.vlgmr.msrb.gmra.mxu0 %v7720_v23  ;;  %v2800_v23 = vpop.f32.mrf.mxu2  ;;  %v1365_v28 = vperm.slane %v7750_v6, 2  ;;  %v6723_v6 = vld [vmem:[#allocation8 + $0x114] sm:$0xf] }
 0x1d0   : > { %3493 = vmatpush.bf16.msra.mxu0 %v5902_v60  ;;  %3077 = vmatpush.bf16.msrb.mxu2 %v5618_v39  ;;  %v2801_v20 = vadd.f32 %v2800_v23, %v2787_v15  ;;  %v5917_v60 = vld [vmem:[#allocation8 + $0x90] sm:$0xf]  ;;  %v6732_v23 = vld [vmem:[#allocation8 + $0x154] sm:$0xf0]  ;;  %v6717_v15 = vld [vmem:[#allocation8 + $0xe4] sm:$0xf] }
 0x1d1   : > { %3507 = vmatpush.bf16.msra.mxu1 %v5966_v38  ;;  %3091 = vmatpush.bf16.msrb.mxu3 %v5746_v45  ;;  %v2816_v33 = vpop.f32.mrf.mxu3  ;;  %v6708_v38 = vld [vmem:[#allocation8 + $0x94] sm:$0xf0]  ;;  %v6029_v39 = vld [vmem:[#allocation8 + $0x170] sm:$0xf]  ;;  %v6014_v16 = vor.u32 %v6732_v23, %v6013_v13 }
 0x1d2   : > { %3065 = vmatmul.bf16.vlgmr.msrb.gmra.mxu1 %v7722_v27  ;;  %v5878_v27 = vor.u32 %v6698_v26, %v5877_v11  ;;  %v2828_v24 = vpop.f32.mrf.mxu0  ;;  %v2815_v32 = vadd.f32 %v2814_v14, %v2801_v20  ;;  %v6030_v44 = vor.u32 %v6736_v40, %v6029_v39  ;;  %v5918_v43 = vor.u32 %v6708_v38, %v5917_v60  ;;  %v6701_v11 = vld [vmem:[#allocation8 + $0x64] sm:$0xf]  ;;  %v5943_v38 = vld [vmem:[#allocation8 + $0xc8] sm:$0xf0] }
 0x1d3   : > { %v5970_v26 = vor.u32 %v6719_v61, %v5967_v63  ;;  %v5898_v17 = vor.u32 %v6701_v11, %v5895_v12  ;;  %v6713_v60 = vld [vmem:[#allocation8 + $0xc4] sm:$0xf]  ;;  %v6691_v63 = vld [vmem:[#allocation8 + $0x14] sm:$0xf] }
 0x1d4   : > { %3494 = vmatpush.bf16.msra.mxu0 %v5894_v55  ;;  %3078 = vmatpush.bf16.msrb.mxu2 %v5602_v58  ;;  %v2829_v42 = vadd.f32 %v2828_v24, %v2815_v32  ;;  %v6734_v55 = vld [vmem:[#allocation8 + $0x164] sm:$0xf0]  ;;  %v6005_v24 = vld [vmem:[#allocation8 + $0x140] sm:$0xf]  ;;  %v6735_v11 = vld [vmem:[#allocation8 + $0x174] sm:$0xf] }
 0x1d5   : > { %3508 = vmatpush.bf16.msra.mxu1 %v5958_v57  ;;  %3092 = vmatpush.bf16.msrb.mxu3 %v5730_v3  ;;  %v2842_v45 = vpop.f32.mrf.mxu1  ;;  %v6022_v3 = vor.u32 %v6734_v55, %v6021_v53  ;;  %v6693_v53 = vld [vmem:[#allocation8 + $0x24] sm:$0xf]  ;;  %v5863_v55 = vld [vmem:[#allocation8 + $0x28] sm:$0xf0] }
 0x1d6   : > { %v2843_v56 = vadd.f32 %v2842_v45, %v2829_v42  ;;  %v6695_v42 = vld [vmem:[#allocation8 + $0x34] sm:$0xf]  ;;  %v5989_v45 = vld [vmem:[#allocation8 + $0x120] sm:$0xf]  ;;  %v5866_v61 = vor.u32 %v6693_v53, %v5863_v55  ;;  %v6093_v53 = vld [vmem:[#allocation8 + $0x1f0] sm:$0xf] }
 0x1d7   : > { %3079 = vmatmul.bf16.vlgmr.msrb.gmra.mxu2 %v7726_v62  ;;  %v5861_v62 = vld [vmem:[#allocation8 + $0x20] sm:$0xf]  ;;  %v6752_v55 = vld [vmem:[#allocation8 + $0x1f4] sm:$0xf0] }
 0x1d8   : > { %3495 = vmatpush.bf16.msra.mxu0 %v5886_v8  ;;  %3093 = vmatmul.bf16.vlgmr.msrb.gmra.mxu3 %v7728_v0  ;;  %v2802_v0 = vpop.f32.mrf.mxu2  ;;  %v5862_v54 = vor.u32 %v6694_v2, %v5861_v62  ;;  %v5951_v2 = vld [vmem:[#allocation8 + $0xd8] sm:$0xf0] }
 0x1d9   : > { %3509 = vmatpush.bf16.msra.mxu1 %v5950_v10  ;;  %v2803_v41 = vadd.f32 %v2802_v0, %v2789_v34  ;;  %3521 = vmatpush.bf16.msra.mxu2 %v6030_v44  ;;  %v5906_v10 = vor.u32 %v6703_v51, %v5903_v52  ;;  %v5890_v0 = vor.u32 %v6699_v18, %v5887_v19  ;;  %v6697_v34 = vld [vmem:[#allocation8 + $0x44] sm:$0xf]  ;;  %v5871_v44 = vld [vmem:[#allocation8 + $0x38] sm:$0xf0] }
 0x1da   : > { %v2830_v58 = vpop.f32.mrf.mxu0  ;;  %v5874_v51 = vor.u32 %v6695_v42, %v5871_v44  ;;  %v5938_v52 = vor.u32 %v6711_v47, %v5935_v29 }
 0x1db   : > { %v2817_v57 = vadd.f32 %v2816_v33, %v2803_v41  ;;  %v5946_v41 = vor.u32 %v6713_v60, %v5943_v38  ;;  %v5991_v60 = vld [vmem:[#allocation8 + $0x128] sm:$0xf0] }
 0x1dc   : > { %3496 = vmatpush.bf16.msra.mxu0 %v5878_v27 }
 0x1dd   : > { %3510 = vmatpush.bf16.msra.mxu1 %v5942_v59  ;;  %v2870_v50 = vpop.f32.mrf.mxu3  ;;  %3522 = vmatpush.bf16.msra.mxu2 %v6022_v3  ;;  %v2831_v14 = vadd.f32 %v2830_v58, %v2817_v57  ;;  %v5959_v59 = vld [vmem:[#allocation8 + $0xe8] sm:$0xf0]  ;;  %v2844_v20 = vpop.f32.mrf.mxu1  ;;  %v6709_v57 = vld [vmem:[#allocation8 + $0xa4] sm:$0xf]  ;;  %v5855_v3 = vld [vmem:[#allocation8 + $0x18] sm:$0xf0] }
 0x1de   : > { %v5927_v58 = vld [vmem:[#allocation8 + $0xa8] sm:$0xf0]  ;;  %v5858_v13 = vor.u32 %v6691_v63, %v5855_v3  ;;  %v6085_v63 = vld [vmem:[#allocation8 + $0x1e0] sm:$0xf]  ;;  %v6750_v3 = vld [vmem:[#allocation8 + $0x1e4] sm:$0xf0] }
 0x1df   : > { %v2845_v62 = vadd.f32 %v2844_v20, %v2831_v14  ;;  %v6689_v14 = vld [vmem:[#allocation8 + $0x4] sm:$0xf] }
 0x1e0   : > { %3497 = vmatpush.bf16.msra.mxu0 %v5870_v21  ;;  %v2856_v4 = vpop.f32.mrf.mxu2  ;;  %v5962_v21 = vor.u32 %v6717_v15, %v5959_v59  ;;  %v6705_v15 = vld [vmem:[#allocation8 + $0x84] sm:$0xf]  ;;  %v5911_v59 = vld [vmem:[#allocation8 + $0x88] sm:$0xf0] }
 0x1e1   : > { %3511 = vmatpush.bf16.msra.mxu1 %v5934_v25  ;;  %v2857_v8 = vadd.f32 %v2856_v4, %v2843_v56  ;;  %3523 = vmatpush.bf16.msra.mxu2 %v6014_v16  ;;  %v6730_v25 = vld [vmem:[#allocation8 + $0x144] sm:$0xf0]  ;;  %v5982_v56 = vor.u32 %v6724_v49, %v5981_v48  ;;  %v5930_v4 = vor.u32 %v6709_v57, %v5927_v58  ;;  %v6733_v16 = vld [vmem:[#allocation8 + $0x164] sm:$0xf]  ;;  %v5975_v48 = vld [vmem:[#allocation8 + $0x108] sm:$0xf0] }
 0x1e2   : > { %v6006_v30 = vor.u32 %v6730_v25, %v6005_v24  ;;  %v6015_v24 = vld [vmem:[#allocation8 + $0x158] sm:$0xf0]  ;;  %v6094_v57 = vor.u32 %v6752_v55, %v6093_v53  ;;  %v6741_v55 = vld [vmem:[#allocation8 + $0x1a4] sm:$0xf] }
 0x1e3   : > { %v2871_v27 = vadd.f32 %v2870_v50, %v2857_v8  ;;  %v6707_v50 = vld [vmem:[#allocation8 + $0x94] sm:$0xf]  ;;  %v6722_v8 = vld [vmem:[#allocation8 + $0x104] sm:$0xf0] }
 0x1e4   : > { %3498 = vmatpush.bf16.msra.mxu0 %v5862_v54  ;;  %v5954_v54 = vor.u32 %v6715_v22, %v5951_v2  ;;  %v6731_v22 = vld [vmem:[#allocation8 + $0x154] sm:$0xf]  ;;  %v6729_v2 = vld [vmem:[#allocation8 + $0x144] sm:$0xf]  ;;  %3535 = vmatpush.bf16.msra.mxu3 %v6094_v57 }
 0x1e5   : > { %3512 = vmatpush.bf16.msra.mxu1 %v5926_v35  ;;  %4252 = vst [vmem:[%s7776_s27 + $0x8] sm:$0xff] %v2871_v27  ;;  %v2872_v33 = vpop.f32.mrf.mxu3  ;;  %v5879_v35 = vld [vmem:[#allocation8 + $0x48] sm:$0xf0]  ;;  %3524 = vmatpush.bf16.msra.mxu2 %v6006_v30  ;;  %v6018_v25 = vor.u32 %v6731_v22, %v6015_v24  ;;  %v6739_v57 = vld [vmem:[#allocation8 + $0x194] sm:$0xf] }
 0x1e6   : > { %v5882_v40 = vor.u32 %v6697_v34, %v5879_v35  ;;  %v6007_v30 = vld [vmem:[#allocation8 + $0x148] sm:$0xf0] }
 0x1e7   : > { %v6010_v1 = vor.u32 %v6729_v2, %v6007_v30  ;;  %v6742_v2 = vld [vmem:[#allocation8 + $0x1a4] sm:$0xf0] }
 0x1e8   : > { %3499 = vmatpush.bf16.msra.mxu0 %v5854_v46  ;;  %v2858_v7 = vpop.f32.mrf.mxu2  ;;  %v6726_v46 = vld [vmem:[#allocation8 + $0x124] sm:$0xf0] }
 0x1e9   : > { %3513 = vmatpush.bf16.msra.mxu1 %v5918_v43  ;;  %v2859_v32 = vadd.f32 %v2858_v7, %v2845_v62  ;;  %3525 = vmatpush.bf16.msra.mxu2 %v5998_v36  ;;  %v5990_v43 = vor.u32 %v6726_v46, %v5989_v45  ;;  %v6725_v36 = vld [vmem:[#allocation8 + $0x124] sm:$0xf] }
 0x1eb   : > { %v7795_v37 = vadd.f32 %v2872_v33, %v2859_v32  ;;  %v5999_v33 = vld [vmem:[#allocation8 + $0x138] sm:$0xf0] }
 0x1ec   : > { %3500 = vmatpush.bf16.msra.mxu0 %v5846_v5  ;;  %v5973_v5 = vld [vmem:[#allocation8 + $0x100] sm:$0xf]  ;;  %v2884_v19 = vpop.f32.mrf.mxu0 }
 0x1ed   : > { %3514 = vmatpush.bf16.msra.mxu1 %v5910_v9  ;;  %v7798_v39 = vpack.c.bf16 %v7795_v37, %v2871_v27  ;;  %4256 = vst [vmem:[%s7776_s27 + $0x28] sm:$0xff] %v7795_v37  ;;  %3526 = vmatpush.bf16.msra.mxu2 %v5990_v43  ;;  %v5919_v9 = vld [vmem:[#allocation8 + $0x98] sm:$0xf0]  ;;  %v5847_v27 = vld [vmem:[#allocation8 + $0x8] sm:$0xf0] }
 0x1ee   : > { %v5922_v23 = vor.u32 %v6707_v50, %v5919_v9  ;;  %v5850_v20 = vor.u32 %v6689_v14, %v5847_v27  ;;  %v6721_v43 = vld [vmem:[#allocation8 + $0x104] sm:$0xf] }
 0x1ef   : > { %3501 = vmatmul.bf16.vlgmr.msra.gmra.mxu0 %v7791_v31  ;;  %v2898_v62 = vpop.f32.mrf.mxu1 }
 0x1f0   : > { %3549 = vmatpush.bf16.msrb.mxu0 %v5906_v10  ;;  %3515 = vmatmul.bf16.vlgmr.msra.gmra.mxu1 %v7798_v39  ;;  %v5974_v10 = vor.u32 %v6722_v8, %v5973_v5  ;;  %v6086_v5 = vor.u32 %v6750_v3, %v6085_v63  ;;  %v6047_v63 = vld [vmem:[#allocation8 + $0x198] sm:$0xf0] }
 0x1f1   : > { %3563 = vmatpush.bf16.msrb.mxu1 %v5970_v26  ;;  %3527 = vmatpush.bf16.msra.mxu2 %v5982_v56  ;;  %v6031_v26 = vld [vmem:[#allocation8 + $0x178] sm:$0xf0] }
 0x1f2   : > { %v6034_v12 = vor.u32 %v6735_v11, %v6031_v26  ;;  %3536 = vmatpush.bf16.msra.mxu3 %v6086_v5 }
 0x1f4   : > { %3550 = vmatpush.bf16.msrb.mxu0 %v5898_v17  ;;  %v6023_v17 = vld [vmem:[#allocation8 + $0x168] sm:$0xf0]  ;;  %v2886_v7 = vpop.f32.mrf.mxu0 }
 0x1f5   : > { %3564 = vmatpush.bf16.msrb.mxu1 %v5962_v21  ;;  %3528 = vmatpush.bf16.msra.mxu2 %v5974_v10  ;;  %v6026_v18 = vor.u32 %v6733_v16, %v6023_v17  ;;  %v5914_v21 = vor.u32 %v6705_v15, %v5911_v59  ;;  %v2887_v45 = vadd.f32 %v2886_v7, %v1365_v28  ;;  %v6069_v15 = vld [vmem:[#allocation8 + $0x1c0] sm:$0xf]  ;;  %v6746_v59 = vld [vmem:[#allocation8 + $0x1c4] sm:$0xf0] }
 0x1f6   : > { %v6070_v17 = vor.u32 %v6746_v59, %v6069_v15 }
 0x1f7   : > { %v2900_v42 = vpop.f32.mrf.mxu1 }
 0x1f8   : > { %3551 = vmatpush.bf16.msrb.mxu0 %v5890_v0  ;;  %v6727_v0 = vld [vmem:[#allocation8 + $0x134] sm:$0xf]  ;;  %v2901_v49 = vadd.f32 %v2900_v42, %v2887_v45  ;;  %v7005_v45 = vld [vmem:[#allocation16 + $0x8] sm:$0xf] }
 0x1f9   : > { %3565 = vmatpush.bf16.msrb.mxu1 %v5954_v54  ;;  %3577 = vmatpush.bf16.msrb.mxu2 %v6034_v12  ;;  %v2885_v54 = vadd.f32 %v2884_v19, %v1365_v28  ;;  %v6002_v35 = vor.u32 %v6727_v0, %v5999_v33  ;;  %v6077_v12 = vld [vmem:[#allocation8 + $0x1d0] sm:$0xf]  ;;  %v6744_v19 = vld [vmem:[#allocation8 + $0x1b4] sm:$0xf0]  ;;  %v6738_v0 = vld [vmem:[#allocation8 + $0x184] sm:$0xf0] }
 0x1fa   : > { %v2912_v32 = vpop.f32.mrf.mxu2  ;;  %v6045_v28 = vld [vmem:[#allocation8 + $0x190] sm:$0xf]  ;;  %v6747_v42 = vld [vmem:[#allocation8 + $0x1d4] sm:$0xf] }
 0x1fb   : > { %v2899_v38 = vadd.f32 %v2898_v62, %v2885_v54  ;;  %v6053_v62 = vld [vmem:[#allocation8 + $0x1a0] sm:$0xf]  ;;  %v6751_v54 = vld [vmem:[#allocation8 + $0x1f4] sm:$0xf] }
 0x1fc   : > { %3552 = vmatpush.bf16.msrb.mxu0 %v5882_v40  ;;  %v5994_v40 = vor.u32 %v6725_v36, %v5991_v60  ;;  %v6054_v30 = vor.u32 %v6742_v2, %v6053_v62  ;;  %v6749_v36 = vld [vmem:[#allocation8 + $0x1e4] sm:$0xf]  ;;  %v6087_v60 = vld [vmem:[#allocation8 + $0x1e8] sm:$0xf0] }
 0x1fd   : > { %3566 = vmatpush.bf16.msrb.mxu1 %v5946_v41  ;;  %3578 = vmatpush.bf16.msrb.mxu2 %v6026_v18  ;;  %v2926_v34 = vpop.f32.mrf.mxu3  ;;  %v5983_v41 = vld [vmem:[#allocation8 + $0x118] sm:$0xf0]  ;;  %v6061_v18 = vld [vmem:[#allocation8 + $0x1b0] sm:$0xf] }
 0x1fe   : > { %v6062_v22 = vor.u32 %v6744_v19, %v6061_v18 }
 0x200   : > { %3553 = vmatpush.bf16.msrb.mxu0 %v5874_v51 }
 0x201   : > { %3567 = vmatpush.bf16.msrb.mxu1 %v5938_v52  ;;  %3579 = vmatpush.bf16.msrb.mxu2 %v6018_v25  ;;  %v5978_v52 = vor.u32 %v6721_v43, %v5975_v48  ;;  %v6743_v48 = vld [vmem:[#allocation8 + $0x1b4] sm:$0xf] }
 0x202   : > { %v2914_v46 = vpop.f32.mrf.mxu2 }
 0x203   : > { %v2915_v58 = vadd.f32 %v2914_v46, %v2901_v49  ;;  %v1366_v46 = vperm.slane %v7005_v45, 3  ;;  %v6063_v49 = vld [vmem:[#allocation8 + $0x1b8] sm:$0xf0] }
 0x204   : > { %3554 = vmatpush.bf16.msrb.mxu0 %v5866_v61  ;;  %v6066_v53 = vor.u32 %v6743_v48, %v6063_v49  ;;  %v6143_v45 = vld [vmem:[#allocation10 + $0x58] sm:$0xf0]  ;;  %v6761_v48 = vld [vmem:[#allocation10 + $0x44] sm:$0xf] }
 0x205   : > { %3568 = vmatpush.bf16.msrb.mxu1 %v5930_v4  ;;  %3580 = vmatpush.bf16.msrb.mxu2 %v6010_v1  ;;  %v2928_v29 = vpop.f32.mrf.mxu3  ;;  %v6740_v1 = vld [vmem:[#allocation8 + $0x194] sm:$0xf0] }
 0x206   : > { %v2929_v8 = vadd.f32 %v2928_v29, %v2915_v58  ;;  %v6046_v7 = vor.u32 %v6740_v1, %v6045_v28 }
 0x208   : > { %3555 = vmatpush.bf16.msrb.mxu0 %v5858_v13  ;;  %v6748_v13 = vld [vmem:[#allocation8 + $0x1d4] sm:$0xf0] }
 0x209   : > { %3569 = vmatpush.bf16.msrb.mxu1 %v5922_v23  ;;  %3581 = vmatpush.bf16.msrb.mxu2 %v6002_v35  ;;  %v6078_v23 = vor.u32 %v6748_v13, %v6077_v12  ;;  %v6737_v12 = vld [vmem:[#allocation8 + $0x184] sm:$0xf]  ;;  %v6039_v13 = vld [vmem:[#allocation8 + $0x188] sm:$0xf0] }
 0x20b   : > { %3537 = vmatpush.bf16.msra.mxu3 %v6078_v23 }
 0x20c   : > { %3556 = vmatpush.bf16.msrb.mxu0 %v5850_v20  ;;  %v2940_v44 = vpop.f32.mrf.mxu0 }
 0x20d   : > { %3570 = vmatpush.bf16.msrb.mxu1 %v5914_v21  ;;  %3582 = vmatpush.bf16.msrb.mxu2 %v5994_v40 }
 0x20f   : > { %3557 = vmatmul.bf16.vlgmr.msrb.gmra.mxu0 %v7791_v31  ;;  %v2913_v31 = vadd.f32 %v2912_v32, %v2899_v38  ;;  %v2954_v56 = vpop.f32.mrf.mxu1  ;;  %3538 = vmatpush.bf16.msra.mxu3 %v6070_v17  ;;  %v6037_v32 = vld [vmem:[#allocation8 + $0x180] sm:$0xf]  ;;  %v6090_v38 = vor.u32 %v6749_v36, %v6087_v60  ;;  %v6766_v60 = vld [vmem:[#allocation10 + $0x64] sm:$0xf0] }
 0x210   : > { %3571 = vmatmul.bf16.vlgmr.msrb.gmra.mxu1 %v7798_v39  ;;  %v5986_v39 = vor.u32 %v6723_v6, %v5983_v41  ;;  %v6038_v33 = vor.u32 %v6738_v0, %v6037_v32  ;;  %v6079_v6 = vld [vmem:[#allocation8 + $0x1d8] sm:$0xf0]  ;;  %v6157_v0 = vld [vmem:[#allocation10 + $0x70] sm:$0xf]  ;;  %v6149_v36 = vld [vmem:[#allocation10 + $0x60] sm:$0xf] }
 0x211   : > { %v2927_v47 = vadd.f32 %v2926_v34, %v2913_v31  ;;  %v6095_v34 = vld [vmem:[#allocation8 + $0x1f8] sm:$0xf0]  ;;  %v6082_v41 = vor.u32 %v6747_v42, %v6079_v6  ;;  %v6151_v42 = vld [vmem:[#allocation10 + $0x68] sm:$0xf0]  ;;  %v6150_v6 = vor.u32 %v6766_v60, %v6149_v36  ;;  %v6778_v36 = vld [vmem:[#allocation10 + $0xc4] sm:$0xf0] }
 0x212   : > { %3583 = vmatpush.bf16.msrb.mxu2 %v5986_v39  ;;  %v6098_v35 = vor.u32 %v6751_v54, %v6095_v34  ;;  %v6071_v39 = vld [vmem:[#allocation8 + $0x1c8] sm:$0xf0]  ;;  %v6767_v54 = vld [vmem:[#allocation10 + $0x74] sm:$0xf]  ;;  %v6753_v60 = vld [vmem:[#allocation10 + $0x4] sm:$0xf] }
 0x213   : > { %v2941_v51 = vadd.f32 %v2940_v44, %v2927_v47  ;;  %3539 = vmatpush.bf16.msra.mxu3 %v6062_v22  ;;  %v6745_v44 = vld [vmem:[#allocation8 + $0x1c4] sm:$0xf] }
 0x214   : > { %v2942_v4 = vpop.f32.mrf.mxu0  ;;  %v6074_v47 = vor.u32 %v6745_v44, %v6071_v39  ;;  %v6764_v44 = vld [vmem:[#allocation10 + $0x54] sm:$0xf0]  ;;  %v6763_v39 = vld [vmem:[#allocation10 + $0x54] sm:$0xf] }
 0x215   : > { %v2955_v61 = vadd.f32 %v2954_v56, %v2941_v51  ;;  %v2943_v11 = vadd.f32 %v2942_v4, %v2929_v8  ;;  %v6055_v56 = vld [vmem:[#allocation8 + $0x1a8] sm:$0xf0] }
 0x216   : > { %3584 = vmatpush.bf16.msrb.mxu2 %v5978_v52 }
 0x217   : > { %v2956_v14 = vpop.f32.mrf.mxu1  ;;  %3540 = vmatpush.bf16.msra.mxu3 %v6054_v30 }
 0x218   : > { %v2957_v27 = vadd.f32 %v2956_v14, %v2943_v11 }
 0x21a   : > { %v2968_v50 = vpop.f32.mrf.mxu2 }
 0x21b   : > { %v2969_v9 = vadd.f32 %v2968_v50, %v2955_v61  ;;  %3541 = vmatpush.bf16.msra.mxu3 %v6046_v7  ;;  %v6058_v61 = vor.u32 %v6741_v55, %v6055_v56  ;;  %v6050_v50 = vor.u32 %v6739_v57, %v6047_v63  ;;  %v6760_v55 = vld [vmem:[#allocation10 + $0x34] sm:$0xf0]  ;;  %v6221_v56 = vld [vmem:[#allocation10 + $0xf0] sm:$0xf]  ;;  %v6127_v63 = vld [vmem:[#allocation10 + $0x38] sm:$0xf0] }
 0x21d   : > { %v2982_v10 = vpop.f32.mrf.mxu3 }
 0x21e   : > { %v7806_v26 = vadd.f32 %v2982_v10, %v2969_v9 }
 0x21f   : > { %3542 = vmatpush.bf16.msra.mxu3 %v6038_v33  ;;  %v6768_v33 = vld [vmem:[#allocation10 + $0x74] sm:$0xf0] }
 0x220   : > { %4253 = vst [vmem:[%s7776_s27 + $0x10] sm:$0xff] %v7806_v26  ;;  %v6158_v34 = vor.u32 %v6768_v33, %v6157_v0  ;;  %v6101_v33 = vld [vmem:[#allocation10] sm:$0xf] }
 0x222   : > { %v2970_v16 = vpop.f32.mrf.mxu2  ;;  %3809 = vmatpush.bf16.msra.mxu0 %v6158_v34  ;;  %v6197_v34 = vld [vmem:[#allocation10 + $0xc0] sm:$0xf] }
 0x223   : > { %v2971_v20 = vadd.f32 %v2970_v16, %v2957_v27  ;;  %3591 = vmatpush.bf16.msrb.mxu3 %v6098_v35  ;;  %v6042_v27 = vor.u32 %v6737_v12, %v6039_v13  ;;  %v6159_v35 = vld [vmem:[#allocation10 + $0x78] sm:$0xf0]  ;;  %v6782_v13 = vld [vmem:[#allocation10 + $0xe4] sm:$0xf0] }
 0x225   : > { %v2984_v21 = vpop.f32.mrf.mxu3 }
 0x226   : > { %v7810_v24 = vadd.f32 %v2984_v21, %v2971_v20  ;;  %3810 = vmatpush.bf16.msra.mxu0 %v6150_v6  ;;  %v6777_v6 = vld [vmem:[#allocation10 + $0xc4] sm:$0xf] }
 0x227   : > { %3592 = vmatpush.bf16.msrb.mxu3 %v6090_v38  ;;  %v6162_v38 = vor.u32 %v6767_v54, %v6159_v35  ;;  %v6754_v54 = vld [vmem:[#allocation10 + $0x4] sm:$0xf0] }
 0x228   : > { %4257 = vst [vmem:[%s7776_s27 + $0x30] sm:$0xff] %v7810_v24  ;;  %v3101_v25 = vpack.c.bf16 %v7810_v24, %v7806_v26  ;;  %v6102_v35 = vor.u32 %v6754_v54, %v6101_v33 }
 0x22a   : > { %3529 = vmatmul.bf16.vlgmr.msra.gmra.mxu2 %v3101_v25 }
 0x22b   : > { %3593 = vmatpush.bf16.msrb.mxu3 %v6082_v41  ;;  %3837 = vmatpush.bf16.msra.mxu2 %v6162_v38  ;;  %v6103_v38 = vld [vmem:[#allocation10 + $0x8] sm:$0xf0] }
 0x22c   : > { %v2996_v40 = vpop.f32.mrf.mxu0 }
 0x22d   : > { %v2997_v51 = vadd.f32 %v2996_v40, %v1366_v46  ;;  %v6765_v40 = vld [vmem:[#allocation10 + $0x64] sm:$0xf] }
 0x22e   : > { %v6154_v41 = vor.u32 %v6765_v40, %v6151_v42  ;;  %v6198_v40 = vor.u32 %v6778_v36, %v6197_v34  ;;  %v6106_v42 = vor.u32 %v6753_v60, %v6103_v38 }
 0x22f   : > { %v3010_v31 = vpop.f32.mrf.mxu1  ;;  %3594 = vmatpush.bf16.msrb.mxu3 %v6074_v47  ;;  %v6146_v47 = vor.u32 %v6763_v39, %v6143_v45  ;;  %v6189_v39 = vld [vmem:[#allocation10 + $0xb0] sm:$0xf]  ;;  %v6776_v45 = vld [vmem:[#allocation10 + $0xb4] sm:$0xf0] }
 0x230   : > { %v3011_v58 = vadd.f32 %v3010_v31, %v2997_v51  ;;  %v6141_v31 = vld [vmem:[#allocation10 + $0x50] sm:$0xf]  ;;  %3838 = vmatpush.bf16.msra.mxu2 %v6154_v41  ;;  %v6135_v51 = vld [vmem:[#allocation10 + $0x48] sm:$0xf0] }
 0x231   : > { %v6199_v41 = vld [vmem:[#allocation10 + $0xc8] sm:$0xf0] }
 0x233   : > { %3595 = vmatpush.bf16.msrb.mxu3 %v6066_v53  ;;  %v6125_v53 = vld [vmem:[#allocation10 + $0x30] sm:$0xf] }
 0x234   : > { %v2998_v29 = vpop.f32.mrf.mxu0  ;;  %3839 = vmatpush.bf16.msra.mxu2 %v6146_v47  ;;  %v6126_v57 = vor.u32 %v6760_v55, %v6125_v53  ;;  %v6190_v47 = vor.u32 %v6776_v45, %v6189_v39 }
 0x235   : > { %v2999_v8 = vadd.f32 %v2998_v29, %v1366_v46  ;;  %v6142_v46 = vor.u32 %v6764_v44, %v6141_v31  ;;  %v6133_v29 = vld [vmem:[#allocation10 + $0x40] sm:$0xf]  ;;  %v6202_v44 = vor.u32 %v6777_v6, %v6199_v41 }
 0x237   : > { %v3012_v3 = vpop.f32.mrf.mxu1  ;;  %3596 = vmatpush.bf16.msrb.mxu3 %v6058_v61  ;;  %3811 = vmatpush.bf16.msra.mxu0 %v6142_v46  ;;  %v6759_v61 = vld [vmem:[#allocation10 + $0x34] sm:$0xf] }
 0x238   : > { %v3013_v23 = vadd.f32 %v3012_v3, %v2999_v8  ;;  %v6775_v46 = vld [vmem:[#allocation10 + $0xb4] sm:$0xf] }
 0x23a   : > { %3585 = vmatmul.bf16.vlgmr.msrb.gmra.mxu2 %v3101_v25  ;;  %v3024_v43 = vpop.f32.mrf.mxu2 }
 0x23b   : > { %v3025_v4 = vadd.f32 %v3024_v43, %v3011_v58  ;;  %3597 = vmatpush.bf16.msrb.mxu3 %v6050_v50  ;;  %v6762_v43 = vld [vmem:[#allocation10 + $0x44] sm:$0xf0]  ;;  %v6784_v58 = vld [vmem:[#allocation10 + $0xf4] sm:$0xf0]  ;;  %v6783_v50 = vld [vmem:[#allocation10 + $0xf4] sm:$0xf] }
 0x23c   : > { %v6134_v49 = vor.u32 %v6762_v43, %v6133_v29  ;;  %v6222_v3 = vor.u32 %v6784_v58, %v6221_v56  ;;  %v6191_v29 = vld [vmem:[#allocation10 + $0xb8] sm:$0xf0]  ;;  %v6183_v56 = vld [vmem:[#allocation10 + $0xa8] sm:$0xf0] }
 0x23d   : > { %v3038_v52 = vpop.f32.mrf.mxu3  ;;  %v6194_v43 = vor.u32 %v6775_v46, %v6191_v29 }
 0x23e   : > { %v3039_v10 = vadd.f32 %v3038_v52, %v3025_v4  ;;  %v6138_v52 = vor.u32 %v6761_v48, %v6135_v51  ;;  %3812 = vmatpush.bf16.msra.mxu0 %v6134_v49  ;;  %v6130_v4 = vor.u32 %v6759_v61, %v6127_v63  ;;  %3823 = vmatpush.bf16.msra.mxu1 %v6222_v3  ;;  %v6181_v49 = vld [vmem:[#allocation10 + $0xa0] sm:$0xf]  ;;  %v6774_v51 = vld [vmem:[#allocation10 + $0xa4] sm:$0xf0]  ;;  %v6173_v61 = vld [vmem:[#allocation10 + $0x90] sm:$0xf] }
 0x23f   : > { %3598 = vmatpush.bf16.msrb.mxu3 %v6042_v27  ;;  %v6182_v55 = vor.u32 %v6774_v51, %v6181_v49  ;;  %v6772_v63 = vld [vmem:[#allocation10 + $0x94] sm:$0xf0]  ;;  %v6771_v3 = vld [vmem:[#allocation10 + $0x94] sm:$0xf]  ;;  %v6790_v51 = vld [vmem:[#allocation11 + $0x28] sm:$0xff] }
 0x240   : > { %3840 = vmatpush.bf16.msra.mxu2 %v6138_v52  ;;  %v6773_v52 = vld [vmem:[#allocation10 + $0xa4] sm:$0xf]  ;;  %v6800_v49 = vld [vmem:[#allocation11 + $0x78] sm:$0xff] }
 0x241   : > { %v6186_v58 = vor.u32 %v6773_v52, %v6183_v56  ;;  %v6799_v52 = vld [vmem:[#allocation11 + $0x70] sm:$0xff]  ;;  %v6788_v56 = vld [vmem:[#allocation11 + $0x18] sm:$0xff] }
 0x242   : > { %v3026_v9 = vpop.f32.mrf.mxu2  ;;  %3813 = vmatpush.bf16.msra.mxu0 %v6126_v57  ;;  %v3167_v57 = vld [vmem:[#allocation16 + $0xc] sm:$0x3] }
 0x243   : > { %v3027_v59 = vadd.f32 %v3026_v9, %v3013_v23  ;;  %v6117_v9 = vld [vmem:[#allocation10 + $0x20] sm:$0xf]  ;;  %v6757_v23 = vld [vmem:[#allocation10 + $0x24] sm:$0xf] }
 0x244   : > { %3841 = vmatpush.bf16.msra.mxu2 %v6130_v4  ;;  %v3169_v4 = vperm.slane %v3167_v57, 0 }
 0x245   : > { %v3040_v11 = vpop.f32.mrf.mxu3 }
 0x246   : > { %v3041_v19 = vadd.f32 %v3040_v11, %v3027_v59  ;;  %v6213_v11 = vld [vmem:[#allocation10 + $0xe0] sm:$0xf]  ;;  %v6781_v59 = vld [vmem:[#allocation10 + $0xe4] sm:$0xf] }
 0x247   : > { %v6214_v27 = vor.u32 %v6782_v13, %v6213_v11  ;;  %v6770_v11 = vld [vmem:[#allocation10 + $0x84] sm:$0xf0] }
 0x249   : > { %3824 = vmatpush.bf16.msra.mxu1 %v6214_v27 }
 0x24c   : > { %v3052_v5 = vpop.f32.mrf.mxu0 }
 0x24d   : > { %v3053_v14 = vadd.f32 %v3052_v5, %v3039_v10  ;;  %v6223_v5 = vld [vmem:[#allocation10 + $0xf8] sm:$0xf0]  ;;  %v6758_v10 = vld [vmem:[#allocation10 + $0x24] sm:$0xf0] }
 0x24e   : > { %v6226_v8 = vor.u32 %v6783_v50, %v6223_v5  ;;  %v6118_v12 = vor.u32 %v6758_v10, %v6117_v9  ;;  %v6174_v5 = vor.u32 %v6772_v63, %v6173_v61  ;;  %v6165_v10 = vld [vmem:[#allocation10 + $0x80] sm:$0xf]  ;;  %v6787_v61 = vld [vmem:[#allocation11 + $0x10] sm:$0xff] }
 0x24f   : > { %v3066_v15 = vpop.f32.mrf.mxu1  ;;  %v6166_v27 = vor.u32 %v6770_v11, %v6165_v10 }
 0x250   : > { %v3067_v16 = vadd.f32 %v3066_v15, %v3053_v14  ;;  %v6119_v14 = vld [vmem:[#allocation10 + $0x28] sm:$0xf0]  ;;  %3814 = vmatpush.bf16.msra.mxu0 %v6118_v12  ;;  %v6769_v12 = vld [vmem:[#allocation10 + $0x84] sm:$0xf] }
 0x251   : > { %v6122_v15 = vor.u32 %v6757_v23, %v6119_v14 }
 0x253   : > { %3842 = vmatpush.bf16.msra.mxu2 %v6122_v15  ;;  %v6167_v15 = vld [vmem:[#allocation10 + $0x88] sm:$0xf0] }
 0x254   : > { %v3054_v17 = vpop.f32.mrf.mxu0 }
 0x255   : > { %v3055_v22 = vadd.f32 %v3054_v17, %v3041_v19  ;;  %v6756_v19 = vld [vmem:[#allocation10 + $0x14] sm:$0xf0] }
 0x257   : > { %v3068_v62 = vpop.f32.mrf.mxu1 }
 0x258   : > { %v3069_v2 = vadd.f32 %v3068_v62, %v3055_v22  ;;  %v6780_v22 = vld [vmem:[#allocation10 + $0xd4] sm:$0xf0]  ;;  %v6755_v62 = vld [vmem:[#allocation10 + $0x14] sm:$0xf] }
 0x25a   : > { %v3080_v18 = vpop.f32.mrf.mxu2 }
 0x25b   : > { %v3081_v20 = vadd.f32 %v3080_v18, %v3067_v16  ;;  %v3094_v21 = vpop.f32.mrf.mxu3  ;;  %v6215_v16 = vld [vmem:[#allocation10 + $0xe8] sm:$0xf0]  ;;  %v6109_v18 = vld [vmem:[#allocation10 + $0x10] sm:$0xf] }
 0x25c   : > { %v6218_v17 = vor.u32 %v6781_v59, %v6215_v16  ;;  %v6170_v59 = vor.u32 %v6769_v12, %v6167_v15 }
 0x25d   : > { %v7816_v25 = vadd.f32 %v3094_v21, %v3081_v20  ;;  %v6205_v20 = vld [vmem:[#allocation10 + $0xd0] sm:$0xf]  ;;  %v6110_v21 = vor.u32 %v6756_v19, %v6109_v18 }
 0x25f   : > { %4254 = vst [vmem:[%s7776_s27 + $0x18] sm:$0xff] %v7816_v25  ;;  %3815 = vmatpush.bf16.msra.mxu0 %v6110_v21 }
 0x262   : > { %v3082_v30 = vpop.f32.mrf.mxu2 }
 0x263   : > { %v3083_v28 = vadd.f32 %v3082_v30, %v3069_v2  ;;  %v3096_v1 = vpop.f32.mrf.mxu3  ;;  %v6111_v2 = vld [vmem:[#allocation10 + $0x18] sm:$0xf0]  ;;  %v6206_v30 = vor.u32 %v6780_v22, %v6205_v20  ;;  %3816 = vmatpush.bf16.msra.mxu0 %v6102_v35 }
 0x265   : > { %v7820_v7 = vadd.f32 %v3096_v1, %v3083_v28  ;;  %v6114_v28 = vor.u32 %v6755_v62, %v6111_v2  ;;  %v6779_v1 = vld [vmem:[#allocation10 + $0xd4] sm:$0xf]  ;;  %3825 = vmatpush.bf16.msra.mxu1 %v6206_v30 }
 0x267   : > { %4258 = vst [vmem:[%s7776_s27 + $0x38] sm:$0xff] %v7820_v7  ;;  %v3102_v32 = vpack.c.bf16 %v7820_v7, %v7816_v25  ;;  %3843 = vmatpush.bf16.msra.mxu2 %v6114_v28  ;;  %v3170_v28 = vperm.slane %v3167_v57, 1  ;;  %v6797_v57 = vld [vmem:[#allocation11 + $0x60] sm:$0xff] }
 0x269   : > { %3543 = vmatmul.bf16.vlgmr.msra.gmra.mxu3 %v3102_v32  ;;  %3826 = vmatpush.bf16.msra.mxu1 %v6198_v40 }
 0x26a   : > { %3851 = vmatpush.bf16.msra.mxu3 %v6226_v8  ;;  %v6175_v8 = vld [vmem:[#allocation10 + $0x98] sm:$0xf0] }
 0x26b   : > { %3844 = vmatpush.bf16.msra.mxu2 %v6106_v42  ;;  %v6178_v9 = vor.u32 %v6771_v3, %v6175_v8  ;;  %v6795_v8 = vld [vmem:[#allocation11 + $0x50] sm:$0xff] }
 0x26c   : > { %v3502_v31 = vpop.f32.mrf.mxu0 }
 0x26d   : > { %3827 = vmatpush.bf16.msra.mxu1 %v6190_v47  ;;  %v3516_v53 = vpop.f32.mrf.mxu1  ;;  %v3503_v13 = vadd.f32 %v3502_v31, %v3169_v4 }
 0x26e   : > { %3852 = vmatpush.bf16.msra.mxu3 %v6218_v17 }
 0x26f   : > { %v3517_v16 = vadd.f32 %v3516_v53, %v3503_v13  ;;  %v6789_v53 = vld [vmem:[#allocation11 + $0x20] sm:$0xff] }
 0x270   : > { %v6785_v13 = vld [vmem:[#allocation11] sm:$0xff] }
 0x271   : > { %3828 = vmatpush.bf16.msra.mxu1 %v6182_v55  ;;  %v6798_v55 = vld [vmem:[#allocation11 + $0x68] sm:$0xff] }
 0x274   : > { %v3504_v50 = vpop.f32.mrf.mxu0 }
 0x275   : > { %3829 = vmatpush.bf16.msra.mxu1 %v6174_v5  ;;  %v3518_v17 = vpop.f32.mrf.mxu1  ;;  %v3505_v18 = vadd.f32 %v3504_v50, %v3169_v4  ;;  %v6796_v4 = vld [vmem:[#allocation11 + $0x58] sm:$0xff]  ;;  %v6786_v50 = vld [vmem:[#allocation11 + $0x8] sm:$0xff] }
 0x277   : > { %v3519_v21 = vadd.f32 %v3518_v17, %v3505_v18 }
 0x279   : > { %3599 = vmatmul.bf16.vlgmr.msrb.gmra.mxu3 %v3102_v32  ;;  %v6207_v32 = vld [vmem:[#allocation10 + $0xd8] sm:$0xf0]  ;;  %3830 = vmatpush.bf16.msra.mxu1 %v6166_v27 }
 0x27a   : > { %v6210_v0 = vor.u32 %v6779_v1, %v6207_v32 }
 0x27c   : > { %3853 = vmatpush.bf16.msra.mxu3 %v6210_v0 }
 0x27d   : > { %4045 = vmatpush.bf16.msrb.mxu1 %v6800_v49 }
 0x280   : > { %3854 = vmatpush.bf16.msra.mxu3 %v6202_v44 }
 0x281   : > { %4046 = vmatpush.bf16.msrb.mxu1 %v6799_v52  ;;  %v7008_v52 = vld [vmem:[%s7776_s27 + $0x8] sm:$0xff] }
 0x284   : > { %3855 = vmatpush.bf16.msra.mxu3 %v6194_v43  ;;  %v6792_v43 = vld [vmem:[#allocation11 + $0x38] sm:$0xff] }
 0x285   : > { %4031 = vmatpush.bf16.msrb.mxu0 %v6792_v43  ;;  %4047 = vmatpush.bf16.msrb.mxu1 %v6798_v55 }
 0x288   : > { %3856 = vmatpush.bf16.msra.mxu3 %v6186_v58  ;;  %v3643_v58 = vld [vmem:[#allocation16 + $0xe] sm:$0x3] }
 0x289   : > { %4048 = vmatpush.bf16.msrb.mxu1 %v6797_v57  ;;  %v3645_v3 = vperm.slane %v3643_v58, 0  ;;  %v3646_v11 = vperm.slane %v3643_v58, 1  ;;  %v3888_v57 = vsub.f32 %v7795_v37, %v7820_v7  ;;  %v6801_v37 = vld [vmem:[#allocation13] sm:$0xff] }
 0x28c   : > { %3857 = vmatpush.bf16.msra.mxu3 %v6178_v9  ;;  %v3558_v19 = vpop.f32.mrf.mxu0 }
 0x28d   : > { %v3572_v1 = vpop.f32.mrf.mxu1  ;;  %v3559_v0 = vadd.f32 %v3558_v19, %v3170_v28  ;;  %4049 = vmatpush.bf16.msrb.mxu1 %v6796_v4  ;;  %v6793_v19 = vld [vmem:[#allocation11 + $0x40] sm:$0xff] }
 0x28f   : > { %v3573_v60 = vadd.f32 %v3572_v1, %v3559_v0 }
 0x290   : > { %3858 = vmatpush.bf16.msra.mxu3 %v6170_v59 }
 0x291   : > { %4050 = vmatpush.bf16.msrb.mxu1 %v6795_v8  ;;  %v6805_v8 = vld [vmem:[#allocation13 + $0x20] sm:$0xff] }
 0x294   : > { %v3560_v33 = vpop.f32.mrf.mxu0 }
 0x295   : > { %v3561_v36 = vadd.f32 %v3560_v33, %v3170_v28  ;;  %v3574_v40 = vpop.f32.mrf.mxu1  ;;  %v6808_v28 = vld [vmem:[#allocation13 + $0x38] sm:$0xff]  ;;  %v6807_v33 = vld [vmem:[#allocation13 + $0x30] sm:$0xff] }
 0x296   : > { %4130 = vmatpush.bf16.msrb.mxu2 %v6808_v28  ;;  %v6971_v28 = vld [vmem:[#allocation16 + $0x11] ss:$0 sm:$0xff] }
 0x297   : > { %v3575_v41 = vadd.f32 %v3574_v40, %v3561_v36 }
 0x29a   : > { %4131 = vmatpush.bf16.msrb.mxu2 %v6807_v33 }
 0x2ad   : > { %v3530_v48 = vpop.f32.mrf.mxu2 }
 0x2ae   : > { %v3531_v20 = vadd.f32 %v3530_v48, %v3517_v16  ;;  %v6791_v48 = vld [vmem:[#allocation11 + $0x30] sm:$0xff] }
 0x2af   : > { %4032 = vmatpush.bf16.msrb.mxu0 %v6791_v48 }
 0x2b3   : > { %4033 = vmatpush.bf16.msrb.mxu0 %v6790_v51 }
 0x2b5   : > { %v3532_v23 = vpop.f32.mrf.mxu2 }
 0x2b6   : > { %v3533_v62 = vadd.f32 %v3532_v23, %v3519_v21 }
 0x2b7   : > { %4034 = vmatpush.bf16.msrb.mxu0 %v6789_v53  ;;  %v3886_v53 = vsub.f32 %v7008_v52, %v7816_v25 }
 0x2bb   : > { %4035 = vmatpush.bf16.msrb.mxu0 %v6788_v56 }
 0x2bd   : > { %v3586_v32 = vpop.f32.mrf.mxu2 }
 0x2be   : > { %v3587_v42 = vadd.f32 %v3586_v32, %v3573_v60  ;;  %v6806_v60 = vld [vmem:[#allocation13 + $0x28] sm:$0xff] }
 0x2bf   : > { %4036 = vmatpush.bf16.msrb.mxu0 %v6787_v61  ;;  %4132 = vmatpush.bf16.msrb.mxu2 %v6806_v60 }
 0x2c3   : > { %4037 = vmatpush.bf16.msrb.mxu0 %v6786_v50  ;;  %4133 = vmatpush.bf16.msrb.mxu2 %v6805_v8 }
 0x2c5   : > { %v3588_v6 = vpop.f32.mrf.mxu2 }
 0x2c6   : > { %v3589_v44 = vadd.f32 %v3588_v6, %v3575_v41 }
 0x2c7   : > { %4038 = vmatpush.bf16.msrb.mxu0 %v6785_v13  ;;  %v6970_v13 = vld [vmem:[#allocation16 + $0x10] ss:$0 sm:$0xff] }
 0x2ec   : > { %v3544_v14 = vpop.f32.mrf.mxu3 }
 0x2ed   : > { %v3545_v22 = vadd.f32 %v3544_v14, %v3531_v20  ;;  %v6794_v14 = vld [vmem:[#allocation11 + $0x48] sm:$0xff] }
 0x2ee   : > { %4051 = vmatpush.bf16.msrb.mxu1 %v6794_v14 }
 0x2ef   : > { %6973 = vtanh.f32 %v3545_v22 }
 0x2f2   : > { %4052 = vmatpush.bf16.msrb.mxu1 %v6793_v19 }
 0x2f4   : > { %v3546_v2 = vpop.f32.mrf.mxu3 }
 0x2f5   : > { %v3547_v30 = vadd.f32 %v3546_v2, %v3533_v62  ;;  %v6974_v54 = vpop.eup %6973 }
 0x2f7   : > { %6975 = vtanh.f32 %v3547_v30 }
 0x2fc   : > { %v3600_v34 = vpop.f32.mrf.mxu3 }
 0x2fd   : > { %v6976_v35 = vpop.eup %6975  ;;  %v3601_v31 = vadd.f32 %v3600_v34, %v3587_v42 }
 0x2fe   : > { %v3609_v38 = vpack.c.bf16 %v6976_v35, %v6974_v54 }
 0x2ff   : > { %6977 = vtanh.f32 %v3601_v31 }
 0x300   : > { %3817 = vmatmul.bf16.vlgmr.msra.gmra.mxu0 %v3609_v38  ;;  %3845 = vmatmul.bf16.vlgmr.msra.gmra.mxu2 %v3609_v38 }
 0x304   : > { %v3602_v39 = vpop.f32.mrf.mxu3 }
 0x305   : > { %v3603_v45 = vadd.f32 %v3602_v39, %v3589_v44  ;;  %v6978_v46 = vpop.eup %6977  ;;  %v7006_v39 = vld [vmem:[%s7776_s27] sm:$0xff] }
 0x307   : > { %6979 = vtanh.f32 %v3603_v45  ;;  %v3885_v45 = vsub.f32 %v7006_v39, %v7806_v26 }
 0x30d   : > { %v6980_v47 = vpop.eup %6979 }
 0x30e   : > { %v3610_v29 = vpack.c.bf16 %v6980_v47, %v6978_v46  ;;  %v7007_v47 = vld [vmem:[%s7776_s27 + $0x20] sm:$0xff] }
 0x310   : > { %3831 = vmatmul.bf16.vlgmr.msra.gmra.mxu1 %v3610_v29  ;;  %3859 = vmatmul.bf16.vlgmr.msra.gmra.mxu3 %v3610_v29  ;;  %v3887_v29 = vsub.f32 %v7007_v47, %v7810_v24 }
 0x37d   : > { %v3818_v63 = vpop.f32.mrf.mxu0 }
 0x37e   : > { %v3819_v5 = vadd.f32 %v3818_v63, %v3645_v3 }
 0x383   : > { %v3846_v9 = vpop.f32.mrf.mxu2 }
 0x384   : > { %v3847_v15 = vadd.f32 %v3846_v9, %v3646_v11  ;;  %v6804_v9 = vld [vmem:[#allocation13 + $0x18] sm:$0xff] }
 0x385   : > { %v3820_v27 = vpop.f32.mrf.mxu0  ;;  %4134 = vmatpush.bf16.msrb.mxu2 %v6804_v9 }
 0x386   : > { %v3821_v17 = vadd.f32 %v3820_v27, %v3645_v3 }
 0x38b   : > { %v3848_v62 = vpop.f32.mrf.mxu2 }
 0x38c   : > { %v3849_v32 = vadd.f32 %v3848_v62, %v3646_v11  ;;  %v6815_v11 = vld [vmem:[#allocation14 + $0x30] sm:$0xff]  ;;  %v6810_v62 = vld [vmem:[#allocation14 + $0x8] sm:$0xff] }
 0x38d   : > { %v3832_v10 = vpop.f32.mrf.mxu1 }
 0x38e   : > { %v3833_v12 = vadd.f32 %v3832_v10, %v3819_v5  ;;  %v6816_v10 = vld [vmem:[#allocation14 + $0x38] sm:$0xff] }
 0x38f   : > { %4215 = vmatpush.bf16.msrb.mxu3 %v6816_v10 }
 0x390   : > { %v3865_v23 = vsub.f32 0.0, %v3833_v12 }
 0x392   : > { %v3869_v59 = vmul.f32 1.442695, %v3865_v23 }
 0x393   : > { %v3860_v16 = vpop.f32.mrf.mxu3  ;;  %4216 = vmatpush.bf16.msrb.mxu3 %v6815_v11 }
 0x394   : > { %6981 = vpow2.f32 %v3869_v59  ;;  %v3861_v18 = vadd.f32 %v3860_v16, %v3847_v15 }
 0x395   : > { %v3834_v20 = vpop.f32.mrf.mxu1 }
 0x396   : > { %v3866_v21 = vsub.f32 0.0, %v3861_v18  ;;  %v3835_v22 = vadd.f32 %v3834_v20, %v3821_v17 }
 0x398   : > { %v3871_v2 = vmul.f32 1.442695, %v3866_v21  ;;  %v3867_v30 = vsub.f32 0.0, %v3835_v22  ;;  %v6812_v21 = vld [vmem:[#allocation14 + $0x18] sm:$0xff]  ;;  %v6811_v22 = vld [vmem:[#allocation14 + $0x10] sm:$0xff] }
 0x39a   : > { %v6982_v1 = vpop.eup %6981  ;;  %6983 = vpow2.f32 %v3871_v2  ;;  %v3873_v0 = vmul.f32 1.442695, %v3867_v30  ;;  %v6809_v2 = vld [vmem:[#allocation14] sm:$0xff] }
 0x39b   : > { %v3862_v54 = vpop.f32.mrf.mxu3  ;;  %v3877_v35 = vadd.f32 1.0, %v6982_v1 }
 0x39c   : > { %6985 = vpow2.f32 %v3873_v0  ;;  %v3863_v34 = vadd.f32 %v3862_v54, %v3849_v32 }
 0x39d   : > { %6987 = vrcp.f32 %v3877_v35  ;;  %v6972_v35 = vld [vmem:[#allocation16 + $0x12] ss:$0 sm:$0xff] }
 0x39e   : > { %v3868_v36 = vsub.f32 0.0, %v3863_v34 }
 0x3a0   : > { %v6984_v38 = vpop.eup %6983  ;;  %v3875_v40 = vmul.f32 1.442695, %v3868_v36 }
 0x3a1   : > { %v3878_v6 = vadd.f32 1.0, %v6984_v38 }
 0x3a2   : > { %v6986_v42 = vpop.eup %6985  ;;  %6989 = vpow2.f32 %v3875_v40 }
 0x3a3   : > { %v3879_v41 = vadd.f32 1.0, %v6986_v42  ;;  %v6988_v31 = vpop.eup %6987 }
 0x3a4   : > { %v3889_v43 = vmul.f32 %v6988_v31, %v3885_v45 }
 0x3a5   : > { %6991 = vrcp.f32 %v3879_v41 }
 0x3a6   : > { %6993 = vrcp.f32 %v3878_v6  ;;  %v3893_v55 = vadd.f32 %v3889_v43, %v7806_v26  ;;  %v6803_v26 = vld [vmem:[#allocation13 + $0x10] sm:$0xff] }
 0x3a7   : > { %4135 = vmatpush.bf16.msrb.mxu2 %v6803_v26 }
 0x3a8   : > { %v6990_v44 = vpop.eup %6989 }
 0x3a9   : > { %v3880_v46 = vadd.f32 1.0, %v6990_v44 }
 0x3ab   : > { %v6992_v48 = vpop.eup %6991  ;;  %6995 = vrcp.f32 %v3880_v46 }
 0x3ac   : > { %v3891_v49 = vmul.f32 %v6992_v48, %v3887_v29  ;;  %v6994_v51 = vpop.eup %6993 }
 0x3ad   : > { %v3890_v58 = vmul.f32 %v6994_v51, %v3886_v53 }
 0x3ae   : > { %v3895_v56 = vadd.f32 %v3891_v49, %v7810_v24  ;;  %v6802_v24 = vld [vmem:[#allocation13 + $0x8] sm:$0xff] }
 0x3af   : > { %v3894_v4 = vadd.f32 %v3890_v58, %v7816_v25  ;;  %4136 = vmatpush.bf16.msrb.mxu2 %v6802_v24  ;;  %v6814_v25 = vld [vmem:[#allocation14 + $0x28] sm:$0xff] }
 0x3b0   : > { %v3897_v61 = vpack.c.bf16 %v3895_v56, %v3893_v55  ;;  %4217 = vmatpush.bf16.msrb.mxu3 %v6814_v25 }
 0x3b1   : > { %v6996_v63 = vpop.eup %6995 }
 0x3b2   : > { %v3892_v3 = vmul.f32 %v6996_v63, %v3888_v57  ;;  %4039 = vmatmul.bf16.vlgmr.msrb.gmra.mxu0 %v3897_v61 }
 0x3b3   : > { %4137 = vmatpush.bf16.msrb.mxu2 %v6801_v37 }
 0x3b4   : > { %v3896_v50 = vadd.f32 %v3892_v3, %v7820_v7  ;;  %v6813_v7 = vld [vmem:[#allocation14 + $0x20] sm:$0xff] }
 0x3b5   : > { %4218 = vmatpush.bf16.msrb.mxu3 %v6813_v7 }
 0x3b6   : > { %v3898_v5 = vpack.c.bf16 %v3896_v50, %v3894_v4 }
 0x3b8   : > { %4053 = vmatmul.bf16.vlgmr.msrb.gmra.mxu1 %v3898_v5 }
 0x3b9   : > { %4219 = vmatpush.bf16.msrb.mxu3 %v6812_v21 }
 0x3bd   : > { %4220 = vmatpush.bf16.msrb.mxu3 %v6811_v22 }
 0x3c1   : > { %4221 = vmatpush.bf16.msrb.mxu3 %v6810_v62 }
 0x3c5   : > { %4222 = vmatpush.bf16.msrb.mxu3 %v6809_v2 }
 0x42f   : > { %v4040_v12 = vpop.f32.mrf.mxu0 }
 0x430   : > { %v4041_v23 = vadd.f32 %v6970_v13, %v4040_v12 }
 0x435   : > { %v4054_v14 = vpop.f32.mrf.mxu1 }
 0x436   : > { %v4055_v27 = vadd.f32 %v4054_v14, %v4041_v23 }
 0x437   : > { %v4042_v59 = vpop.f32.mrf.mxu0 }
 0x438   : > { %v4059_v15 = vmax.f32 %v4055_v27, 0.0  ;;  %v4043_v16 = vadd.f32 %v6970_v13, %v4042_v59 }
 0x43a   : > { %4249 = vst [vmem:[%s7841_s29] sm:$0xff] %v4059_v15 }
 0x43d   : > { %v4056_v17 = vpop.f32.mrf.mxu1 }
 0x43e   : > { %v4057_v18 = vadd.f32 %v4056_v17, %v4043_v16 }
 0x440   : > { %v4060_v19 = vmax.f32 %v4057_v18, 0.0 }
 0x442   : > { %v4061_v20 = vpack.c.bf16 %v4060_v19, %v4059_v15  ;;  %4250 = vst [vmem:[%s7841_s29 + $0x8] sm:$0xff] %v4060_v19 }
 0x444   : > { %4138 = vmatmul.bf16.vlgmr.msrb.gmra.mxu2 %v4061_v20 }
 0x4c7   : > { %v4139_v30 = vpop.f32.mrf.mxu2 }
 0x4c8   : > { %v4140_v1 = vadd.f32 %v6971_v28, %v4139_v30 }
 0x4ca   : > { %v4144_v33 = vmax.f32 %v4140_v1, 0.0 }
 0x4cf   : > { %v4141_v32 = vpop.f32.mrf.mxu2 }
 0x4d0   : > { %v4142_v0 = vadd.f32 %v6971_v28, %v4141_v32 }
 0x4d2   : > { %v4145_v54 = vmax.f32 %v4142_v0, 0.0 }
 0x4d4   : > { %v4146_v34 = vpack.c.bf16 %v4145_v54, %v4144_v33 }
 0x4d6   : > { %4223 = vmatmul.bf16.vlgmr.msrb.gmra.mxu3 %v4146_v34 }
 0x559   : > { %v4224_v36 = vpop.f32.mrf.mxu3 }
 0x55a   : > { %v4225_v60 = vadd.f32 %v6972_v35, %v4224_v36 }
 0x55c   : > { %4229 = vmax.xlane.f32.xlu0 %v4225_v60 }
 0x561   : > { %v4226_v38 = vpop.f32.mrf.mxu3 }
 0x562   : > { %v4227_v40 = vadd.f32 %v6972_v35, %v4226_v38 }
 0x564   : > { %4231 = vmax.xlane.f32.xlu0 %v4227_v40 }
 0x5cf   : > { %v4230_v42 = vpop.xlane.xlu0 %4229 }
 0x5d0   : > { %v4233_v6 = vsub.f32 %v4225_v60, %v4230_v42 }
 0x5d2   : > { %v4235_v41 = vmul.f32 1.442695, %v4233_v6 }
 0x5d4   : > { %6997 = vpow2.f32 %v4235_v41 }
 0x5d7   : > { %v4232_v31 = vpop.xlane.xlu0 %4231 }
 0x5d8   : > { %v4234_v44 = vsub.f32 %v4227_v40, %v4232_v31 }
 0x5da   : > { %v6998_v39 = vpop.eup %6997  ;;  %v4237_v45 = vmul.f32 1.442695, %v4234_v44 }
 0x5db   : > { %4239 = vadd.xlane.f32.xlu1 %v6998_v39 }
 0x5dc   : > { %6999 = vpow2.f32 %v4237_v45 }
 0x5e2   : > { %v7000_v46 = vpop.eup %6999 }
 0x5e3   : > { %7306 = shalt.err (!%p7303_p9)
}
 0x5e4   : > { %s7948_s14 = smov 128   ;;  %s7440_s1 = smov 8   ;;  %4241 = vadd.xlane.f32.xlu1 %v7000_v46 }
 0x5e5   : > { %6856 = dma.vmem_to_hbm [thread:$0]  (%p7627_p4), %s4300_s12, 256, %s4302_s4, %s7855_s5, %s7948_s14, %s7948_s14, %s7440_s1  }
 0x5e6   : > { %s4316_s9 = scalar_lea.hbm %s7939_s11, %s6820_s3  ;;  %s7973_s26 = sshll.u32 %s7776_s27, 4  ;;  %s4318_s26 = int_to_ptr.vmem [resolvable:$true] %s7973_s26 }
 0x5e7   : > { %s4319_s25 = sshll.u32 %s4316_s9, 4  ;;  %s7327_s12 = scalar_lea.hbm %s7939_s11, 128  ;;  %s4320_s25 = int_to_ptr.hbm [resolvable:$true] %s4319_s25 }
 0x5e8   : > { %s7321_s2 = sshra.s32 %s4320_s25, 4  ;;  %s7322_s2 = int_to_ptr.hbm [resolvable:$true] %s7321_s2 }
 0x5e9   : > { %s7323_s22 = scalar_lea.hbm %s7322_s2, 64  ;;  %p7328_p0 = scmp.lt.s32.totalorder %s7322_s2, %s7939_s11 }
 0x5ea   : > { %p7324_p10 = scmp.ne.s32.totalorder %s7322_s2, %s7323_s22  ;;  %p7329_p2 = scmp.lt.s32.totalorder %s7327_s12, %s7323_s22 }
 0x5ec   : > { %p7325_p13 = pnand %p7324_p10, %p7627_p4  ;;  %p7330_p1 = por %p7329_p2, %p7328_p0 }
 0x5ee   : > { %p7326_p11 = pneg %p7325_p13 }
 0x5f0   : > { %p7331_p3 = pnand %p7330_p1, %p7326_p11 }
 0x5f2   : > { %7334 = shalt.err (!%p7331_p3)
}
 0x5f3   : > { %s7441_s27 = smov 512   ;;  %s7442_s3 = smov 32  }
 0x5f4   : > { %6857 = dma.vmem_to_hbm [thread:$0]  (%p7627_p4), %s4318_s26, 1024, %s4320_s25, %s7855_s5, %s7441_s27, %s7441_s27, %s7442_s3  }
 0x5f5   : > { %s7974_s0 = sshll.u32 %s7661_s16, 4  ;;  %s7975_s14 = sshll.u32 %s7527_s24, 4 }
 0x5f6   : > { %s540_s13 = scalar_lea.vmem [#allocation17], %s7974_s0  ;;  %s7976_s9 = sld [smem:[#allocation34_spill]] }
 0x5f7   : > { %s4282_s22 = sshll.u32 %s540_s13, 4  ;;  %s4260_s5 = scalar_lea.sflag [#allocation4], %s7661_s16  ;;  %s4283_s22 = int_to_ptr.vmem [resolvable:$true] %s4282_s22 }
 0x5fc   : > { %s4281_s2 = scalar_lea.hbm %s7976_s9, %s7975_s14  ;;  %s7355_s27 = scalar_lea.hbm %s7976_s9, 32 }
 0x5fd   : > { %s4284_s12 = sshll.u32 %s4281_s2, 4  ;;  %s4285_s12 = int_to_ptr.hbm [resolvable:$true] %s4284_s12 }
 0x5fe   : > { %s7349_s26 = sshra.s32 %s4285_s12, 4  ;;  %s7350_s26 = int_to_ptr.hbm [resolvable:$true] %s7349_s26 }
 0x5ff   : > { %s7351_s25 = scalar_lea.hbm %s7350_s26, 16  ;;  %p7356_p8 = scmp.lt.s32.totalorder %s7350_s26, %s7976_s9 }
 0x600   : > { %p7352_p5 = scmp.ne.s32.totalorder %s7350_s26, %s7351_s25  ;;  %p7357_p9 = scmp.lt.s32.totalorder %s7355_s27, %s7351_s25 }
 0x602   : > { %p7353_p12 = pnand %p7352_p5, %p7627_p4  ;;  %p7358_p10 = por %p7357_p9, %p7356_p8 }
 0x604   : > { %p7354_p7 = pneg %p7353_p12 }
 0x606   : > { %p7359_p13 = pnand %p7358_p10, %p7354_p7 }
 0x64e   : > { %v4240_v47 = vpop.xlane.xlu1 %4239 }
 0x64f   : > { %7001 = vrcp.f32 %v4240_v47 }
 0x655   : > { %v7002_v29 = vpop.eup %7001 }
 0x656   : > { %v4245_v43 = vmul.f32 %v7002_v29, %v6998_v39 }
 0x657   : > { %v4242_v48 = vpop.xlane.xlu1 %4241 }
 0x658   : > { %7003 = vrcp.f32 %v4242_v48  ;;  %4247 = vst [vmem:[%s540_s13] sm:$0xff] %v4245_v43 }
 0x65e   : > { %v7004_v49 = vpop.eup %7003 }
 0x65f   : > { %v4246_v51 = vmul.f32 %v7004_v49, %v7000_v46 }
 0x661   : > { %4248 = vst [vmem:[%s540_s13 + $0x8] sm:$0xff] %v4246_v51 }
 0x662   : > { %7362 = shalt.err (!%p7359_p13)
}
 0x663   : > { %s7977_s16 = smov 128  }
 0x664   : > { %6855 = dma.vmem_to_hbm [thread:$0]  (%p7627_p4), %s4283_s22, 256, %s4285_s12, %s4260_s5, %s7977_s16, %s7977_s16, %s7440_s1  }
 0x665 PF: > { %s4334_s13 = sand.u32 1, %s7409_s17   ;;  %p7978_p11 = scmp.ge.s32.totalorder %s7421_s20, 2 }
 0x666   : > { %s4335_s14 = scalar_lea.sflag [#allocation4], %s4334_s13 }
 0x667   : > { %p6891_p0 = pnand %p7978_p11, %p7631_p6 }
 0x669   : > { %p6892_p2 = pneg %p6891_p0 }
 0x66b   : > { %7400 = dma.done.wait (%p6892_p2), %s4335_s14, 256  }
 0x66c   : > { %7402 = vsyncadd (%p6892_p2), %s4335_s14, 4294967040  ;;  %s7979_s15 = sadd.s32 4294967294, %s7421_s20  }
 0x66d   : > { %s4344_s29 = sand.u32 1, %s7979_s15  }
 0x66e   : > { %s4345_s21 = scalar_lea.sflag [#allocation19], %s4344_s29 }
 0x66f   : > { %7404 = dma.done.wait (%p6892_p2), %s4345_s21, 1280  }
 0x670   : > { %7406 = vsyncadd (%p6892_p2), %s4345_s21, 4294966016  ;;  %p32_p4 = scmp.ge.s32.totalorder %s7599_s30, 4   ;;  %s7980_s17 = smov %s7413_s18 }
 0x671   : > { %s7981_s18 = smov %s7417_s19  ;;  %s7982_s19 = smov %s7610_s23 }
 0x672   : > { %s7983_s20 = smov %s7599_s30  ;;  %34 = sbr.rel (!%p32_p4) target bundleno = 19 (0x13), region = 165 }
 0x677   :  { %4361 = vsyncpa [#allocation3], 1 }
 0x678   :  { %4363 = vsyncpa [#allocation3 + $0x1], 1 }
 0x679   :  { %4364 = vsyncpa [#allocation6], 1 }
 0x67a   :  { %4365 = vsyncpa [#allocation9], 1 }
 0x67b   :  { %4366 = vsyncpa [#allocation12], 1 }
 0x67c   :  { %4367 = vsyncpa [#allocation15], 1 }
 0x67d   :  { %4368 = vsyncpa [#allocation4], 1 }
 0x67e   :  { %4370 = vsyncpa [#allocation4 + $0x1], 1 }
 0x67f   :  { %4371 = vsyncpa [#allocation19], 1 }
 0x680   :  { %4373 = vsyncpa [#allocation19 + $0x1], 1 }

</bundles_post_ra>
